<compile_context>
chip_gen: v7x
topology: tpu7x:2x2x1
jax: 0.10.0
libtpu: 0.0.40
codegen_flags: <defaults>
</compile_context>

<pallas_src>
import functools

import numpy as np
import jax
import jax.numpy as jnp
from jax.experimental import pallas as pl
from jax.experimental.pallas import tpu as pltpu

K = 5                            # kernel size of every layer
C1, C2, C3, C4 = 6, 16, 6, 1     # per-layer output channel counts
LANE = 128                       # TPU lane width; intermediates padded to this


# --------------------------------------------------------------------------
# Fused Pallas kernel: whole autoencoder forward; `samples_per_step` samples
# are processed with a static unroll inside one grid step.
# --------------------------------------------------------------------------
def _fused_autoencoder_kernel(x_ref, w1_ref, b1_ref, w2_ref, b2_ref,
                              w3_ref, b3_ref, w4_ref, b4_ref,
                              o_ref, a1_ref, p3_ref, p4_ref,
                              *, dims, samples_per_step):
    H, H1, H2, H3, H4 = dims
    P = K - 1

    # Zero only the (K-1)-row top/bottom border bands of the decoder padding
    # buffers -- centers are fully overwritten for every sample.  Per-step on
    # purpose (v7x megacore scratch is per-core; a one-time init would leave
    # the second core's borders uninitialized).
    zpad = jnp.zeros((P, LANE), jnp.float32)
    p3_ref[0:P, :] = zpad
    p3_ref[P + H2:P + H2 + P, :] = zpad
    p4_ref[0:P, :] = zpad
    p4_ref[P + H3:P + H3 + P, :] = zpad

    def conv_rows(src, w_ref, b_ref, oh):
        # src: (H_in, W_in*Cin) ref or value; w_ref: (K, W_in*Cin, OW*Cout) ref;
        # b_ref: (1, OW*Cout) ref.  Valid conv expressed as K row-matmuls
        # (plain 2-D MXU dots, f32 accumulate).
        acc = jnp.zeros((oh, w_ref.shape[2]), jnp.float32)
        for kh in range(K):                                  # static unroll (K=5)
            acc = acc + jnp.dot(src[kh:kh + oh, :], w_ref[kh],
                                preferred_element_type=jnp.float32)
        return acc + b_ref[...]

    for s in range(samples_per_step):                        # static unroll
        xs = x_ref[s * H:(s + 1) * H, :]                     # (H, W) one sample

        # ---------------- encoder ----------------
        a1_ref[...] = jnp.maximum(conv_rows(xs, w1_ref, b1_ref, H1), 0.0)
        h2 = jnp.maximum(conv_rows(a1_ref, w2_ref, b2_ref, H2), 0.0)

        # ---------------- decoder ----------------
        # ConvTranspose2d (stride=1, pad=0) == valid conv over the zero-padded
        # input with the pre-flipped / channel-transposed kernel.  Horizontal
        # padding is absorbed in the Toeplitz weights; only row padding is in
        # p3/p4, so these center writes are full-width, lane-aligned stores.
        p3_ref[P:P + H2, :] = h2
        h3 = jnp.maximum(conv_rows(p3_ref, w3_ref, b3_ref, H3), 0.0)

        p4_ref[P:P + H3, :] = h3
        h4 = jnp.maximum(conv_rows(p4_ref, w4_ref, b4_ref, H4), 0.0)

        # Sigmoid after final ReLU (matches the PyTorch module); reciprocal on EUP.
        o_ref[s * H4:(s + 1) * H4, :] = pl.reciprocal(1.0 + jnp.exp(-h4),
                                                      approx=False)


# --------------------------------------------------------------------------
# Forward wrapper (single pallas_call)
# --------------------------------------------------------------------------
def _tensorcores_per_chip():
    # v7x has 2 TensorCores per chip; v5e / v6e have 1.
    try:
        kind = jax.devices()[0].device_kind.lower()
    except Exception:
        return 1
    return 2 if ("v7" in kind or "7x" in kind) else 1


def autoencoder_forward(x_nchw, prep):
    w1m, b1r, w2m, b2r, w3m, b3r, w4m, b4r = prep
    N, Cin, H, W = x_nchw.shape
    assert Cin == 1, "module expects 1 input channel"

    H1 = H - (K - 1)        # after conv1
    H2 = H1 - (K - 1)       # after conv2
    H3 = H2 + (K - 1)       # after convT1
    H4 = H3 + (K - 1)       # after convT2 (== H)
    W4 = W                  # symmetric: output width == input width
    dims = (H, H1, H2, H3, H4)

    # Single-TC parts: whole batch in one grid step (no per-step overhead).
    # v7x: one sample per step, split across the two TensorCores.
    n_tc = _tensorcores_per_chip()
    n_steps = n_tc if (n_tc > 1 and N % n_tc == 0) else 1
    samples_per_step = N // n_steps

    # Cin == 1 and Cout == 1, so NCHW <-> internal (N*H, W) layout is a pure reshape.
    x2d = x_nchw.reshape(N * H, W)

    kernel = functools.partial(_fused_autoencoder_kernel, dims=dims,
                               samples_per_step=samples_per_step)

    def full_spec(a):
        return pl.BlockSpec(a.shape, lambda n, _nd=a.ndim: (0,) * _nd)

    out2d = pl.pallas_call(
        kernel,
        out_shape=jax.ShapeDtypeStruct((N * H4, W4), jnp.float32),
        grid=(n_steps,),
        in_specs=[
            pl.BlockSpec((samples_per_step * H, W), lambda n: (n, 0)),
            full_spec(w1m), full_spec(b1r),
            full_spec(w2m), full_spec(b2r),
            full_spec(w3m), full_spec(b3r),
            full_spec(w4m), full_spec(b4r),
        ],
        out_specs=pl.BlockSpec((samples_per_step * H4, W4), lambda n: (n, 0)),
        scratch_shapes=[
            pltpu.VMEM((H1, LANE), jnp.float32),                   # conv1 act (lane-padded)
            pltpu.VMEM((H2 + 2 * (K - 1), LANE), jnp.float32),     # row-padded convT1 input
            pltpu.VMEM((H3 + 2 * (K - 1), LANE), jnp.float32),     # row-padded convT2 input
        ],
        compiler_params=pltpu.CompilerParams(
            dimension_semantics=("parallel",)),
    )(x2d, w1m, b1r, w2m, b2r, w3m, b3r, w4m, b4r)

    return out2d.reshape(N, 1, H4, W4)


# --------------------------------------------------------------------------
# One-time host-side parameter preparation (hoisted out of the forward path)
# --------------------------------------------------------------------------
def prepare_params(params, H=16, W=16):
    (w1, b1), (w2, b2), (w3, b3), (w4, b4) = [
        (np.asarray(w, np.float32), np.asarray(b, np.float32)) for w, b in params]

    W1 = W - (K - 1)         # 12
    W2 = W1 - (K - 1)        # 8
    W3 = W2 + (K - 1)        # 12
    W4 = W3 + (K - 1)        # 16

    # Effective (K, K, Cin, Cout) kernels for a *valid* convolution.
    e1 = np.transpose(w1, (2, 3, 1, 0))                     # Conv2d (Cout,Cin,K,K)
    e2 = np.transpose(w2, (2, 3, 1, 0))
    e3 = np.transpose(w3[:, :, ::-1, ::-1], (2, 3, 0, 1))   # ConvTranspose2d (Cin,Cout,K,K)
    e4 = np.transpose(w4[:, :, ::-1, ::-1], (2, 3, 0, 1))

    def row_weight(w_eff, w_in, pad_w=0, in_cols=None, out_cols=None):
        # Block-Toeplitz: one flattened (w, ci) input row times m[kh] produces
        # one flattened (ow, co) output row of a valid conv whose input is
        # conceptually zero-padded by pad_w columns each side (padding taps
        # are absorbed/dropped).  in_cols/out_cols allow zero-padding to a
        # full 128-lane vreg.
        k, _, cin, cout = w_eff.shape
        ow_n = w_in + 2 * pad_w - (k - 1)
        rows, cols = w_in * cin, ow_n * cout
        in_cols = rows if in_cols is None else in_cols
        out_cols = cols if out_cols is None else out_cols
        m = np.zeros((k, in_cols, out_cols), np.float32)
        for kh in range(k):
            for kw in range(k):
                for ow in range(ow_n):
                    wpos = ow + kw - pad_w                   # column in real input
                    if 0 <= wpos < w_in:
                        m[kh, wpos * cin:(wpos + 1) * cin,
                          ow * cout:(ow + 1) * cout] = w_eff[kh, kw]
        return jnp.asarray(m)

    def row_bias(b, ow_n, out_cols=None):
        v = np.tile(b, ow_n).astype(np.float32)
        if out_cols is not None and out_cols > v.size:
            v = np.concatenate([v, np.zeros(out_cols - v.size, np.float32)])
        return jnp.asarray(v.reshape(1, -1))

    # TODO(synk): bf16 Toeplitz weights would halve weight DMA but need
    # re-validation against the 5e-4 tolerance; kept f32 here.
    return (
        row_weight(e1, W,  pad_w=0,     out_cols=LANE), row_bias(b1, W1, LANE),
        row_weight(e2, W1, pad_w=0,     in_cols=LANE),  row_bias(b2, W2),
        row_weight(e3, W2, pad_w=K - 1, out_cols=LANE), row_bias(b3, W3, LANE),
        row_weight(e4, W3, pad_w=K - 1, in_cols=LANE),  row_bias(b4, W4),
    )


# --------------------------------------------------------------------------
# Deterministic parameter initialization (matches PyTorch layer shapes)
# --------------------------------------------------------------------------
def init_params(key):
    def uniform(k, shape, fan_in):
        s = 1.0 / np.sqrt(fan_in)
        return jax.random.uniform(k, shape, jnp.float32, -s, s)

    ks = jax.random.split(key, 8)
    w1 = uniform(ks[0], (6, 1, 5, 5), 1 * 25);   b1 = uniform(ks[1], (6,),  1 * 25)
    w2 = uniform(ks[2], (16, 6, 5, 5), 6 * 25);  b2 = uniform(ks[3], (16,), 6 * 25)
    w3 = uniform(ks[4], (16, 6, 5, 5), 16 * 25); b3 = uniform(ks[5], (6,), 16 * 25)
    w4 = uniform(ks[6], (6, 1, 5, 5), 6 * 25);   b4 = uniform(ks[7], (1,),  6 * 25)
    return ((w1, b1), (w2, b2), (w3, b3), (w4, b4))


# --------------------------------------------------------------------------
# NumPy reference (direct PyTorch semantics) for a correctness check
# --------------------------------------------------------------------------
def _ref_conv(x, w, b):
    N, Ci, H, W = x.shape
    Co, _, k, _ = w.shape
    OH, OW = H - k + 1, W - k + 1
    out = np.zeros((N, Co, OH, OW), np.float32)
    for kh in range(k):
        for kw in range(k):
            out += np.einsum('nchw,oc->nohw', x[:, :, kh:kh + OH, kw:kw + OW], w[:, :, kh, kw])
    return out + b[None, :, None, None]


def _ref_convT(x, w, b):
    N, Ci, H, W = x.shape
    Co, k = w.shape[1], w.shape[2]
    out = np.zeros((N, Co, H + k - 1, W + k - 1), np.float32)
    for kh in range(k):
        for kw in range(k):
            out[:, :, kh:kh + H, kw:kw + W] += np.einsum('nchw,co->nohw', x, w[:, :, kh, kw])
    return out + b[None, :, None, None]


def _ref_forward(x, params):
    (w1, b1), (w2, b2), (w3, b3), (w4, b4) = [(np.asarray(w), np.asarray(b)) for w, b in params]
    x = np.asarray(x)
    x = np.maximum(_ref_conv(x, w1, b1), 0.0)
    x = np.maximum(_ref_conv(x, w2, b2), 0.0)
    x = np.maximum(_ref_convT(x, w3, b3), 0.0)
    x = np.maximum(_ref_convT(x, w4, b4), 0.0)
    return 1.0 / (1.0 + np.exp(-x))


# --------------------------------------------------------------------------
if __name__ == "__main__":
    key = jax.random.PRNGKey(0)
    k_params, k_x = jax.random.split(key)
    params = init_params(k_params)

    # Input: batch=2, channels=1 (module requires Cin=1), spatial 16x16
    x = jax.random.uniform(k_x, (2, 1, 16, 16), jnp.float32)

    prep = prepare_params(params, H=16, W=16)          # one-time weight prep
    fwd = jax.jit(autoencoder_forward)
    out = jax.block_until_ready(fwd(x, prep))

    assert out.shape == (2, 1, 16, 16), out.shape
    ref = _ref_forward(x, params)
    np.testing.assert_allclose(np.asarray(out), ref, rtol=5e-4, atol=5e-4)

    print("KERNEL_OK")
</pallas_src>

<mosaic_0001>
module attributes {stable_mosaic.version = 11 : i64} {
  func.func @_fused_autoencoder_kernel(%arg0: i32, %arg1: memref<32x16xf32, #tpu.memory_space<vmem>>, %arg2: memref<5x16x128xf32, #tpu.memory_space<vmem>>, %arg3: memref<1x128xf32, #tpu.memory_space<vmem>>, %arg4: memref<5x128x128xf32, #tpu.memory_space<vmem>>, %arg5: memref<1x128xf32, #tpu.memory_space<vmem>>, %arg6: memref<5x128x128xf32, #tpu.memory_space<vmem>>, %arg7: memref<1x128xf32, #tpu.memory_space<vmem>>, %arg8: memref<5x128x16xf32, #tpu.memory_space<vmem>>, %arg9: memref<1x16xf32, #tpu.memory_space<vmem>>, %arg10: memref<32x16xf32, #tpu.memory_space<vmem>>, %arg11: memref<12x128xf32, #tpu.memory_space<vmem>>, %arg12: memref<16x128xf32, #tpu.memory_space<vmem>>, %arg13: memref<20x128xf32, #tpu.memory_space<vmem>>) attributes {dimension_semantics = [#tpu.dimension_semantics<parallel>], iteration_bounds = array<i64: 1>, scalar_prefetch = 0 : i64, scratch_operands = 3 : i64, tpu.core_type = #tpu.core_type<tc>, window_params = [{transform_indices = @transform_0, window_bounds = array<i64: 32, 16>}, {pipeline_mode = #tpu.pipeline_mode<synchronous>, transform_indices = @transform_1, window_bounds = array<i64: 5, 16, 128>}, {pipeline_mode = #tpu.pipeline_mode<synchronous>, transform_indices = @transform_2, window_bounds = array<i64: 1, 128>}, {pipeline_mode = #tpu.pipeline_mode<synchronous>, transform_indices = @transform_3, window_bounds = array<i64: 5, 128, 128>}, {pipeline_mode = #tpu.pipeline_mode<synchronous>, transform_indices = @transform_4, window_bounds = array<i64: 1, 128>}, {pipeline_mode = #tpu.pipeline_mode<synchronous>, transform_indices = @transform_5, window_bounds = array<i64: 5, 128, 128>}, {pipeline_mode = #tpu.pipeline_mode<synchronous>, transform_indices = @transform_6, window_bounds = array<i64: 1, 128>}, {pipeline_mode = #tpu.pipeline_mode<synchronous>, transform_indices = @transform_7, window_bounds = array<i64: 5, 128, 16>}, {pipeline_mode = #tpu.pipeline_mode<synchronous>, transform_indices = @transform_8, window_bounds = array<i64: 1, 16>}, {transform_indices = @transform_9, window_bounds = array<i64: 32, 16>}]} {
    %cst = arith.constant 0.000000e+00 : f32
    %0 = vector.broadcast %cst : f32 to vector<4x128xf32>
    %c0 = arith.constant 0 : index
    %c0_0 = arith.constant 0 : index
    %1 = vector.load %arg12[%c0, %c0_0] : memref<16x128xf32, #tpu.memory_space<vmem>>, vector<4x128xf32>
    tpu.vector_store %arg12[%c0, %c0_0], %0 {strides = array<i32>} : memref<16x128xf32, #tpu.memory_space<vmem>>, vector<4x128xf32>,
    %c12 = arith.constant 12 : index
    %c0_1 = arith.constant 0 : index
    %2 = vector.load %arg12[%c12, %c0_1] : memref<16x128xf32, #tpu.memory_space<vmem>>, vector<4x128xf32>
    tpu.vector_store %arg12[%c12, %c0_1], %0 {strides = array<i32>} : memref<16x128xf32, #tpu.memory_space<vmem>>, vector<4x128xf32>,
    %c0_2 = arith.constant 0 : index
    %c0_3 = arith.constant 0 : index
    %3 = vector.load %arg13[%c0_2, %c0_3] : memref<20x128xf32, #tpu.memory_space<vmem>>, vector<4x128xf32>
    tpu.vector_store %arg13[%c0_2, %c0_3], %0 {strides = array<i32>} : memref<20x128xf32, #tpu.memory_space<vmem>>, vector<4x128xf32>,
    %c16 = arith.constant 16 : index
    %c0_4 = arith.constant 0 : index
    %4 = vector.load %arg13[%c16, %c0_4] : memref<20x128xf32, #tpu.memory_space<vmem>>, vector<4x128xf32>
    tpu.vector_store %arg13[%c16, %c0_4], %0 {strides = array<i32>} : memref<20x128xf32, #tpu.memory_space<vmem>>, vector<4x128xf32>,
    %c0_5 = arith.constant 0 : index
    %c0_6 = arith.constant 0 : index
    %5 = vector.load %arg1[%c0_5, %c0_6] : memref<32x16xf32, #tpu.memory_space<vmem>>, vector<16x16xf32>
    %cst_7 = arith.constant 0.000000e+00 : f32
    %6 = vector.broadcast %cst_7 : f32 to vector<12x128xf32>
    %7 = vector.extract_strided_slice %5 {offsets = [0, 0], sizes = [12, 16], strides = [1, 1]} : vector<16x16xf32> to vector<12x16xf32>
    %c0_8 = arith.constant 0 : index
    %c0_9 = arith.constant 0 : index
    %c0_10 = arith.constant 0 : index
    %8 = vector.load %arg2[%c0_8, %c0_9, %c0_10] : memref<5x16x128xf32, #tpu.memory_space<vmem>>, vector<1x16x128xf32>
    %9 = vector.shape_cast %8 : vector<1x16x128xf32> to vector<16x128xf32>
    %cst_11 = arith.constant dense<0.000000e+00> : vector<12x128xf32>
    %10 = tpu.matmul %7, %9, %cst_11 {dimension_numbers = #tpu.dot_dimension_numbers<[1], [0], [0], [1], [0, 0, 1, 1], [], []>} : vector<12x16xf32>, vector<16x128xf32>, vector<12x128xf32> -> vector<12x128xf32>
    %11 = arith.addf %6, %10 : vector<12x128xf32>
    %12 = vector.extract_strided_slice %5 {offsets = [1, 0], sizes = [12, 16], strides = [1, 1]} : vector<16x16xf32> to vector<12x16xf32>
    %c1 = arith.constant 1 : index
    %c0_12 = arith.constant 0 : index
    %c0_13 = arith.constant 0 : index
    %13 = vector.load %arg2[%c1, %c0_12, %c0_13] : memref<5x16x128xf32, #tpu.memory_space<vmem>>, vector<1x16x128xf32>
    %14 = vector.shape_cast %13 : vector<1x16x128xf32> to vector<16x128xf32>
    %cst_14 = arith.constant dense<0.000000e+00> : vector<12x128xf32>
    %15 = tpu.matmul %12, %14, %cst_14 {dimension_numbers = #tpu.dot_dimension_numbers<[1], [0], [0], [1], [0, 0, 1, 1], [], []>} : vector<12x16xf32>, vector<16x128xf32>, vector<12x128xf32> -> vector<12x128xf32>
    %16 = arith.addf %11, %15 : vector<12x128xf32>
    %17 = vector.extract_strided_slice %5 {offsets = [2, 0], sizes = [12, 16], strides = [1, 1]} : vector<16x16xf32> to vector<12x16xf32>
    %c2 = arith.constant 2 : index
    %c0_15 = arith.constant 0 : index
    %c0_16 = arith.constant 0 : index
    %18 = vector.load %arg2[%c2, %c0_15, %c0_16] : memref<5x16x128xf32, #tpu.memory_space<vmem>>, vector<1x16x128xf32>
    %19 = vector.shape_cast %18 : vector<1x16x128xf32> to vector<16x128xf32>
    %cst_17 = arith.constant dense<0.000000e+00> : vector<12x128xf32>
    %20 = tpu.matmul %17, %19, %cst_17 {dimension_numbers = #tpu.dot_dimension_numbers<[1], [0], [0], [1], [0, 0, 1, 1], [], []>} : vector<12x16xf32>, vector<16x128xf32>, vector<12x128xf32> -> vector<12x128xf32>
    %21 = arith.addf %16, %20 : vector<12x128xf32>
    %22 = vector.extract_strided_slice %5 {offsets = [3, 0], sizes = [12, 16], strides = [1, 1]} : vector<16x16xf32> to vector<12x16xf32>
    %c3 = arith.constant 3 : index
    %c0_18 = arith.constant 0 : index
    %c0_19 = arith.constant 0 : index
    %23 = vector.load %arg2[%c3, %c0_18, %c0_19] : memref<5x16x128xf32, #tpu.memory_space<vmem>>, vector<1x16x128xf32>
    %24 = vector.shape_cast %23 : vector<1x16x128xf32> to vector<16x128xf32>
    %cst_20 = arith.constant dense<0.000000e+00> : vector<12x128xf32>
    %25 = tpu.matmul %22, %24, %cst_20 {dimension_numbers = #tpu.dot_dimension_numbers<[1], [0], [0], [1], [0, 0, 1, 1], [], []>} : vector<12x16xf32>, vector<16x128xf32>, vector<12x128xf32> -> vector<12x128xf32>
    %26 = arith.addf %21, %25 : vector<12x128xf32>
    %27 = vector.extract_strided_slice %5 {offsets = [4, 0], sizes = [12, 16], strides = [1, 1]} : vector<16x16xf32> to vector<12x16xf32>
    %c4 = arith.constant 4 : index
    %c0_21 = arith.constant 0 : index
    %c0_22 = arith.constant 0 : index
    %28 = vector.load %arg2[%c4, %c0_21, %c0_22] : memref<5x16x128xf32, #tpu.memory_space<vmem>>, vector<1x16x128xf32>
    %29 = vector.shape_cast %28 : vector<1x16x128xf32> to vector<16x128xf32>
    %cst_23 = arith.constant dense<0.000000e+00> : vector<12x128xf32>
    %30 = tpu.matmul %27, %29, %cst_23 {dimension_numbers = #tpu.dot_dimension_numbers<[1], [0], [0], [1], [0, 0, 1, 1], [], []>} : vector<12x16xf32>, vector<16x128xf32>, vector<12x128xf32> -> vector<12x128xf32>
    %31 = arith.addf %26, %30 : vector<12x128xf32>
    %c0_24 = arith.constant 0 : index
    %c0_25 = arith.constant 0 : index
    %32 = vector.load %arg3[%c0_24, %c0_25] : memref<1x128xf32, #tpu.memory_space<vmem>>, vector<1x128xf32>
    %33 = vector.broadcast %32 : vector<1x128xf32> to vector<12x128xf32>
    %34 = arith.addf %31, %33 : vector<12x128xf32>
    %cst_26 = arith.constant 0.000000e+00 : f32
    %35 = vector.broadcast %cst_26 : f32 to vector<12x128xf32>
    %36 = arith.maximumf %34, %35 : vector<12x128xf32>
    %c0_27 = arith.constant 0 : index
    %c0_28 = arith.constant 0 : index
    %37 = vector.load %arg11[%c0_27, %c0_28] : memref<12x128xf32, #tpu.memory_space<vmem>>, vector<12x128xf32>
    tpu.vector_store %arg11[%c0_27, %c0_28], %36 {strides = array<i32>} : memref<12x128xf32, #tpu.memory_space<vmem>>, vector<12x128xf32>,
    %cst_29 = arith.constant 0.000000e+00 : f32
    %38 = vector.broadcast %cst_29 : f32 to vector<8x128xf32>
    %c0_30 = arith.constant 0 : index
    %c0_31 = arith.constant 0 : index
    %39 = vector.load %arg11[%c0_30, %c0_31] : memref<12x128xf32, #tpu.memory_space<vmem>>, vector<8x128xf32>
    %c0_32 = arith.constant 0 : index
    %c0_33 = arith.constant 0 : index
    %c0_34 = arith.constant 0 : index
    %40 = vector.load %arg4[%c0_32, %c0_33, %c0_34] : memref<5x128x128xf32, #tpu.memory_space<vmem>>, vector<1x128x128xf32>
    %41 = vector.shape_cast %40 : vector<1x128x128xf32> to vector<128x128xf32>
    %cst_35 = arith.constant dense<0.000000e+00> : vector<8x128xf32>
    %42 = tpu.matmul %39, %41, %cst_35 {dimension_numbers = #tpu.dot_dimension_numbers<[1], [0], [0], [1], [0, 0, 1, 1], [], []>} : vector<8x128xf32>, vector<128x128xf32>, vector<8x128xf32> -> vector<8x128xf32>
    %43 = arith.addf %38, %42 : vector<8x128xf32>
    %c1_36 = arith.constant 1 : index
    %c0_37 = arith.constant 0 : index
    %44 = vector.load %arg11[%c1_36, %c0_37] : memref<12x128xf32, #tpu.memory_space<vmem>>, vector<8x128xf32>
    %c1_38 = arith.constant 1 : index
    %c0_39 = arith.constant 0 : index
    %c0_40 = arith.constant 0 : index
    %45 = vector.load %arg4[%c1_38, %c0_39, %c0_40] : memref<5x128x128xf32, #tpu.memory_space<vmem>>, vector<1x128x128xf32>
    %46 = vector.shape_cast %45 : vector<1x128x128xf32> to vector<128x128xf32>
    %cst_41 = arith.constant dense<0.000000e+00> : vector<8x128xf32>
    %47 = tpu.matmul %44, %46, %cst_41 {dimension_numbers = #tpu.dot_dimension_numbers<[1], [0], [0], [1], [0, 0, 1, 1], [], []>} : vector<8x128xf32>, vector<128x128xf32>, vector<8x128xf32> -> vector<8x128xf32>
    %48 = arith.addf %43, %47 : vector<8x128xf32>
    %c2_42 = arith.constant 2 : index
    %c0_43 = arith.constant 0 : index
    %49 = vector.load %arg11[%c2_42, %c0_43] : memref<12x128xf32, #tpu.memory_space<vmem>>, vector<8x128xf32>
    %c2_44 = arith.constant 2 : index
    %c0_45 = arith.constant 0 : index
    %c0_46 = arith.constant 0 : index
    %50 = vector.load %arg4[%c2_44, %c0_45, %c0_46] : memref<5x128x128xf32, #tpu.memory_space<vmem>>, vector<1x128x128xf32>
    %51 = vector.shape_cast %50 : vector<1x128x128xf32> to vector<128x128xf32>
    %cst_47 = arith.constant dense<0.000000e+00> : vector<8x128xf32>
    %52 = tpu.matmul %49, %51, %cst_47 {dimension_numbers = #tpu.dot_dimension_numbers<[1], [0], [0], [1], [0, 0, 1, 1], [], []>} : vector<8x128xf32>, vector<128x128xf32>, vector<8x128xf32> -> vector<8x128xf32>
    %53 = arith.addf %48, %52 : vector<8x128xf32>
    %c3_48 = arith.constant 3 : index
    %c0_49 = arith.constant 0 : index
    %54 = vector.load %arg11[%c3_48, %c0_49] : memref<12x128xf32, #tpu.memory_space<vmem>>, vector<8x128xf32>
    %c3_50 = arith.constant 3 : index
    %c0_51 = arith.constant 0 : index
    %c0_52 = arith.constant 0 : index
    %55 = vector.load %arg4[%c3_50, %c0_51, %c0_52] : memref<5x128x128xf32, #tpu.memory_space<vmem>>, vector<1x128x128xf32>
    %56 = vector.shape_cast %55 : vector<1x128x128xf32> to vector<128x128xf32>
    %cst_53 = arith.constant dense<0.000000e+00> : vector<8x128xf32>
    %57 = tpu.matmul %54, %56, %cst_53 {dimension_numbers = #tpu.dot_dimension_numbers<[1], [0], [0], [1], [0, 0, 1, 1], [], []>} : vector<8x128xf32>, vector<128x128xf32>, vector<8x128xf32> -> vector<8x128xf32>
    %58 = arith.addf %53, %57 : vector<8x128xf32>
    %c4_54 = arith.constant 4 : index
    %c0_55 = arith.constant 0 : index
    %59 = vector.load %arg11[%c4_54, %c0_55] : memref<12x128xf32, #tpu.memory_space<vmem>>, vector<8x128xf32>
    %c4_56 = arith.constant 4 : index
    %c0_57 = arith.constant 0 : index
    %c0_58 = arith.constant 0 : index
    %60 = vector.load %arg4[%c4_56, %c0_57, %c0_58] : memref<5x128x128xf32, #tpu.memory_space<vmem>>, vector<1x128x128xf32>
    %61 = vector.shape_cast %60 : vector<1x128x128xf32> to vector<128x128xf32>
    %cst_59 = arith.constant dense<0.000000e+00> : vector<8x128xf32>
    %62 = tpu.matmul %59, %61, %cst_59 {dimension_numbers = #tpu.dot_dimension_numbers<[1], [0], [0], [1], [0, 0, 1, 1], [], []>} : vector<8x128xf32>, vector<128x128xf32>, vector<8x128xf32> -> vector<8x128xf32>
    %63 = arith.addf %58, %62 : vector<8x128xf32>
    %c0_60 = arith.constant 0 : index
    %c0_61 = arith.constant 0 : index
    %64 = vector.load %arg5[%c0_60, %c0_61] : memref<1x128xf32, #tpu.memory_space<vmem>>, vector<1x128xf32>
    %65 = vector.broadcast %64 : vector<1x128xf32> to vector<8x128xf32>
    %66 = arith.addf %63, %65 : vector<8x128xf32>
    %cst_62 = arith.constant 0.000000e+00 : f32
    %67 = vector.broadcast %cst_62 : f32 to vector<8x128xf32>
    %68 = arith.maximumf %66, %67 : vector<8x128xf32>
    %c4_63 = arith.constant 4 : index
    %c0_64 = arith.constant 0 : index
    %69 = vector.load %arg12[%c4_63, %c0_64] : memref<16x128xf32, #tpu.memory_space<vmem>>, vector<8x128xf32>
    tpu.vector_store %arg12[%c4_63, %c0_64], %68 {strides = array<i32>} : memref<16x128xf32, #tpu.memory_space<vmem>>, vector<8x128xf32>,
    %cst_65 = arith.constant 0.000000e+00 : f32
    %70 = vector.broadcast %cst_65 : f32 to vector<12x128xf32>
    %c0_66 = arith.constant 0 : index
    %c0_67 = arith.constant 0 : index
    %71 = vector.load %arg12[%c0_66, %c0_67] : memref<16x128xf32, #tpu.memory_space<vmem>>, vector<12x128xf32>
    %c0_68 = arith.constant 0 : index
    %c0_69 = arith.constant 0 : index
    %c0_70 = arith.constant 0 : index
    %72 = vector.load %arg6[%c0_68, %c0_69, %c0_70] : memref<5x128x128xf32, #tpu.memory_space<vmem>>, vector<1x128x128xf32>
    %73 = vector.shape_cast %72 : vector<1x128x128xf32> to vector<128x128xf32>
    %cst_71 = arith.constant dense<0.000000e+00> : vector<12x128xf32>
    %74 = tpu.matmul %71, %73, %cst_71 {dimension_numbers = #tpu.dot_dimension_numbers<[1], [0], [0], [1], [0, 0, 1, 1], [], []>} : vector<12x128xf32>, vector<128x128xf32>, vector<12x128xf32> -> vector<12x128xf32>
    %75 = arith.addf %70, %74 : vector<12x128xf32>
    %c1_72 = arith.constant 1 : index
    %c0_73 = arith.constant 0 : index
    %76 = vector.load %arg12[%c1_72, %c0_73] : memref<16x128xf32, #tpu.memory_space<vmem>>, vector<12x128xf32>
    %c1_74 = arith.constant 1 : index
    %c0_75 = arith.constant 0 : index
    %c0_76 = arith.constant 0 : index
    %77 = vector.load %arg6[%c1_74, %c0_75, %c0_76] : memref<5x128x128xf32, #tpu.memory_space<vmem>>, vector<1x128x128xf32>
    %78 = vector.shape_cast %77 : vector<1x128x128xf32> to vector<128x128xf32>
    %cst_77 = arith.constant dense<0.000000e+00> : vector<12x128xf32>
    %79 = tpu.matmul %76, %78, %cst_77 {dimension_numbers = #tpu.dot_dimension_numbers<[1], [0], [0], [1], [0, 0, 1, 1], [], []>} : vector<12x128xf32>, vector<128x128xf32>, vector<12x128xf32> -> vector<12x128xf32>
    %80 = arith.addf %75, %79 : vector<12x128xf32>
    %c2_78 = arith.constant 2 : index
    %c0_79 = arith.constant 0 : index
    %81 = vector.load %arg12[%c2_78, %c0_79] : memref<16x128xf32, #tpu.memory_space<vmem>>, vector<12x128xf32>
    %c2_80 = arith.constant 2 : index
    %c0_81 = arith.constant 0 : index
    %c0_82 = arith.constant 0 : index
    %82 = vector.load %arg6[%c2_80, %c0_81, %c0_82] : memref<5x128x128xf32, #tpu.memory_space<vmem>>, vector<1x128x128xf32>
    %83 = vector.shape_cast %82 : vector<1x128x128xf32> to vector<128x128xf32>
    %cst_83 = arith.constant dense<0.000000e+00> : vector<12x128xf32>
    %84 = tpu.matmul %81, %83, %cst_83 {dimension_numbers = #tpu.dot_dimension_numbers<[1], [0], [0], [1], [0, 0, 1, 1], [], []>} : vector<12x128xf32>, vector<128x128xf32>, vector<12x128xf32> -> vector<12x128xf32>
    %85 = arith.addf %80, %84 : vector<12x128xf32>
    %c3_84 = arith.constant 3 : index
    %c0_85 = arith.constant 0 : index
    %86 = vector.load %arg12[%c3_84, %c0_85] : memref<16x128xf32, #tpu.memory_space<vmem>>, vector<12x128xf32>
    %c3_86 = arith.constant 3 : index
    %c0_87 = arith.constant 0 : index
    %c0_88 = arith.constant 0 : index
    %87 = vector.load %arg6[%c3_86, %c0_87, %c0_88] : memref<5x128x128xf32, #tpu.memory_space<vmem>>, vector<1x128x128xf32>
    %88 = vector.shape_cast %87 : vector<1x128x128xf32> to vector<128x128xf32>
    %cst_89 = arith.constant dense<0.000000e+00> : vector<12x128xf32>
    %89 = tpu.matmul %86, %88, %cst_89 {dimension_numbers = #tpu.dot_dimension_numbers<[1], [0], [0], [1], [0, 0, 1, 1], [], []>} : vector<12x128xf32>, vector<128x128xf32>, vector<12x128xf32> -> vector<12x128xf32>
    %90 = arith.addf %85, %89 : vector<12x128xf32>
    %c4_90 = arith.constant 4 : index
    %c0_91 = arith.constant 0 : index
    %91 = vector.load %arg12[%c4_90, %c0_91] : memref<16x128xf32, #tpu.memory_space<vmem>>, vector<12x128xf32>
    %c4_92 = arith.constant 4 : index
    %c0_93 = arith.constant 0 : index
    %c0_94 = arith.constant 0 : index
    %92 = vector.load %arg6[%c4_92, %c0_93, %c0_94] : memref<5x128x128xf32, #tpu.memory_space<vmem>>, vector<1x128x128xf32>
    %93 = vector.shape_cast %92 : vector<1x128x128xf32> to vector<128x128xf32>
    %cst_95 = arith.constant dense<0.000000e+00> : vector<12x128xf32>
    %94 = tpu.matmul %91, %93, %cst_95 {dimension_numbers = #tpu.dot_dimension_numbers<[1], [0], [0], [1], [0, 0, 1, 1], [], []>} : vector<12x128xf32>, vector<128x128xf32>, vector<12x128xf32> -> vector<12x128xf32>
    %95 = arith.addf %90, %94 : vector<12x128xf32>
    %c0_96 = arith.constant 0 : index
    %c0_97 = arith.constant 0 : index
    %96 = vector.load %arg7[%c0_96, %c0_97] : memref<1x128xf32, #tpu.memory_space<vmem>>, vector<1x128xf32>
    %97 = vector.broadcast %96 : vector<1x128xf32> to vector<12x128xf32>
    %98 = arith.addf %95, %97 : vector<12x128xf32>
    %cst_98 = arith.constant 0.000000e+00 : f32
    %99 = vector.broadcast %cst_98 : f32 to vector<12x128xf32>
    %100 = arith.maximumf %98, %99 : vector<12x128xf32>
    %c4_99 = arith.constant 4 : index
    %c0_100 = arith.constant 0 : index
    %101 = vector.load %arg13[%c4_99, %c0_100] : memref<20x128xf32, #tpu.memory_space<vmem>>, vector<12x128xf32>
    tpu.vector_store %arg13[%c4_99, %c0_100], %100 {strides = array<i32>} : memref<20x128xf32, #tpu.memory_space<vmem>>, vector<12x128xf32>,
    %cst_101 = arith.constant 0.000000e+00 : f32
    %102 = vector.broadcast %cst_101 : f32 to vector<16x16xf32>
    %c0_102 = arith.constant 0 : index
    %c0_103 = arith.constant 0 : index
    %103 = vector.load %arg13[%c0_102, %c0_103] : memref<20x128xf32, #tpu.memory_space<vmem>>, vector<16x128xf32>
    %c0_104 = arith.constant 0 : index
    %c0_105 = arith.constant 0 : index
    %c0_106 = arith.constant 0 : index
    %104 = vector.load %arg8[%c0_104, %c0_105, %c0_106] : memref<5x128x16xf32, #tpu.memory_space<vmem>>, vector<1x128x16xf32>
    %105 = vector.shape_cast %104 : vector<1x128x16xf32> to vector<128x16xf32>
    %cst_107 = arith.constant dense<0.000000e+00> : vector<16x16xf32>
    %106 = tpu.matmul %103, %105, %cst_107 {dimension_numbers = #tpu.dot_dimension_numbers<[1], [0], [0], [1], [0, 0, 1, 1], [], []>} : vector<16x128xf32>, vector<128x16xf32>, vector<16x16xf32> -> vector<16x16xf32>
    %107 = arith.addf %102, %106 : vector<16x16xf32>
    %c1_108 = arith.constant 1 : index
    %c0_109 = arith.constant 0 : index
    %108 = vector.load %arg13[%c1_108, %c0_109] : memref<20x128xf32, #tpu.memory_space<vmem>>, vector<16x128xf32>
    %c1_110 = arith.constant 1 : index
    %c0_111 = arith.constant 0 : index
    %c0_112 = arith.constant 0 : index
    %109 = vector.load %arg8[%c1_110, %c0_111, %c0_112] : memref<5x128x16xf32, #tpu.memory_space<vmem>>, vector<1x128x16xf32>
    %110 = vector.shape_cast %109 : vector<1x128x16xf32> to vector<128x16xf32>
    %cst_113 = arith.constant dense<0.000000e+00> : vector<16x16xf32>
    %111 = tpu.matmul %108, %110, %cst_113 {dimension_numbers = #tpu.dot_dimension_numbers<[1], [0], [0], [1], [0, 0, 1, 1], [], []>} : vector<16x128xf32>, vector<128x16xf32>, vector<16x16xf32> -> vector<16x16xf32>
    %112 = arith.addf %107, %111 : vector<16x16xf32>
    %c2_114 = arith.constant 2 : index
    %c0_115 = arith.constant 0 : index
    %113 = vector.load %arg13[%c2_114, %c0_115] : memref<20x128xf32, #tpu.memory_space<vmem>>, vector<16x128xf32>
    %c2_116 = arith.constant 2 : index
    %c0_117 = arith.constant 0 : index
    %c0_118 = arith.constant 0 : index
    %114 = vector.load %arg8[%c2_116, %c0_117, %c0_118] : memref<5x128x16xf32, #tpu.memory_space<vmem>>, vector<1x128x16xf32>
    %115 = vector.shape_cast %114 : vector<1x128x16xf32> to vector<128x16xf32>
    %cst_119 = arith.constant dense<0.000000e+00> : vector<16x16xf32>
    %116 = tpu.matmul %113, %115, %cst_119 {dimension_numbers = #tpu.dot_dimension_numbers<[1], [0], [0], [1], [0, 0, 1, 1], [], []>} : vector<16x128xf32>, vector<128x16xf32>, vector<16x16xf32> -> vector<16x16xf32>
    %117 = arith.addf %112, %116 : vector<16x16xf32>
    %c3_120 = arith.constant 3 : index
    %c0_121 = arith.constant 0 : index
    %118 = vector.load %arg13[%c3_120, %c0_121] : memref<20x128xf32, #tpu.memory_space<vmem>>, vector<16x128xf32>
    %c3_122 = arith.constant 3 : index
    %c0_123 = arith.constant 0 : index
    %c0_124 = arith.constant 0 : index
    %119 = vector.load %arg8[%c3_122, %c0_123, %c0_124] : memref<5x128x16xf32, #tpu.memory_space<vmem>>, vector<1x128x16xf32>
    %120 = vector.shape_cast %119 : vector<1x128x16xf32> to vector<128x16xf32>
    %cst_125 = arith.constant dense<0.000000e+00> : vector<16x16xf32>
    %121 = tpu.matmul %118, %120, %cst_125 {dimension_numbers = #tpu.dot_dimension_numbers<[1], [0], [0], [1], [0, 0, 1, 1], [], []>} : vector<16x128xf32>, vector<128x16xf32>, vector<16x16xf32> -> vector<16x16xf32>
    %122 = arith.addf %117, %121 : vector<16x16xf32>
    %c4_126 = arith.constant 4 : index
    %c0_127 = arith.constant 0 : index
    %123 = vector.load %arg13[%c4_126, %c0_127] : memref<20x128xf32, #tpu.memory_space<vmem>>, vector<16x128xf32>
    %c4_128 = arith.constant 4 : index
    %c0_129 = arith.constant 0 : index
    %c0_130 = arith.constant 0 : index
    %124 = vector.load %arg8[%c4_128, %c0_129, %c0_130] : memref<5x128x16xf32, #tpu.memory_space<vmem>>, vector<1x128x16xf32>
    %125 = vector.shape_cast %124 : vector<1x128x16xf32> to vector<128x16xf32>
    %cst_131 = arith.constant dense<0.000000e+00> : vector<16x16xf32>
    %126 = tpu.matmul %123, %125, %cst_131 {dimension_numbers = #tpu.dot_dimension_numbers<[1], [0], [0], [1], [0, 0, 1, 1], [], []>} : vector<16x128xf32>, vector<128x16xf32>, vector<16x16xf32> -> vector<16x16xf32>
    %127 = arith.addf %122, %126 : vector<16x16xf32>
    %c0_132 = arith.constant 0 : index
    %c0_133 = arith.constant 0 : index
    %128 = vector.load %arg9[%c0_132, %c0_133] : memref<1x16xf32, #tpu.memory_space<vmem>>, vector<1x16xf32>
    %129 = vector.broadcast %128 : vector<1x16xf32> to vector<16x16xf32>
    %130 = arith.addf %127, %129 : vector<16x16xf32>
    %cst_134 = arith.constant 0.000000e+00 : f32
    %131 = vector.broadcast %cst_134 : f32 to vector<16x16xf32>
    %132 = arith.maximumf %130, %131 : vector<16x16xf32>
    %cst_135 = arith.constant 0.000000e+00 : f32
    %133 = vector.broadcast %cst_135 : f32 to vector<16x16xf32>
    %134 = arith.subf %133, %132 : vector<16x16xf32>
    %135 = math.exp %134 : vector<16x16xf32>
    %cst_136 = arith.constant 1.000000e+00 : f32
    %136 = vector.broadcast %cst_136 : f32 to vector<16x16xf32>
    %137 = arith.addf %136, %135 : vector<16x16xf32>
    %138 = tpu.reciprocal %137 : vector<16x16xf32> -> vector<16x16xf32>
    %c0_137 = arith.constant 0 : index
    %c0_138 = arith.constant 0 : index
    %139 = vector.load %arg10[%c0_137, %c0_138] : memref<32x16xf32, #tpu.memory_space<vmem>>, vector<16x16xf32>
    tpu.vector_store %arg10[%c0_137, %c0_138], %138 {strides = array<i32>} : memref<32x16xf32, #tpu.memory_space<vmem>>, vector<16x16xf32>,
    %c16_139 = arith.constant 16 : index
    %c0_140 = arith.constant 0 : index
    %140 = vector.load %arg1[%c16_139, %c0_140] : memref<32x16xf32, #tpu.memory_space<vmem>>, vector<16x16xf32>
    %cst_141 = arith.constant 0.000000e+00 : f32
    %141 = vector.broadcast %cst_141 : f32 to vector<12x128xf32>
    %142 = vector.extract_strided_slice %140 {offsets = [0, 0], sizes = [12, 16], strides = [1, 1]} : vector<16x16xf32> to vector<12x16xf32>
    %c0_142 = arith.constant 0 : index
    %c0_143 = arith.constant 0 : index
    %c0_144 = arith.constant 0 : index
    %143 = vector.load %arg2[%c0_142, %c0_143, %c0_144] : memref<5x16x128xf32, #tpu.memory_space<vmem>>, vector<1x16x128xf32>
    %144 = vector.shape_cast %143 : vector<1x16x128xf32> to vector<16x128xf32>
    %cst_145 = arith.constant dense<0.000000e+00> : vector<12x128xf32>
    %145 = tpu.matmul %142, %144, %cst_145 {dimension_numbers = #tpu.dot_dimension_numbers<[1], [0], [0], [1], [0, 0, 1, 1], [], []>} : vector<12x16xf32>, vector<16x128xf32>, vector<12x128xf32> -> vector<12x128xf32>
    %146 = arith.addf %141, %145 : vector<12x128xf32>
    %147 = vector.extract_strided_slice %140 {offsets = [1, 0], sizes = [12, 16], strides = [1, 1]} : vector<16x16xf32> to vector<12x16xf32>
    %c1_146 = arith.constant 1 : index
    %c0_147 = arith.constant 0 : index
    %c0_148 = arith.constant 0 : index
    %148 = vector.load %arg2[%c1_146, %c0_147, %c0_148] : memref<5x16x128xf32, #tpu.memory_space<vmem>>, vector<1x16x128xf32>
    %149 = vector.shape_cast %148 : vector<1x16x128xf32> to vector<16x128xf32>
    %cst_149 = arith.constant dense<0.000000e+00> : vector<12x128xf32>
    %150 = tpu.matmul %147, %149, %cst_149 {dimension_numbers = #tpu.dot_dimension_numbers<[1], [0], [0], [1], [0, 0, 1, 1], [], []>} : vector<12x16xf32>, vector<16x128xf32>, vector<12x128xf32> -> vector<12x128xf32>
    %151 = arith.addf %146, %150 : vector<12x128xf32>
    %152 = vector.extract_strided_slice %140 {offsets = [2, 0], sizes = [12, 16], strides = [1, 1]} : vector<16x16xf32> to vector<12x16xf32>
    %c2_150 = arith.constant 2 : index
    %c0_151 = arith.constant 0 : index
    %c0_152 = arith.constant 0 : index
    %153 = vector.load %arg2[%c2_150, %c0_151, %c0_152] : memref<5x16x128xf32, #tpu.memory_space<vmem>>, vector<1x16x128xf32>
    %154 = vector.shape_cast %153 : vector<1x16x128xf32> to vector<16x128xf32>
    %cst_153 = arith.constant dense<0.000000e+00> : vector<12x128xf32>
    %155 = tpu.matmul %152, %154, %cst_153 {dimension_numbers = #tpu.dot_dimension_numbers<[1], [0], [0], [1], [0, 0, 1, 1], [], []>} : vector<12x16xf32>, vector<16x128xf32>, vector<12x128xf32> -> vector<12x128xf32>
    %156 = arith.addf %151, %155 : vector<12x128xf32>
    %157 = vector.extract_strided_slice %140 {offsets = [3, 0], sizes = [12, 16], strides = [1, 1]} : vector<16x16xf32> to vector<12x16xf32>
    %c3_154 = arith.constant 3 : index
    %c0_155 = arith.constant 0 : index
    %c0_156 = arith.constant 0 : index
    %158 = vector.load %arg2[%c3_154, %c0_155, %c0_156] : memref<5x16x128xf32, #tpu.memory_space<vmem>>, vector<1x16x128xf32>
    %159 = vector.shape_cast %158 : vector<1x16x128xf32> to vector<16x128xf32>
    %cst_157 = arith.constant dense<0.000000e+00> : vector<12x128xf32>
    %160 = tpu.matmul %157, %159, %cst_157 {dimension_numbers = #tpu.dot_dimension_numbers<[1], [0], [0], [1], [0, 0, 1, 1], [], []>} : vector<12x16xf32>, vector<16x128xf32>, vector<12x128xf32> -> vector<12x128xf32>
    %161 = arith.addf %156, %160 : vector<12x128xf32>
    %162 = vector.extract_strided_slice %140 {offsets = [4, 0], sizes = [12, 16], strides = [1, 1]} : vector<16x16xf32> to vector<12x16xf32>
    %c4_158 = arith.constant 4 : index
    %c0_159 = arith.constant 0 : index
    %c0_160 = arith.constant 0 : index
    %163 = vector.load %arg2[%c4_158, %c0_159, %c0_160] : memref<5x16x128xf32, #tpu.memory_space<vmem>>, vector<1x16x128xf32>
    %164 = vector.shape_cast %163 : vector<1x16x128xf32> to vector<16x128xf32>
    %cst_161 = arith.constant dense<0.000000e+00> : vector<12x128xf32>
    %165 = tpu.matmul %162, %164, %cst_161 {dimension_numbers = #tpu.dot_dimension_numbers<[1], [0], [0], [1], [0, 0, 1, 1], [], []>} : vector<12x16xf32>, vector<16x128xf32>, vector<12x128xf32> -> vector<12x128xf32>
    %166 = arith.addf %161, %165 : vector<12x128xf32>
    %c0_162 = arith.constant 0 : index
    %c0_163 = arith.constant 0 : index
    %167 = vector.load %arg3[%c0_162, %c0_163] : memref<1x128xf32, #tpu.memory_space<vmem>>, vector<1x128xf32>
    %168 = vector.broadcast %167 : vector<1x128xf32> to vector<12x128xf32>
    %169 = arith.addf %166, %168 : vector<12x128xf32>
    %cst_164 = arith.constant 0.000000e+00 : f32
    %170 = vector.broadcast %cst_164 : f32 to vector<12x128xf32>
    %171 = arith.maximumf %169, %170 : vector<12x128xf32>
    %c0_165 = arith.constant 0 : index
    %c0_166 = arith.constant 0 : index
    %172 = vector.load %arg11[%c0_165, %c0_166] : memref<12x128xf32, #tpu.memory_space<vmem>>, vector<12x128xf32>
    tpu.vector_store %arg11[%c0_165, %c0_166], %171 {strides = array<i32>} : memref<12x128xf32, #tpu.memory_space<vmem>>, vector<12x128xf32>,
    %cst_167 = arith.constant 0.000000e+00 : f32
    %173 = vector.broadcast %cst_167 : f32 to vector<8x128xf32>
    %c0_168 = arith.constant 0 : index
    %c0_169 = arith.constant 0 : index
    %174 = vector.load %arg11[%c0_168, %c0_169] : memref<12x128xf32, #tpu.memory_space<vmem>>, vector<8x128xf32>
    %c0_170 = arith.constant 0 : index
    %c0_171 = arith.constant 0 : index
    %c0_172 = arith.constant 0 : index
    %175 = vector.load %arg4[%c0_170, %c0_171, %c0_172] : memref<5x128x128xf32, #tpu.memory_space<vmem>>, vector<1x128x128xf32>
    %176 = vector.shape_cast %175 : vector<1x128x128xf32> to vector<128x128xf32>
    %cst_173 = arith.constant dense<0.000000e+00> : vector<8x128xf32>
    %177 = tpu.matmul %174, %176, %cst_173 {dimension_numbers = #tpu.dot_dimension_numbers<[1], [0], [0], [1], [0, 0, 1, 1], [], []>} : vector<8x128xf32>, vector<128x128xf32>, vector<8x128xf32> -> vector<8x128xf32>
    %178 = arith.addf %173, %177 : vector<8x128xf32>
    %c1_174 = arith.constant 1 : index
    %c0_175 = arith.constant 0 : index
    %179 = vector.load %arg11[%c1_174, %c0_175] : memref<12x128xf32, #tpu.memory_space<vmem>>, vector<8x128xf32>
    %c1_176 = arith.constant 1 : index
    %c0_177 = arith.constant 0 : index
    %c0_178 = arith.constant 0 : index
    %180 = vector.load %arg4[%c1_176, %c0_177, %c0_178] : memref<5x128x128xf32, #tpu.memory_space<vmem>>, vector<1x128x128xf32>
    %181 = vector.shape_cast %180 : vector<1x128x128xf32> to vector<128x128xf32>
    %cst_179 = arith.constant dense<0.000000e+00> : vector<8x128xf32>
    %182 = tpu.matmul %179, %181, %cst_179 {dimension_numbers = #tpu.dot_dimension_numbers<[1], [0], [0], [1], [0, 0, 1, 1], [], []>} : vector<8x128xf32>, vector<128x128xf32>, vector<8x128xf32> -> vector<8x128xf32>
    %183 = arith.addf %178, %182 : vector<8x128xf32>
    %c2_180 = arith.constant 2 : index
    %c0_181 = arith.constant 0 : index
    %184 = vector.load %arg11[%c2_180, %c0_181] : memref<12x128xf32, #tpu.memory_space<vmem>>, vector<8x128xf32>
    %c2_182 = arith.constant 2 : index
    %c0_183 = arith.constant 0 : index
    %c0_184 = arith.constant 0 : index
    %185 = vector.load %arg4[%c2_182, %c0_183, %c0_184] : memref<5x128x128xf32, #tpu.memory_space<vmem>>, vector<1x128x128xf32>
    %186 = vector.shape_cast %185 : vector<1x128x128xf32> to vector<128x128xf32>
    %cst_185 = arith.constant dense<0.000000e+00> : vector<8x128xf32>
    %187 = tpu.matmul %184, %186, %cst_185 {dimension_numbers = #tpu.dot_dimension_numbers<[1], [0], [0], [1], [0, 0, 1, 1], [], []>} : vector<8x128xf32>, vector<128x128xf32>, vector<8x128xf32> -> vector<8x128xf32>
    %188 = arith.addf %183, %187 : vector<8x128xf32>
    %c3_186 = arith.constant 3 : index
    %c0_187 = arith.constant 0 : index
    %189 = vector.load %arg11[%c3_186, %c0_187] : memref<12x128xf32, #tpu.memory_space<vmem>>, vector<8x128xf32>
    %c3_188 = arith.constant 3 : index
    %c0_189 = arith.constant 0 : index
    %c0_190 = arith.constant 0 : index
    %190 = vector.load %arg4[%c3_188, %c0_189, %c0_190] : memref<5x128x128xf32, #tpu.memory_space<vmem>>, vector<1x128x128xf32>
    %191 = vector.shape_cast %190 : vector<1x128x128xf32> to vector<128x128xf32>
    %cst_191 = arith.constant dense<0.000000e+00> : vector<8x128xf32>
    %192 = tpu.matmul %189, %191, %cst_191 {dimension_numbers = #tpu.dot_dimension_numbers<[1], [0], [0], [1], [0, 0, 1, 1], [], []>} : vector<8x128xf32>, vector<128x128xf32>, vector<8x128xf32> -> vector<8x128xf32>
    %193 = arith.addf %188, %192 : vector<8x128xf32>
    %c4_192 = arith.constant 4 : index
    %c0_193 = arith.constant 0 : index
    %194 = vector.load %arg11[%c4_192, %c0_193] : memref<12x128xf32, #tpu.memory_space<vmem>>, vector<8x128xf32>
    %c4_194 = arith.constant 4 : index
    %c0_195 = arith.constant 0 : index
    %c0_196 = arith.constant 0 : index
    %195 = vector.load %arg4[%c4_194, %c0_195, %c0_196] : memref<5x128x128xf32, #tpu.memory_space<vmem>>, vector<1x128x128xf32>
    %196 = vector.shape_cast %195 : vector<1x128x128xf32> to vector<128x128xf32>
    %cst_197 = arith.constant dense<0.000000e+00> : vector<8x128xf32>
    %197 = tpu.matmul %194, %196, %cst_197 {dimension_numbers = #tpu.dot_dimension_numbers<[1], [0], [0], [1], [0, 0, 1, 1], [], []>} : vector<8x128xf32>, vector<128x128xf32>, vector<8x128xf32> -> vector<8x128xf32>
    %198 = arith.addf %193, %197 : vector<8x128xf32>
    %c0_198 = arith.constant 0 : index
    %c0_199 = arith.constant 0 : index
    %199 = vector.load %arg5[%c0_198, %c0_199] : memref<1x128xf32, #tpu.memory_space<vmem>>, vector<1x128xf32>
    %200 = vector.broadcast %199 : vector<1x128xf32> to vector<8x128xf32>
    %201 = arith.addf %198, %200 : vector<8x128xf32>
    %cst_200 = arith.constant 0.000000e+00 : f32
    %202 = vector.broadcast %cst_200 : f32 to vector<8x128xf32>
    %203 = arith.maximumf %201, %202 : vector<8x128xf32>
    %c4_201 = arith.constant 4 : index
    %c0_202 = arith.constant 0 : index
    %204 = vector.load %arg12[%c4_201, %c0_202] : memref<16x128xf32, #tpu.memory_space<vmem>>, vector<8x128xf32>
    tpu.vector_store %arg12[%c4_201, %c0_202], %203 {strides = array<i32>} : memref<16x128xf32, #tpu.memory_space<vmem>>, vector<8x128xf32>,
    %cst_203 = arith.constant 0.000000e+00 : f32
    %205 = vector.broadcast %cst_203 : f32 to vector<12x128xf32>
    %c0_204 = arith.constant 0 : index
    %c0_205 = arith.constant 0 : index
    %206 = vector.load %arg12[%c0_204, %c0_205] : memref<16x128xf32, #tpu.memory_space<vmem>>, vector<12x128xf32>
    %c0_206 = arith.constant 0 : index
    %c0_207 = arith.constant 0 : index
    %c0_208 = arith.constant 0 : index
    %207 = vector.load %arg6[%c0_206, %c0_207, %c0_208] : memref<5x128x128xf32, #tpu.memory_space<vmem>>, vector<1x128x128xf32>
    %208 = vector.shape_cast %207 : vector<1x128x128xf32> to vector<128x128xf32>
    %cst_209 = arith.constant dense<0.000000e+00> : vector<12x128xf32>
    %209 = tpu.matmul %206, %208, %cst_209 {dimension_numbers = #tpu.dot_dimension_numbers<[1], [0], [0], [1], [0, 0, 1, 1], [], []>} : vector<12x128xf32>, vector<128x128xf32>, vector<12x128xf32> -> vector<12x128xf32>
    %210 = arith.addf %205, %209 : vector<12x128xf32>
    %c1_210 = arith.constant 1 : index
    %c0_211 = arith.constant 0 : index
    %211 = vector.load %arg12[%c1_210, %c0_211] : memref<16x128xf32, #tpu.memory_space<vmem>>, vector<12x128xf32>
    %c1_212 = arith.constant 1 : index
    %c0_213 = arith.constant 0 : index
    %c0_214 = arith.constant 0 : index
    %212 = vector.load %arg6[%c1_212, %c0_213, %c0_214] : memref<5x128x128xf32, #tpu.memory_space<vmem>>, vector<1x128x128xf32>
    %213 = vector.shape_cast %212 : vector<1x128x128xf32> to vector<128x128xf32>
    %cst_215 = arith.constant dense<0.000000e+00> : vector<12x128xf32>
    %214 = tpu.matmul %211, %213, %cst_215 {dimension_numbers = #tpu.dot_dimension_numbers<[1], [0], [0], [1], [0, 0, 1, 1], [], []>} : vector<12x128xf32>, vector<128x128xf32>, vector<12x128xf32> -> vector<12x128xf32>
    %215 = arith.addf %210, %214 : vector<12x128xf32>
    %c2_216 = arith.constant 2 : index
    %c0_217 = arith.constant 0 : index
    %216 = vector.load %arg12[%c2_216, %c0_217] : memref<16x128xf32, #tpu.memory_space<vmem>>, vector<12x128xf32>
    %c2_218 = arith.constant 2 : index
    %c0_219 = arith.constant 0 : index
    %c0_220 = arith.constant 0 : index
    %217 = vector.load %arg6[%c2_218, %c0_219, %c0_220] : memref<5x128x128xf32, #tpu.memory_space<vmem>>, vector<1x128x128xf32>
    %218 = vector.shape_cast %217 : vector<1x128x128xf32> to vector<128x128xf32>
    %cst_221 = arith.constant dense<0.000000e+00> : vector<12x128xf32>
    %219 = tpu.matmul %216, %218, %cst_221 {dimension_numbers = #tpu.dot_dimension_numbers<[1], [0], [0], [1], [0, 0, 1, 1], [], []>} : vector<12x128xf32>, vector<128x128xf32>, vector<12x128xf32> -> vector<12x128xf32>
    %220 = arith.addf %215, %219 : vector<12x128xf32>
    %c3_222 = arith.constant 3 : index
    %c0_223 = arith.constant 0 : index
    %221 = vector.load %arg12[%c3_222, %c0_223] : memref<16x128xf32, #tpu.memory_space<vmem>>, vector<12x128xf32>
    %c3_224 = arith.constant 3 : index
    %c0_225 = arith.constant 0 : index
    %c0_226 = arith.constant 0 : index
    %222 = vector.load %arg6[%c3_224, %c0_225, %c0_226] : memref<5x128x128xf32, #tpu.memory_space<vmem>>, vector<1x128x128xf32>
    %223 = vector.shape_cast %222 : vector<1x128x128xf32> to vector<128x128xf32>
    %cst_227 = arith.constant dense<0.000000e+00> : vector<12x128xf32>
    %224 = tpu.matmul %221, %223, %cst_227 {dimension_numbers = #tpu.dot_dimension_numbers<[1], [0], [0], [1], [0, 0, 1, 1], [], []>} : vector<12x128xf32>, vector<128x128xf32>, vector<12x128xf32> -> vector<12x128xf32>
    %225 = arith.addf %220, %224 : vector<12x128xf32>
    %c4_228 = arith.constant 4 : index
    %c0_229 = arith.constant 0 : index
    %226 = vector.load %arg12[%c4_228, %c0_229] : memref<16x128xf32, #tpu.memory_space<vmem>>, vector<12x128xf32>
    %c4_230 = arith.constant 4 : index
    %c0_231 = arith.constant 0 : index
    %c0_232 = arith.constant 0 : index
    %227 = vector.load %arg6[%c4_230, %c0_231, %c0_232] : memref<5x128x128xf32, #tpu.memory_space<vmem>>, vector<1x128x128xf32>
    %228 = vector.shape_cast %227 : vector<1x128x128xf32> to vector<128x128xf32>
    %cst_233 = arith.constant dense<0.000000e+00> : vector<12x128xf32>
    %229 = tpu.matmul %226, %228, %cst_233 {dimension_numbers = #tpu.dot_dimension_numbers<[1], [0], [0], [1], [0, 0, 1, 1], [], []>} : vector<12x128xf32>, vector<128x128xf32>, vector<12x128xf32> -> vector<12x128xf32>
    %230 = arith.addf %225, %229 : vector<12x128xf32>
    %c0_234 = arith.constant 0 : index
    %c0_235 = arith.constant 0 : index
    %231 = vector.load %arg7[%c0_234, %c0_235] : memref<1x128xf32, #tpu.memory_space<vmem>>, vector<1x128xf32>
    %232 = vector.broadcast %231 : vector<1x128xf32> to vector<12x128xf32>
    %233 = arith.addf %230, %232 : vector<12x128xf32>
    %cst_236 = arith.constant 0.000000e+00 : f32
    %234 = vector.broadcast %cst_236 : f32 to vector<12x128xf32>
    %235 = arith.maximumf %233, %234 : vector<12x128xf32>
    %c4_237 = arith.constant 4 : index
    %c0_238 = arith.constant 0 : index
    %236 = vector.load %arg13[%c4_237, %c0_238] : memref<20x128xf32, #tpu.memory_space<vmem>>, vector<12x128xf32>
    tpu.vector_store %arg13[%c4_237, %c0_238], %235 {strides = array<i32>} : memref<20x128xf32, #tpu.memory_space<vmem>>, vector<12x128xf32>,
    %cst_239 = arith.constant 0.000000e+00 : f32
    %237 = vector.broadcast %cst_239 : f32 to vector<16x16xf32>
    %c0_240 = arith.constant 0 : index
    %c0_241 = arith.constant 0 : index
    %238 = vector.load %arg13[%c0_240, %c0_241] : memref<20x128xf32, #tpu.memory_space<vmem>>, vector<16x128xf32>
    %c0_242 = arith.constant 0 : index
    %c0_243 = arith.constant 0 : index
    %c0_244 = arith.constant 0 : index
    %239 = vector.load %arg8[%c0_242, %c0_243, %c0_244] : memref<5x128x16xf32, #tpu.memory_space<vmem>>, vector<1x128x16xf32>
    %240 = vector.shape_cast %239 : vector<1x128x16xf32> to vector<128x16xf32>
    %cst_245 = arith.constant dense<0.000000e+00> : vector<16x16xf32>
    %241 = tpu.matmul %238, %240, %cst_245 {dimension_numbers = #tpu.dot_dimension_numbers<[1], [0], [0], [1], [0, 0, 1, 1], [], []>} : vector<16x128xf32>, vector<128x16xf32>, vector<16x16xf32> -> vector<16x16xf32>
    %242 = arith.addf %237, %241 : vector<16x16xf32>
    %c1_246 = arith.constant 1 : index
    %c0_247 = arith.constant 0 : index
    %243 = vector.load %arg13[%c1_246, %c0_247] : memref<20x128xf32, #tpu.memory_space<vmem>>, vector<16x128xf32>
    %c1_248 = arith.constant 1 : index
    %c0_249 = arith.constant 0 : index
    %c0_250 = arith.constant 0 : index
    %244 = vector.load %arg8[%c1_248, %c0_249, %c0_250] : memref<5x128x16xf32, #tpu.memory_space<vmem>>, vector<1x128x16xf32>
    %245 = vector.shape_cast %244 : vector<1x128x16xf32> to vector<128x16xf32>
    %cst_251 = arith.constant dense<0.000000e+00> : vector<16x16xf32>
    %246 = tpu.matmul %243, %245, %cst_251 {dimension_numbers = #tpu.dot_dimension_numbers<[1], [0], [0], [1], [0, 0, 1, 1], [], []>} : vector<16x128xf32>, vector<128x16xf32>, vector<16x16xf32> -> vector<16x16xf32>
    %247 = arith.addf %242, %246 : vector<16x16xf32>
    %c2_252 = arith.constant 2 : index
    %c0_253 = arith.constant 0 : index
    %248 = vector.load %arg13[%c2_252, %c0_253] : memref<20x128xf32, #tpu.memory_space<vmem>>, vector<16x128xf32>
    %c2_254 = arith.constant 2 : index
    %c0_255 = arith.constant 0 : index
    %c0_256 = arith.constant 0 : index
    %249 = vector.load %arg8[%c2_254, %c0_255, %c0_256] : memref<5x128x16xf32, #tpu.memory_space<vmem>>, vector<1x128x16xf32>
    %250 = vector.shape_cast %249 : vector<1x128x16xf32> to vector<128x16xf32>
    %cst_257 = arith.constant dense<0.000000e+00> : vector<16x16xf32>
    %251 = tpu.matmul %248, %250, %cst_257 {dimension_numbers = #tpu.dot_dimension_numbers<[1], [0], [0], [1], [0, 0, 1, 1], [], []>} : vector<16x128xf32>, vector<128x16xf32>, vector<16x16xf32> -> vector<16x16xf32>
    %252 = arith.addf %247, %251 : vector<16x16xf32>
    %c3_258 = arith.constant 3 : index
    %c0_259 = arith.constant 0 : index
    %253 = vector.load %arg13[%c3_258, %c0_259] : memref<20x128xf32, #tpu.memory_space<vmem>>, vector<16x128xf32>
    %c3_260 = arith.constant 3 : index
    %c0_261 = arith.constant 0 : index
    %c0_262 = arith.constant 0 : index
    %254 = vector.load %arg8[%c3_260, %c0_261, %c0_262] : memref<5x128x16xf32, #tpu.memory_space<vmem>>, vector<1x128x16xf32>
    %255 = vector.shape_cast %254 : vector<1x128x16xf32> to vector<128x16xf32>
    %cst_263 = arith.constant dense<0.000000e+00> : vector<16x16xf32>
    %256 = tpu.matmul %253, %255, %cst_263 {dimension_numbers = #tpu.dot_dimension_numbers<[1], [0], [0], [1], [0, 0, 1, 1], [], []>} : vector<16x128xf32>, vector<128x16xf32>, vector<16x16xf32> -> vector<16x16xf32>
    %257 = arith.addf %252, %256 : vector<16x16xf32>
    %c4_264 = arith.constant 4 : index
    %c0_265 = arith.constant 0 : index
    %258 = vector.load %arg13[%c4_264, %c0_265] : memref<20x128xf32, #tpu.memory_space<vmem>>, vector<16x128xf32>
    %c4_266 = arith.constant 4 : index
    %c0_267 = arith.constant 0 : index
    %c0_268 = arith.constant 0 : index
    %259 = vector.load %arg8[%c4_266, %c0_267, %c0_268] : memref<5x128x16xf32, #tpu.memory_space<vmem>>, vector<1x128x16xf32>
    %260 = vector.shape_cast %259 : vector<1x128x16xf32> to vector<128x16xf32>
    %cst_269 = arith.constant dense<0.000000e+00> : vector<16x16xf32>
    %261 = tpu.matmul %258, %260, %cst_269 {dimension_numbers = #tpu.dot_dimension_numbers<[1], [0], [0], [1], [0, 0, 1, 1], [], []>} : vector<16x128xf32>, vector<128x16xf32>, vector<16x16xf32> -> vector<16x16xf32>
    %262 = arith.addf %257, %261 : vector<16x16xf32>
    %c0_270 = arith.constant 0 : index
    %c0_271 = arith.constant 0 : index
    %263 = vector.load %arg9[%c0_270, %c0_271] : memref<1x16xf32, #tpu.memory_space<vmem>>, vector<1x16xf32>
    %264 = vector.broadcast %263 : vector<1x16xf32> to vector<16x16xf32>
    %265 = arith.addf %262, %264 : vector<16x16xf32>
    %cst_272 = arith.constant 0.000000e+00 : f32
    %266 = vector.broadcast %cst_272 : f32 to vector<16x16xf32>
    %267 = arith.maximumf %265, %266 : vector<16x16xf32>
    %cst_273 = arith.constant 0.000000e+00 : f32
    %268 = vector.broadcast %cst_273 : f32 to vector<16x16xf32>
    %269 = arith.subf %268, %267 : vector<16x16xf32>
    %270 = math.exp %269 : vector<16x16xf32>
    %cst_274 = arith.constant 1.000000e+00 : f32
    %271 = vector.broadcast %cst_274 : f32 to vector<16x16xf32>
    %272 = arith.addf %271, %270 : vector<16x16xf32>
    %273 = tpu.reciprocal %272 : vector<16x16xf32> -> vector<16x16xf32>
    %c16_275 = arith.constant 16 : index
    %c0_276 = arith.constant 0 : index
    %274 = vector.load %arg10[%c16_275, %c0_276] : memref<32x16xf32, #tpu.memory_space<vmem>>, vector<16x16xf32>
    tpu.vector_store %arg10[%c16_275, %c0_276], %273 {strides = array<i32>} : memref<32x16xf32, #tpu.memory_space<vmem>>, vector<16x16xf32>,
    return
  }
  func.func @transform_0(%arg0: i32) -> (i32, i32) {
    %c0_i32 = arith.constant 0 : i32
    %c0_i32_0 = arith.constant 0 : i32
    return %arg0, %c0_i32 : i32, i32
  }
  func.func @transform_1(%arg0: i32) -> (i32, i32, i32) {
    %c0_i32 = arith.constant 0 : i32
    %c0_i32_0 = arith.constant 0 : i32
    %c0_i32_1 = arith.constant 0 : i32
    %c0_i32_2 = arith.constant 0 : i32
    return %c0_i32, %c0_i32_0, %c0_i32_1 : i32, i32, i32
  }
  func.func @transform_2(%arg0: i32) -> (i32, i32) {
    %c0_i32 = arith.constant 0 : i32
    %c0_i32_0 = arith.constant 0 : i32
    %c0_i32_1 = arith.constant 0 : i32
    return %c0_i32, %c0_i32_0 : i32, i32
  }
  func.func @transform_3(%arg0: i32) -> (i32, i32, i32) {
    %c0_i32 = arith.constant 0 : i32
    %c0_i32_0 = arith.constant 0 : i32
    %c0_i32_1 = arith.constant 0 : i32
    %c0_i32_2 = arith.constant 0 : i32
    return %c0_i32, %c0_i32_0, %c0_i32_1 : i32, i32, i32
  }
  func.func @transform_4(%arg0: i32) -> (i32, i32) {
    %c0_i32 = arith.constant 0 : i32
    %c0_i32_0 = arith.constant 0 : i32
    %c0_i32_1 = arith.constant 0 : i32
    return %c0_i32, %c0_i32_0 : i32, i32
  }
  func.func @transform_5(%arg0: i32) -> (i32, i32, i32) {
    %c0_i32 = arith.constant 0 : i32
    %c0_i32_0 = arith.constant 0 : i32
    %c0_i32_1 = arith.constant 0 : i32
    %c0_i32_2 = arith.constant 0 : i32
    return %c0_i32, %c0_i32_0, %c0_i32_1 : i32, i32, i32
  }
  func.func @transform_6(%arg0: i32) -> (i32, i32) {
    %c0_i32 = arith.constant 0 : i32
    %c0_i32_0 = arith.constant 0 : i32
    %c0_i32_1 = arith.constant 0 : i32
    return %c0_i32, %c0_i32_0 : i32, i32
  }
  func.func @transform_7(%arg0: i32) -> (i32, i32, i32) {
    %c0_i32 = arith.constant 0 : i32
    %c0_i32_0 = arith.constant 0 : i32
    %c0_i32_1 = arith.constant 0 : i32
    %c0_i32_2 = arith.constant 0 : i32
    return %c0_i32, %c0_i32_0, %c0_i32_1 : i32, i32, i32
  }
  func.func @transform_8(%arg0: i32) -> (i32, i32) {
    %c0_i32 = arith.constant 0 : i32
    %c0_i32_0 = arith.constant 0 : i32
    %c0_i32_1 = arith.constant 0 : i32
    return %c0_i32, %c0_i32_0 : i32, i32
  }
  func.func @transform_9(%arg0: i32) -> (i32, i32) {
    %c0_i32 = arith.constant 0 : i32
    %c0_i32_0 = arith.constant 0 : i32
    return %arg0, %c0_i32 : i32, i32
  }
}

</mosaic_0001>

<bundles_post_ra>
// kernel: autoencoder_forward.1
= control target key start
LH: loop header
LB: loop body
LE: loop exit
PB: predicated region body
PF: predicated region fallthrough
CT: control target
= control target key end

     0   :  { %14 = vsyncpa [#allocation6], 0  ;;  %s8224_s0 = inlined_call_operand.hbm [shape: f32[32,16], index: 0, kind: input, shape index: {}]   ;;  %s8225_s1 = inlined_call_operand.vmem [shape: f32[5,16,128], index: 1, kind: input, shape index: {}]   ;;  %s8226_s2 = inlined_call_operand.vmem [shape: f32[1,128], index: 2, kind: input, shape index: {}]   ;;  %s8227_s3 = inlined_call_operand.vmem [shape: f32[5,128,128], index: 3, kind: input, shape index: {}]   ;;  %s8228_s4 = inlined_call_operand.vmem [shape: f32[1,128], index: 4, kind: input, shape index: {}]   ;;  %s8229_s5 = inlined_call_operand.hbm [shape: f32[5,128,128], index: 5, kind: input, shape index: {}]   ;;  %s8230_s6 = inlined_call_operand.vmem [shape: f32[1,128], index: 6, kind: input, shape index: {}]   ;;  %s8231_s7 = inlined_call_operand.vmem [shape: f32[5,128,16], index: 7, kind: input, shape index: {}]   ;;  %s8232_s8 = inlined_call_operand.vmem [shape: f32[1,16], index: 8, kind: input, shape index: {}]   ;;  %s8233_s9 = inlined_call_operand.hbm [shape: f32[32,16], index: 9, kind: output, shape index: {}]  }
   0x1   :  { %15 = vsyncpa [#allocation9], 0 }
   0x2   :  { %16 = vsyncpa [#allocation7], 0  ;;  %s6890_s30 = smov [#allocation5]   ;;  %s6818_s13 = scalar_lea.hbm %s8224_s0, 512 }
   0x3   :  { %s22_s10 = sshll.u32 %s6890_s30, 4  ;;  %p6819_p0 = scmp.ne.s32.totalorder %s8224_s0, %s6818_s13  ;;  %s23_s10 = int_to_ptr.vmem [resolvable:$true] %s22_s10 }
   0x4   :  { %p6822_p1 = scmp.lt.u32.totalorder %s6818_s13, %s8224_s0 }
   0x6   :  { %p6824_p2 = pnand %p6822_p1, %p6819_p0 }
   0x8   :  { %6827 = shalt.err (!%p6824_p2)
}
   0x9   :  { %s6828_s18 = scalar_lea.vmem %s23_s10, 512  ;;  %p6833_p4 = scmp.lt.s32.totalorder %s23_s10, %s23_s10 }
   0xa   :  { %p6829_p3 = scmp.ne.s32.totalorder %s23_s10, %s6828_s18  ;;  %p6834_p5 = scmp.lt.s32.totalorder %s6828_s18, %s6828_s18 }
   0xc   :  { %p6835_p6 = por %p6834_p5, %p6833_p4 }
   0xe   :  { %p6836_p7 = pnand %p6835_p6, %p6829_p3 }
  0x10   :  { %6839 = shalt.err (!%p6836_p7)
}
  0x11   :  { %s6891_s19 = smov 128   ;;  %s6892_s20 = smov 8  }
  0x12   :  { %28 = dma.hbm_to_vmem [thread:$0]  %s8224_s0, 512, %s23_s10, [#allocation6], %s6891_s19, %s6891_s19, %s6892_s20  }
  0x13   :  { %s6893_s23 = smov [#allocation8]   ;;  %s6840_s27 = scalar_lea.hbm %s8229_s5, 10240 }
  0x14   :  { %s42_s24 = sshll.u32 %s6893_s23, 4  ;;  %p6841_p8 = scmp.ne.s32.totalorder %s8229_s5, %s6840_s27  ;;  %s43_s24 = int_to_ptr.vmem [resolvable:$true] %s42_s24 }
  0x15   :  { %p6844_p9 = scmp.lt.u32.totalorder %s6840_s27, %s8229_s5 }
  0x17   :  { %p6846_p10 = pnand %p6844_p9, %p6841_p8 }
  0x19   :  { %6849 = shalt.err (!%p6846_p10)
}
  0x1a   :  { %s6850_s12 = scalar_lea.vmem %s43_s24, 10240  ;;  %p6855_p12 = scmp.lt.s32.totalorder %s43_s24, %s43_s24 }
  0x1b   :  { %p6851_p11 = scmp.ne.s32.totalorder %s43_s24, %s6850_s12  ;;  %p6856_p13 = scmp.lt.s32.totalorder %s6850_s12, %s6850_s12 }
  0x1d   :  { %p6857_p0 = por %p6856_p13, %p6855_p12 }
  0x1f   :  { %p6858_p1 = pnand %p6857_p0, %p6851_p11 }
  0x21   :  { %6861 = shalt.err (!%p6858_p1)
}
  0x22   :  { %48 = dma.hbm_to_vmem [thread:$0]  %s8229_s5, 10240, %s43_s24, [#allocation9], %s6891_s19, %s6891_s19, %s6892_s20  }
  0x23   :  { %6884 = dma.done.wait [#allocation6], 512  }
  0x24   :  { %6885 = vsyncadd [#allocation6], 4294966784 }
  0x25   :  { %6886 = dma.done.wait [#allocation9], 10240  }
  0x26   :  { %6887 = vsyncadd [#allocation9], 4294957056  ;;  %v6894_v0 = vmov 0.0|0.0   ;;  %v3836_v1 = vld [vmem:[%s8225_s1 + $0x10] sm:$0xff]  ;;  %v3837_v2 = vld [vmem:[%s8225_s1 + $0x18] sm:$0xff]  ;;  %vm74_vm0 = vcmask 1046528  }
  0x27   :  { %5846 = vmatprep.subr.bf16.mxu1 %v6894_v0  ;;  %v6985_v3 = vld [vmem:[#allocation5] sm:$0xff]  ;;  %v5826_v4 = vpack.c.bf16 %v3837_v2, %v3836_v1  ;;  %v6987_v5 = vld [vmem:[#allocation5 + $0x8] sm:$0xff]  ;;  %v68_v8 = vld [vmem:[%s8225_s1 + $0x8] sm:$0xff]  ;;  %vm78_vm1 = vcmask 130048   ;;  %vm240_vm2 = vcmask 1045504   ;;  %vm328_vm3 = vcmask 1044480  }
  0x28   :  { %v75_v6 = vrot.slane %v6985_v3, 1  ;;  %v67_v7 = vld [vmem:[%s8225_s1] sm:$0xff]  ;;  %v76_v9 = vrot.slane %v6987_v5, 1  ;;  %v3843_v12 = vld [vmem:[%s8225_s1 + $0x28] sm:$0xff]  ;;  %v3857_v18 = vld [vmem:[%s8227_s3 + $0x90] sm:$0xff]  ;;  %v241_v23 = vrot.slane %v6985_v3, 2 }
  0x29   :  { %v5830_v10 = vpack.c.bf16 %v68_v8, %v67_v7  ;;  %v3842_v11 = vld [vmem:[%s8225_s1 + $0x20] sm:$0xff]  ;;  %5827 = vmatprep.subr.bf16.mxu0 %v5826_v4  ;;  %v3856_v15 = vld [vmem:[%s8227_s3 + $0x88] sm:$0xff]  ;;  %v3858_v19 = vld [vmem:[%s8227_s3 + $0x98] sm:$0xff]  ;;  %v242_v24 = vrot.slane %v6987_v5, 2  ;;  %v329_v35 = vrot.slane %v6985_v3, 3  ;;  %v330_v36 = vrot.slane %v6987_v5, 3 }
  0x2a   :  { %5829 = vmatpush3.bf16.msra.mxu0 %v5826_v4  ;;  %v77_v13 = vsel %vm74_vm0, %v75_v6, %v76_v9  ;;  %v3855_v14 = vld [vmem:[%s8227_s3 + $0x80] sm:$0xff]  ;;  %v5834_v16 = vpack.c.bf16 %v3843_v12, %v3842_v11  ;;  %v5850_v20 = vpack.c.bf16 %v3858_v19, %v3857_v18  ;;  %v3860_v22 = vld [vmem:[%s8227_s3 + $0xa8] sm:$0xff]  ;;  %v3846_v25 = vld [vmem:[%s8225_s1 + $0x30] sm:$0xff]  ;;  %v417_v42 = vrot.slane %v6985_v3, 4 }
  0x2b   :  { %4710 = vmatprep.mubr.msk.f32.mxu0 %vm78_vm1, %v77_v13  ;;  %5831 = vmatprep.subr.bf16.mxu0 %v5830_v10  ;;  %v5847_v17 = vpack.c.bf16 %v3856_v15, %v3855_v14  ;;  %v3859_v21 = vld [vmem:[%s8227_s3 + $0xa0] sm:$0xff]  ;;  %v3847_v26 = vld [vmem:[%s8225_s1 + $0x38] sm:$0xff]  ;;  %v3861_v28 = vld [vmem:[%s8227_s3 + $0xb0] sm:$0xff]  ;;  %v243_v30 = vsel %vm240_vm2, %v241_v23, %v242_v24  ;;  %v331_v40 = vsel %vm328_vm3, %v329_v35, %v330_v36  ;;  %v418_v43 = vrot.slane %v6987_v5, 4 }
  0x2c   :  { %v5853_v27 = vpack.c.bf16 %v3860_v22, %v3859_v21  ;;  %v3862_v29 = vld [vmem:[%s8227_s3 + $0xb8] sm:$0xff]  ;;  %v5838_v31 = vpack.c.bf16 %v3847_v26, %v3846_v25  ;;  %v3863_v33 = vld [vmem:[%s8227_s3 + $0xc0] sm:$0xff]  ;;  %v3864_v34 = vld [vmem:[%s8227_s3 + $0xc8] sm:$0xff]  ;;  %vm416_vm4 = vcmask 1043456   ;;  %vm6895_vm5 = vmmov 0  }
  0x2d   :  { %4711 = vmatmul.mubr.msk.f32.vlgmr.msra.gmra.mrb[0].mxu0 %vm78_vm1, %v76_v9  ;;  %5848 = vmatpush3.bf16.msra.mxu1 %v5847_v17  ;;  %v5856_v32 = vpack.c.bf16 %v3862_v29, %v3861_v28  ;;  %v3850_v37 = vld [vmem:[%s8225_s1 + $0x40] sm:$0xff]  ;;  %v3851_v38 = vld [vmem:[%s8225_s1 + $0x48] sm:$0xff]  ;;  %v5859_v39 = vpack.c.bf16 %v3864_v34, %v3863_v33  ;;  %v419_v44 = vsel %vm416_vm4, %v417_v42, %v418_v43  ;;  %v517_v48 = vld [vmem:[%s8227_s3 + $0x10] sm:$0xff]  ;;  %v6896_v12 = vmov 0.0  }
  0x2e   :  { %5833 = vmatpush3.bf16.msra.mxu0 %v5830_v10  ;;  %4717 = vmatprep.mubr.msk.f32.mxu0 %vm78_vm1, %v6985_v3  ;;  %v5842_v41 = vpack.c.bf16 %v3851_v38, %v3850_v37  ;;  %v515_v45 = vld [vmem:[%s8227_s3] sm:$0xff]  ;;  %v516_v46 = vld [vmem:[%s8227_s3 + $0x8] sm:$0xff]  ;;  %v518_v49 = vld [vmem:[%s8227_s3 + $0x18] sm:$0xff]  ;;  %61 = vst [vmem:[#allocation3] sm:$0xf] %v6896_v12 }
  0x2f   :  { %5835 = vmatprep.subr.bf16.mxu0 %v5834_v16  ;;  %5849 = vmatprep.subr.bf16.mxu1 %v6894_v0  ;;  %v5871_v47 = vpack.c.bf16 %v516_v46, %v515_v45  ;;  %v5874_v50 = vpack.c.bf16 %v518_v49, %v517_v48  ;;  %v519_v51 = vld [vmem:[%s8227_s3 + $0x20] sm:$0xff]  ;;  %v520_v52 = vld [vmem:[%s8227_s3 + $0x28] sm:$0xff]  ;;  %v521_v54 = vld [vmem:[%s8227_s3 + $0x30] sm:$0xff]  ;;  %62 = vst [vmem:[#allocation3 + $0xc] sm:$0xf] %v6896_v12 }
  0x30   :  { %v5877_v53 = vpack.c.bf16 %v520_v52, %v519_v51  ;;  %v522_v55 = vld [vmem:[%s8227_s3 + $0x38] sm:$0xff]  ;;  %v523_v57 = vld [vmem:[%s8227_s3 + $0x40] sm:$0xff]  ;;  %v524_v58 = vld [vmem:[%s8227_s3 + $0x48] sm:$0xff]  ;;  %4773 = vmatprep.mubr.msk.f32.mxu1 %vm6895_vm5, %v6896_v12  ;;  %63 = vst [vmem:[#allocation4] sm:$0xf] %v6896_v12 }
  0x31   :  { %5851 = vmatpush3.bf16.msra.mxu1 %v5850_v20  ;;  %v5880_v56 = vpack.c.bf16 %v522_v55, %v521_v54  ;;  %v5883_v59 = vpack.c.bf16 %v524_v58, %v523_v57  ;;  %v525_v60 = vld [vmem:[%s8227_s3 + $0x50] sm:$0xff]  ;;  %v526_v61 = vld [vmem:[%s8227_s3 + $0x58] sm:$0xff]  ;;  %v527_v63 = vld [vmem:[%s8227_s3 + $0x60] sm:$0xff]  ;;  %64 = vst [vmem:[#allocation4 + $0x10] sm:$0xf] %v6896_v12 }
  0x32   :  { %5852 = vmatprep.subr.bf16.mxu1 %v6894_v0  ;;  %v5886_v62 = vpack.c.bf16 %v526_v61, %v525_v60  ;;  %v528_v1 = vld [vmem:[%s8227_s3 + $0x68] sm:$0xff]  ;;  %v3865_v3 = vld [vmem:[%s8227_s3 + $0xd0] sm:$0xff]  ;;  %v3866_v4 = vld [vmem:[%s8227_s3 + $0xd8] sm:$0xff] }
  0x33   :  { %v5889_v2 = vpack.c.bf16 %v528_v1, %v527_v63  ;;  %v5862_v6 = vpack.c.bf16 %v3866_v4, %v3865_v3  ;;  %v530_v7 = vld [vmem:[%s8227_s3 + $0x78] sm:$0xff]  ;;  %v3867_v9 = vld [vmem:[%s8227_s3 + $0xe0] sm:$0xff]  ;;  %v3868_v10 = vld [vmem:[%s8227_s3 + $0xe8] sm:$0xff] }
  0x34   :  { %v5865_v11 = vpack.c.bf16 %v3868_v10, %v3867_v9  ;;  %v3869_v13 = vld [vmem:[%s8227_s3 + $0xf0] sm:$0xff]  ;;  %v3870_v14 = vld [vmem:[%s8227_s3 + $0xf8] sm:$0xff]  ;;  %v3887_v18 = vld [vmem:[%s8227_s3 + $0x180] sm:$0xff] }
  0x35   :  { %4718 = vmatmul.mubr.msk.f32.vlgmr.msra.gmra.mrb[0].mxu0 %vm78_vm1, %v6987_v5  ;;  %5854 = vmatpush3.bf16.msra.mxu1 %v5853_v27  ;;  %v529_v5 = vld [vmem:[%s8227_s3 + $0x70] sm:$0xff]  ;;  %v5868_v15 = vpack.c.bf16 %v3870_v14, %v3869_v13  ;;  %v3888_v19 = vld [vmem:[%s8227_s3 + $0x188] sm:$0xff]  ;;  %v3890_v27 = vld [vmem:[%s8227_s3 + $0x198] sm:$0xff] }
  0x36   :  { %5837 = vmatpush3.bf16.msra.mxu0 %v5834_v16  ;;  %4724 = vmatprep.mubr.msk.f32.mxu0 %vm78_vm1, %v243_v30  ;;  %v5892_v8 = vpack.c.bf16 %v530_v7, %v529_v5  ;;  %v3854_v16 = vld [vmem:[%s8226_s2] ss:$0 sm:$0xff]  ;;  %v3889_v26 = vld [vmem:[%s8227_s3 + $0x190] sm:$0xff]  ;;  %v3872_v30 = vld [vmem:[%s8227_s3 + $0x108] sm:$0xff] }
  0x37   :  { %5839 = vmatprep.subr.bf16.mxu0 %v5838_v31  ;;  %5855 = vmatprep.subr.bf16.mxu1 %v6894_v0  ;;  %v3871_v28 = vld [vmem:[%s8227_s3 + $0x100] sm:$0xff]  ;;  %v5922_v29 = vpack.c.bf16 %v3890_v27, %v3889_v26  ;;  %v3873_v34 = vld [vmem:[%s8227_s3 + $0x110] sm:$0xff]  ;;  %v3894_v38 = vld [vmem:[%s8227_s3 + $0x1b8] sm:$0xff] }
  0x38   :  { %v5895_v33 = vpack.c.bf16 %v3872_v30, %v3871_v28  ;;  %v3893_v37 = vld [vmem:[%s8227_s3 + $0x1b0] sm:$0xff]  ;;  %v3896_v45 = vld [vmem:[%s8227_s3 + $0x1c8] sm:$0xff]  ;;  %v3878_v49 = vld [vmem:[%s8227_s3 + $0x138] sm:$0xff] }
  0x39   :  { %5857 = vmatpush3.bf16.msra.mxu1 %v5856_v32  ;;  %v3892_v32 = vld [vmem:[%s8227_s3 + $0x1a8] sm:$0xff]  ;;  %v5928_v42 = vpack.c.bf16 %v3894_v38, %v3893_v37  ;;  %v3898_v51 = vld [vmem:[%s8227_s3 + $0x1d8] sm:$0xff]  ;;  %v3883_v3 = vld [vmem:[%s8227_s3 + $0x160] sm:$0xff] }
  0x3a   :  { %5858 = vmatprep.subr.bf16.mxu1 %v6894_v0  ;;  %v3880_v55 = vld [vmem:[%s8227_s3 + $0x148] sm:$0xff]  ;;  %v3882_v61 = vld [vmem:[%s8227_s3 + $0x158] sm:$0xff]  ;;  %v3903_v10 = vld [vmem:[%s8227_s3 + $0x200] sm:$0xff] }
  0x3b   :  { %v3900_v57 = vld [vmem:[%s8227_s3 + $0x1e8] sm:$0xff]  ;;  %v3902_v63 = vld [vmem:[%s8227_s3 + $0x1f8] sm:$0xff]  ;;  %v3905_v14 = vld [vmem:[%s8227_s3 + $0x210] sm:$0xff] }
  0x3c   :  { %v3884_v4 = vld [vmem:[%s8227_s3 + $0x168] sm:$0xff]  ;;  %v3886_v7 = vld [vmem:[%s8227_s3 + $0x178] sm:$0xff]  ;;  %v3913_v27 = vld [vmem:[%s8227_s3 + $0x250] sm:$0xff] }
  0x3d   :  { %4725 = vmatmul.mubr.msk.f32.vlgmr.msra.gmra.mrb[0].mxu0 %vm78_vm1, %v242_v24  ;;  %5860 = vmatpush3.bf16.msra.mxu1 %v5859_v39  ;;  %v5919_v24 = vpack.c.bf16 %v3888_v19, %v3887_v18  ;;  %v5913_v5 = vpack.c.bf16 %v3884_v4, %v3883_v3  ;;  %v3907_v18 = vld [vmem:[%s8227_s3 + $0x220] sm:$0xff]  ;;  %v3908_v19 = vld [vmem:[%s8227_s3 + $0x228] sm:$0xff]  ;;  %v3914_v28 = vld [vmem:[%s8227_s3 + $0x258] sm:$0xff] }
  0x3e   :  { %5841 = vmatpush3.bf16.msra.mxu0 %v5838_v31  ;;  %4731 = vmatprep.mubr.msk.f32.mxu0 %vm78_vm1, %v331_v40  ;;  %v3891_v31 = vld [vmem:[%s8227_s3 + $0x1a0] sm:$0xff]  ;;  %v987_v37 = vld [vmem:[#allocation8 + $0x80] sm:$0xff] }
  0x3f   :  { %5843 = vmatprep.subr.bf16.mxu0 %v5842_v41  ;;  %5861 = vmatprep.subr.bf16.mxu1 %v6894_v0  ;;  %v5925_v35 = vpack.c.bf16 %v3892_v32, %v3891_v31  ;;  %v3915_v30 = vld [vmem:[%s8227_s3 + $0x260] sm:$0xff]  ;;  %v3916_v31 = vld [vmem:[%s8227_s3 + $0x268] sm:$0xff] }
  0x40   :  { %v5961_v32 = vpack.c.bf16 %v3916_v31, %v3915_v30  ;;  %v988_v38 = vld [vmem:[#allocation8 + $0x88] sm:$0xff]  ;;  %v976_v31 = vld [vmem:[#allocation8 + $0x40] sm:$0xff] }
  0x41   :  { %5863 = vmatpush3.bf16.msra.mxu1 %v5862_v6  ;;  %v3885_v6 = vld [vmem:[%s8227_s3 + $0x170] sm:$0xff] }
  0x42   :  { %5864 = vmatprep.subr.bf16.mxu1 %v6894_v0  ;;  %v5916_v9 = vpack.c.bf16 %v3886_v7, %v3885_v6 }
  0x45   :  { %4732 = vmatmul.mubr.msk.f32.vlgmr.msra.gmra.mrb[0].mxu0 %vm78_vm1, %v330_v36  ;;  %5866 = vmatpush3.bf16.msra.mxu1 %v5865_v11  ;;  %v3874_v36 = vld [vmem:[%s8227_s3 + $0x118] sm:$0xff]  ;;  %v3904_v11 = vld [vmem:[%s8227_s3 + $0x208] sm:$0xff] }
  0x46   :  { %5845 = vmatpush3.bf16.msra.mxu0 %v5842_v41  ;;  %4738 = vmatprep.mubr.msk.f32.mxu0 %vm78_vm1, %v419_v44  ;;  %v5898_v40 = vpack.c.bf16 %v3874_v36, %v3873_v34  ;;  %v3875_v41 = vld [vmem:[%s8227_s3 + $0x120] sm:$0xff]  ;;  %v5943_v13 = vpack.c.bf16 %v3904_v11, %v3903_v10  ;;  %v3918_v34 = vld [vmem:[%s8227_s3 + $0x278] sm:$0xff] }
  0x47   :  { %5870 = vmatprep.subr.bf16.mxu0 %v6894_v0  ;;  %5867 = vmatprep.subr.bf16.mxu1 %v6894_v0  ;;  %v3895_v44 = vld [vmem:[%s8227_s3 + $0x1c0] sm:$0xff] }
  0x48   :  { %v5931_v48 = vpack.c.bf16 %v3896_v45, %v3895_v44  ;;  %v992_v44 = vld [vmem:[#allocation8 + $0xa8] sm:$0xff] }
  0x49   :  { %5869 = vmatpush3.bf16.msra.mxu1 %v5868_v15  ;;  %v3906_v15 = vld [vmem:[%s8227_s3 + $0x218] sm:$0xff] }
  0x4a   :  { %5894 = vmatprep.subr.bf16.mxu1 %v6894_v0 }
  0x4d   :  { %4739 = vmatmul.mubr.msk.f32.vlgmr.msra.gmra.mrb[0].mxu0 %vm78_vm1, %v418_v43  ;;  %v3876_v43 = vld [vmem:[%s8227_s3 + $0x128] sm:$0xff] }
  0x4e   :  { %5872 = vmatpush3.bf16.msra.mxu0 %v5871_v47  ;;  %4808 = vmatprep.mubr.msk.f32.mxu0 %vm6895_vm5, %v6896_v12  ;;  %v5901_v46 = vpack.c.bf16 %v3876_v43, %v3875_v41  ;;  %v3877_v47 = vld [vmem:[%s8227_s3 + $0x130] sm:$0xff]  ;;  %v991_v43 = vld [vmem:[#allocation8 + $0xa0] sm:$0xff] }
  0x4f   :  { %5873 = vmatprep.subr.bf16.mxu0 %v6894_v0  ;;  %v5904_v52 = vpack.c.bf16 %v3878_v49, %v3877_v47  ;;  %v990_v41 = vld [vmem:[#allocation8 + $0x98] sm:$0xff]  ;;  %v5974_v45 = vpack.c.bf16 %v992_v44, %v991_v43  ;;  %v995_v49 = vld [vmem:[#allocation8 + $0xc0] sm:$0xff]  ;;  %v1157_v44 = vld [vmem:[#allocation8 + $0x108] sm:$0xff] }
  0x50   :  { %v994_v47 = vld [vmem:[#allocation8 + $0xb8] sm:$0xff]  ;;  %v1156_v43 = vld [vmem:[#allocation8 + $0x100] sm:$0xff] }
  0x52   :  { %5875 = vmatpush3.bf16.msra.mxu0 %v5874_v50  ;;  %v3897_v50 = vld [vmem:[%s8227_s3 + $0x1d0] sm:$0xff] }
  0x53   :  { %5876 = vmatprep.subr.bf16.mxu0 %v6894_v0  ;;  %v5934_v54 = vpack.c.bf16 %v3898_v51, %v3897_v50  ;;  %v996_v50 = vld [vmem:[#allocation8 + $0xc8] sm:$0xff] }
  0x54   :  { %v5982_v51 = vpack.c.bf16 %v996_v50, %v995_v49  ;;  %v1160_v50 = vld [vmem:[#allocation8 + $0x120] sm:$0xff] }
  0x56   :  { %5878 = vmatpush3.bf16.msra.mxu0 %v5877_v53  ;;  %v3879_v53 = vld [vmem:[%s8227_s3 + $0x140] sm:$0xff] }
  0x57   :  { %5879 = vmatprep.subr.bf16.mxu0 %v6894_v0  ;;  %v5907_v58 = vpack.c.bf16 %v3880_v55, %v3879_v53  ;;  %v998_v53 = vld [vmem:[#allocation8 + $0xd8] sm:$0xff]  ;;  %v999_v55 = vld [vmem:[#allocation8 + $0xe0] sm:$0xff] }
  0x5a   :  { %5881 = vmatpush3.bf16.msra.mxu0 %v5880_v56  ;;  %v3899_v56 = vld [vmem:[%s8227_s3 + $0x1e0] sm:$0xff] }
  0x5b   :  { %5882 = vmatprep.subr.bf16.mxu0 %v6894_v0  ;;  %v5937_v60 = vpack.c.bf16 %v3900_v57, %v3899_v56  ;;  %v1000_v56 = vld [vmem:[#allocation8 + $0xe8] sm:$0xff] }
  0x5c   :  { %v5990_v57 = vpack.c.bf16 %v1000_v56, %v999_v55  ;;  %v1163_v55 = vld [vmem:[#allocation8 + $0x138] sm:$0xff]  ;;  %v3921_v56 = vld [vmem:[%s8231_s7 + $0x80] sm:$0xff] }
  0x5e   :  { %5884 = vmatpush3.bf16.msra.mxu0 %v5883_v59  ;;  %v3881_v59 = vld [vmem:[%s8227_s3 + $0x150] sm:$0xff] }
  0x5f   :  { %5885 = vmatprep.subr.bf16.mxu0 %v6894_v0  ;;  %v5910_v1 = vpack.c.bf16 %v3882_v61, %v3881_v59  ;;  %v1002_v59 = vld [vmem:[#allocation8 + $0xf8] sm:$0xff]  ;;  %v968_v61 = vld [vmem:[#allocation8] sm:$0xff] }
  0x62   :  { %5887 = vmatpush3.bf16.msra.mxu0 %v5886_v62  ;;  %v3901_v62 = vld [vmem:[%s8227_s3 + $0x1f0] sm:$0xff] }
  0x63   :  { %5888 = vmatprep.subr.bf16.mxu0 %v6894_v0 }
  0x66   :  { %5890 = vmatpush3.bf16.msra.mxu0 %v5889_v2  ;;  %v5940_v2 = vpack.c.bf16 %v3902_v63, %v3901_v62  ;;  %v969_v62 = vld [vmem:[#allocation8 + $0x8] sm:$0xff] }
  0x67   :  { %5891 = vmatprep.subr.bf16.mxu0 %v6894_v0  ;;  %v5998_v63 = vpack.c.bf16 %v969_v62, %v968_v61 }
  0x6a   :  { %5893 = vmatpush3.bf16.msra.mxu0 %v5892_v8 }
  0x6b   :  { %5918 = vmatprep.subr.bf16.mxu0 %v6894_v0 }
 0x120   :  { %v4740_v17 = vpop.f32.mrb[0].mxu0 }
 0x121   :  { %v509_v20 = vadd.f32 %v4740_v17, %v3854_v16  ;;  %v490_v21 = vpop.f32.mrb[1].mxu0  ;;  %v5946_v17 = vpack.c.bf16 %v3906_v15, %v3905_v14  ;;  %v3919_v14 = vld [vmem:[%s8228_s4] ss:$0 sm:$0xff] }
 0x122   :  { %v508_v22 = vadd.f32 %v3854_v16, %v490_v21  ;;  %v3909_v21 = vld [vmem:[%s8227_s3 + $0x230] sm:$0xff] }
 0x123   :  { %v511_v23 = vmax.f32 %v509_v20, 0.0  ;;  %v5949_v20 = vpack.c.bf16 %v3908_v19, %v3907_v18  ;;  %v970_v19 = vld [vmem:[#allocation8 + $0x10] sm:$0xff] }
 0x124   :  { %v510_v25 = vmax.f32 %v508_v22, 0.0  ;;  %v3910_v22 = vld [vmem:[%s8227_s3 + $0x238] sm:$0xff] }
 0x125   :  { %513 = vst [vmem:[#allocation2 + $0x8] sm:$0xf] %v511_v23  ;;  %v5952_v23 = vpack.c.bf16 %v3910_v22, %v3909_v21 }
 0x126   :  { %512 = vst [vmem:[#allocation2] sm:$0xff] %v510_v25  ;;  %4809 = vmatmul.mubr.f32.vlgmr.msra.gmra.mrb[2].mxu0 %v510_v25  ;;  %v3912_v25 = vld [vmem:[%s8227_s3 + $0x248] sm:$0xff] }
 0x127   :  { %5920 = vmatpush3.bf16.msra.mxu0 %v5919_v24  ;;  %4878 = vmatprep.mubr.msk.f32.mxu0 %vm6895_vm5, %v6896_v12  ;;  %v3911_v24 = vld [vmem:[%s8227_s3 + $0x240] sm:$0xff] }
 0x128   :  { %5921 = vmatprep.subr.bf16.mxu0 %v6894_v0  ;;  %v5955_v26 = vpack.c.bf16 %v3912_v25, %v3911_v24  ;;  %v972_v24 = vld [vmem:[#allocation8 + $0x20] sm:$0xff]  ;;  %v973_v25 = vld [vmem:[#allocation8 + $0x28] sm:$0xff] }
 0x12b   :  { %5923 = vmatpush3.bf16.msra.mxu0 %v5922_v29  ;;  %v5958_v29 = vpack.c.bf16 %v3914_v28, %v3913_v27  ;;  %v6006_v27 = vpack.c.bf16 %v973_v25, %v972_v24  ;;  %v974_v28 = vld [vmem:[#allocation8 + $0x30] sm:$0xff]  ;;  %v1252_v24 = vld [vmem:[#allocation8 + $0x180] sm:$0xff]  ;;  %v1253_v25 = vld [vmem:[#allocation8 + $0x188] sm:$0xff] }
 0x12c   :  { %5924 = vmatprep.subr.bf16.mxu0 %v6894_v0 }
 0x12d   :  { %v531_v39 = vld [vmem:[#allocation2 + $0x1] sm:$0xff] }
 0x12e   :  { %4774 = vmatmul.mubr.f32.vlgmr.msra.gmra.mrb[0].mxu1 %v531_v39  ;;  %v778_v8 = vld [vmem:[#allocation2 + $0x3] sm:$0xff] }
 0x12f   :  { %5896 = vmatpush3.bf16.msra.mxu1 %v5895_v33  ;;  %5926 = vmatpush3.bf16.msra.mxu0 %v5925_v35  ;;  %v689_v16 = vld [vmem:[#allocation2 + $0x2] sm:$0xff]  ;;  %v3917_v33 = vld [vmem:[%s8227_s3 + $0x270] sm:$0xff] }
 0x130   :  { %5897 = vmatprep.subr.bf16.mxu1 %v6894_v0  ;;  %5927 = vmatprep.subr.bf16.mxu0 %v6894_v0  ;;  %v5964_v35 = vpack.c.bf16 %v3918_v34, %v3917_v33  ;;  %v867_v36 = vld [vmem:[#allocation2 + $0x4] sm:$0xff] }
 0x131   :  { %4843 = vmatprep.mubr.msk.f32.mxu1 %vm6895_vm5, %v6896_v12  ;;  %v989_v39 = vld [vmem:[#allocation8 + $0x90] sm:$0xff] }
 0x132   :  { %v978_v34 = vld [vmem:[#allocation8 + $0x50] sm:$0xff] }
 0x133   :  { %5899 = vmatpush3.bf16.msra.mxu1 %v5898_v40  ;;  %5929 = vmatpush3.bf16.msra.mxu0 %v5928_v42  ;;  %v5966_v40 = vpack.c.bf16 %v988_v38, %v987_v37  ;;  %v5970_v42 = vpack.c.bf16 %v990_v41, %v989_v39  ;;  %v980_v37 = vld [vmem:[#allocation8 + $0x60] sm:$0xff]  ;;  %v981_v38 = vld [vmem:[#allocation8 + $0x68] sm:$0xff]  ;;  %v983_v41 = vld [vmem:[#allocation8 + $0x78] sm:$0xff] }
 0x134   :  { %5900 = vmatprep.subr.bf16.mxu1 %v6894_v0  ;;  %5930 = vmatprep.subr.bf16.mxu0 %v6894_v0  ;;  %v6022_v39 = vpack.c.bf16 %v981_v38, %v980_v37  ;;  %v1260_v38 = vld [vmem:[#allocation8 + $0x1c0] sm:$0xff] }
 0x137   :  { %5902 = vmatpush3.bf16.msra.mxu1 %v5901_v46  ;;  %5932 = vmatpush3.bf16.msra.mxu0 %v5931_v48  ;;  %v993_v46 = vld [vmem:[#allocation8 + $0xb0] sm:$0xff] }
 0x138   :  { %5903 = vmatprep.subr.bf16.mxu1 %v6894_v0  ;;  %5933 = vmatprep.subr.bf16.mxu0 %v6894_v0  ;;  %v5978_v48 = vpack.c.bf16 %v994_v47, %v993_v46  ;;  %v1158_v46 = vld [vmem:[#allocation8 + $0x110] sm:$0xff]  ;;  %v1159_v47 = vld [vmem:[#allocation8 + $0x118] sm:$0xff] }
 0x13b   :  { %5905 = vmatpush3.bf16.msra.mxu1 %v5904_v52  ;;  %5935 = vmatpush3.bf16.msra.mxu0 %v5934_v54  ;;  %v997_v52 = vld [vmem:[#allocation8 + $0xd0] sm:$0xff] }
 0x13c   :  { %5906 = vmatprep.subr.bf16.mxu1 %v6894_v0  ;;  %5936 = vmatprep.subr.bf16.mxu0 %v6894_v0  ;;  %v5986_v54 = vpack.c.bf16 %v998_v53, %v997_v52 }
 0x13f   :  { %5908 = vmatpush3.bf16.msra.mxu1 %v5907_v58  ;;  %5938 = vmatpush3.bf16.msra.mxu0 %v5937_v60  ;;  %v1001_v58 = vld [vmem:[#allocation8 + $0xf0] sm:$0xff] }
 0x140   :  { %5909 = vmatprep.subr.bf16.mxu1 %v6894_v0  ;;  %5939 = vmatprep.subr.bf16.mxu0 %v6894_v0  ;;  %v5994_v60 = vpack.c.bf16 %v1002_v59, %v1001_v58  ;;  %v3923_v58 = vld [vmem:[%s8231_s7 + $0x90] sm:$0xff] }
 0x143   :  { %5911 = vmatpush3.bf16.msra.mxu1 %v5910_v1  ;;  %5941 = vmatpush3.bf16.msra.mxu0 %v5940_v2 }
 0x144   :  { %5912 = vmatprep.subr.bf16.mxu1 %v6894_v0  ;;  %5967 = vmatprep.subr.bf16.mxu0 %v5966_v40 }
 0x146   :  { %4879 = vmatmul.mubr.f32.vlgmr.msra.gmra.mrb[4].mxu0 %v778_v8 }
 0x147   :  { %5914 = vmatpush3.bf16.msra.mxu1 %v5913_v5  ;;  %5969 = vmatpush3.bf16.msra.mxu0 %v5966_v40  ;;  %v982_v40 = vld [vmem:[#allocation8 + $0x70] sm:$0xff] }
 0x148   :  { %5915 = vmatprep.subr.bf16.mxu1 %v6894_v0  ;;  %5971 = vmatprep.subr.bf16.mxu0 %v5970_v42 }
 0x14b   :  { %5917 = vmatpush3.bf16.msra.mxu1 %v5916_v9  ;;  %5973 = vmatpush3.bf16.msra.mxu0 %v5970_v42  ;;  %v6026_v42 = vpack.c.bf16 %v983_v41, %v982_v40  ;;  %v1262_v41 = vld [vmem:[#allocation8 + $0x1d0] sm:$0xff] }
 0x14c   :  { %5942 = vmatprep.subr.bf16.mxu1 %v6894_v0  ;;  %5975 = vmatprep.subr.bf16.mxu0 %v5974_v45 }
 0x14e   :  { %4844 = vmatmul.mubr.f32.vlgmr.msra.gmra.mrb[2].mxu1 %v689_v16 }
 0x14f   :  { %5944 = vmatpush3.bf16.msra.mxu1 %v5943_v13  ;;  %4913 = vmatprep.mubr.msk.f32.mxu1 %vm6895_vm5, %v6896_v12 }
 0x150   :  { %5945 = vmatprep.subr.bf16.mxu1 %v6894_v0  ;;  %5977 = vmatpush3.bf16.msra.mxu0 %v5974_v45  ;;  %v6030_v45 = vpack.c.bf16 %v1157_v44, %v1156_v43  ;;  %v1264_v44 = vld [vmem:[#allocation8 + $0x1e0] sm:$0xff] }
 0x151   :  { %5979 = vmatprep.subr.bf16.mxu0 %v5978_v48 }
 0x153   :  { %5947 = vmatpush3.bf16.msra.mxu1 %v5946_v17 }
 0x154   :  { %5948 = vmatprep.subr.bf16.mxu1 %v6894_v0  ;;  %5981 = vmatpush3.bf16.msra.mxu0 %v5978_v48  ;;  %v6034_v48 = vpack.c.bf16 %v1159_v47, %v1158_v46  ;;  %v1266_v47 = vld [vmem:[#allocation8 + $0x1f0] sm:$0xff] }
 0x155   :  { %5983 = vmatprep.subr.bf16.mxu0 %v5982_v51 }
 0x157   :  { %5950 = vmatpush3.bf16.msra.mxu1 %v5949_v20  ;;  %v971_v20 = vld [vmem:[#allocation8 + $0x18] sm:$0xff] }
 0x158   :  { %5951 = vmatprep.subr.bf16.mxu1 %v6894_v0  ;;  %5985 = vmatpush3.bf16.msra.mxu0 %v5982_v51  ;;  %v1161_v51 = vld [vmem:[#allocation8 + $0x128] sm:$0xff] }
 0x159   :  { %5987 = vmatprep.subr.bf16.mxu0 %v5986_v54  ;;  %v6038_v53 = vpack.c.bf16 %v1161_v51, %v1160_v50  ;;  %v1348_v50 = vld [vmem:[#allocation8 + $0x200] sm:$0xff]  ;;  %v1349_v51 = vld [vmem:[#allocation8 + $0x208] sm:$0xff] }
 0x15b   :  { %5953 = vmatpush3.bf16.msra.mxu1 %v5952_v23  ;;  %v6002_v23 = vpack.c.bf16 %v971_v20, %v970_v19 }
 0x15c   :  { %5954 = vmatprep.subr.bf16.mxu1 %v6894_v0  ;;  %5989 = vmatpush3.bf16.msra.mxu0 %v5986_v54  ;;  %v1162_v54 = vld [vmem:[#allocation8 + $0x130] sm:$0xff] }
 0x15d   :  { %5991 = vmatprep.subr.bf16.mxu0 %v5990_v57  ;;  %v6042_v61 = vpack.c.bf16 %v1163_v55, %v1162_v54  ;;  %v1351_v54 = vld [vmem:[#allocation8 + $0x218] sm:$0xff] }
 0x15f   :  { %5956 = vmatpush3.bf16.msra.mxu1 %v5955_v26 }
 0x160   :  { %5957 = vmatprep.subr.bf16.mxu1 %v6894_v0  ;;  %5993 = vmatpush3.bf16.msra.mxu0 %v5990_v57  ;;  %v3922_v57 = vld [vmem:[%s8231_s7 + $0x88] sm:$0xff] }
 0x161   :  { %5995 = vmatprep.subr.bf16.mxu0 %v5994_v60  ;;  %v6126_v59 = vpack.c.bf16 %v3922_v57, %v3921_v56  ;;  %v1352_v57 = vld [vmem:[#allocation8 + $0x220] sm:$0xff] }
 0x163   :  { %5959 = vmatpush3.bf16.msra.mxu1 %v5958_v29  ;;  %v975_v29 = vld [vmem:[#allocation8 + $0x38] sm:$0xff] }
 0x164   :  { %5960 = vmatprep.subr.bf16.mxu1 %v6894_v0  ;;  %5997 = vmatpush3.bf16.msra.mxu0 %v5994_v60  ;;  %v6010_v30 = vpack.c.bf16 %v975_v29, %v974_v28  ;;  %v3924_v60 = vld [vmem:[%s8231_s7 + $0x98] sm:$0xff]  ;;  %v1255_v28 = vld [vmem:[#allocation8 + $0x198] sm:$0xff] }
 0x165   :  { %5999 = vmatprep.subr.bf16.mxu0 %v5998_v63  ;;  %v6130_v62 = vpack.c.bf16 %v3924_v60, %v3923_v58  ;;  %v1353_v58 = vld [vmem:[#allocation8 + $0x228] sm:$0xff]  ;;  %v1354_v60 = vld [vmem:[#allocation8 + $0x230] sm:$0xff] }
 0x167   :  { %5962 = vmatpush3.bf16.msra.mxu1 %v5961_v32  ;;  %v977_v32 = vld [vmem:[#allocation8 + $0x48] sm:$0xff] }
 0x168   :  { %5963 = vmatprep.subr.bf16.mxu1 %v6894_v0  ;;  %v6014_v33 = vpack.c.bf16 %v977_v32, %v976_v31  ;;  %v1256_v31 = vld [vmem:[#allocation8 + $0x1a0] sm:$0xff]  ;;  %v1257_v32 = vld [vmem:[#allocation8 + $0x1a8] sm:$0xff] }
 0x16b   :  { %5965 = vmatpush3.bf16.msra.mxu1 %v5964_v35  ;;  %v979_v35 = vld [vmem:[#allocation8 + $0x58] sm:$0xff] }
 0x16c   :  { %6127 = vmatprep.subr.bf16.mxu1 %v6126_v59 }
 0x16e   :  { %4914 = vmatmul.mubr.f32.vlgmr.msra.gmra.mrb[4].mxu1 %v867_v36  ;;  %v6018_v36 = vpack.c.bf16 %v979_v35, %v978_v34  ;;  %v6070_v34 = vpack.c.bf16 %v1257_v32, %v1256_v31  ;;  %v1258_v35 = vld [vmem:[#allocation8 + $0x1b0] sm:$0xff]  ;;  %v3997_v31 = vld [vmem:[%s8225_s1 + $0x38] sm:$0xff] }
 0x16f   :  { %6129 = vmatpush3.bf16.msra.mxu1 %v6126_v59  ;;  %v6102_v59 = vpack.c.bf16 %v1353_v58, %v1352_v57  ;;  %v2395_v58 = vld [vmem:[%s8227_s3 + $0x10] sm:$0xff] }
 0x170   :  { %6131 = vmatprep.subr.bf16.mxu1 %v6130_v62 }
 0x173   :  { %6133 = vmatpush3.bf16.msra.mxu1 %v6130_v62 }
 0x1f9   :  { %v685_v1 = vpop.f32.mrb[2].mxu0 }
 0x1fa   :  { %v4810_v2 = vpop.f32.mrb[3].mxu0 }
 0x1fb   :  { %v1164_v2 = vld [vmem:[#allocation8 + $0x140] sm:$0xff] }
 0x201   :  { %v615_v3 = vpop.f32.mrb[0].mxu1 }
 0x202   :  { %v686_v4 = vadd.f32 %v685_v1, %v615_v3  ;;  %v4775_v5 = vpop.f32.mrb[1].mxu1  ;;  %v3926_v1 = vld [vmem:[%s8231_s7 + $0xa8] sm:$0xff]  ;;  %v1165_v3 = vld [vmem:[#allocation8 + $0x148] sm:$0xff] }
 0x203   :  { %v6046_v5 = vpack.c.bf16 %v1165_v3, %v1164_v2  ;;  %v1358_v3 = vld [vmem:[#allocation8 + $0x250] sm:$0xff] }
 0x219   :  { %v862_v6 = vpop.f32.mrb[4].mxu0 }
 0x21a   :  { %v4880_v7 = vpop.f32.mrb[5].mxu0 }
 0x21b   :  { %v3928_v7 = vld [vmem:[%s8231_s7 + $0xb8] sm:$0xff] }
 0x221   :  { %v773_v8 = vpop.f32.mrb[2].mxu1 }
 0x222   :  { %v777_v9 = vadd.f32 %v773_v8, %v686_v4  ;;  %v4845_v10 = vpop.f32.mrb[3].mxu1  ;;  %v1166_v8 = vld [vmem:[#allocation8 + $0x150] sm:$0xff] }
 0x224   :  { %v866_v11 = vadd.f32 %v862_v6, %v777_v9  ;;  %v3927_v6 = vld [vmem:[%s8231_s7 + $0xb0] sm:$0xff] }
 0x225   :  { %v1167_v9 = vld [vmem:[#allocation8 + $0x158] sm:$0xff]  ;;  %v6138_v10 = vpack.c.bf16 %v3928_v7, %v3927_v6  ;;  %v1360_v6 = vld [vmem:[#allocation8 + $0x260] sm:$0xff]  ;;  %v1362_v7 = vld [vmem:[#allocation8 + $0x270] sm:$0xff] }
 0x241   :  { %v951_v13 = vpop.f32.mrb[4].mxu1 }
 0x242   :  { %v955_v15 = vadd.f32 %v951_v13, %v866_v11  ;;  %v4915_v16 = vpop.f32.mrb[5].mxu1  ;;  %v6050_v11 = vpack.c.bf16 %v1167_v9, %v1166_v8  ;;  %v3929_v13 = vld [vmem:[%s8231_s7 + $0xc0] sm:$0xff]  ;;  %v1363_v8 = vld [vmem:[#allocation8 + $0x278] sm:$0xff] }
 0x243   :  { %v1169_v16 = vld [vmem:[#allocation8 + $0x168] sm:$0xff]  ;;  %v6122_v9 = vpack.c.bf16 %v1363_v8, %v1362_v7 }
 0x244   :  { %v7336_v17 = vadd.f32 %v3919_v14, %v955_v15  ;;  %v3930_v14 = vld [vmem:[%s8231_s7 + $0xc8] sm:$0xff]  ;;  %v1168_v15 = vld [vmem:[#allocation8 + $0x160] sm:$0xff]  ;;  %v2405_v8 = vld [vmem:[%s8227_s3 + $0x60] sm:$0xff] }
 0x245   :  { %v6142_v19 = vpack.c.bf16 %v3930_v14, %v3929_v13  ;;  %v6054_v20 = vpack.c.bf16 %v1169_v16, %v1168_v15  ;;  %v1952_v13 = vld [vmem:[#allocation5 + $0x10] sm:$0xff]  ;;  %v1953_v14 = vld [vmem:[#allocation5 + $0x18] sm:$0xff] }
 0x246   :  { %v964_v18 = vmax.f32 %v7336_v17, 0.0  ;;  %v1361_v17 = vld [vmem:[#allocation8 + $0x268] sm:$0xff]  ;;  %v1960_v16 = vrot.slane %v1952_v13, 1 }
 0x248   :  { %965 = vst [vmem:[#allocation3 + $0x4] sm:$0xff] %v964_v18 }
 0x24f   :  { %v984_v21 = vld [vmem:[#allocation3 + $0x1] sm:$0xff]  ;;  %v985_v22 = vld [vmem:[#allocation3 + $0x9] sm:$0xf] }
 0x250   :  { %4948 = vmatprep.mubr.f32.mxu0 %v984_v21  ;;  %v966_v26 = vld [vmem:[#allocation3] sm:$0xff]  ;;  %v967_v49 = vld [vmem:[#allocation3 + $0x8] sm:$0xf]  ;;  %v1170_v21 = vld [vmem:[#allocation8 + $0x170] sm:$0xff] }
 0x251   :  { %4949 = vmatmul.mubr.f32.vlgmr.msra.gmra.mrb[6].mxu0 %v985_v22  ;;  %v1153_v52 = vld [vmem:[#allocation3 + $0x2] sm:$0xff]  ;;  %v1250_v56 = vld [vmem:[#allocation3 + $0xb] sm:$0xf] }
 0x252   :  { %6001 = vmatpush3.bf16.msra.mxu0 %v5998_v63  ;;  %4983 = vmatprep.mubr.f32.mxu0 %v966_v26  ;;  %v3925_v63 = vld [vmem:[%s8231_s7 + $0xa0] sm:$0xff]  ;;  %v1171_v22 = vld [vmem:[#allocation8 + $0x178] sm:$0xff]  ;;  %v6062_v26 = vpack.c.bf16 %v1253_v25, %v1252_v24 }
 0x253   :  { %6003 = vmatprep.subr.bf16.mxu0 %v6002_v23  ;;  %v6134_v4 = vpack.c.bf16 %v3926_v1, %v3925_v63  ;;  %v1356_v63 = vld [vmem:[#allocation8 + $0x240] sm:$0xff]  ;;  %v1357_v1 = vld [vmem:[#allocation8 + $0x248] sm:$0xff] }
 0x254   :  { %v6110_v2 = vpack.c.bf16 %v1357_v1, %v1356_v63  ;;  %v3992_v25 = vld [vmem:[%s8225_s1 + $0x20] sm:$0xff]  ;;  %v2399_v1 = vld [vmem:[%s8227_s3 + $0x30] sm:$0xff] }
 0x255   :  { %6135 = vmatprep.subr.bf16.mxu1 %v6134_v4 }
 0x256   :  { %6005 = vmatpush3.bf16.msra.mxu0 %v6002_v23  ;;  %6137 = vmatpush3.bf16.msra.mxu1 %v6134_v4  ;;  %v6058_v23 = vpack.c.bf16 %v1171_v22, %v1170_v21  ;;  %v1359_v4 = vld [vmem:[#allocation8 + $0x258] sm:$0xff]  ;;  %v1955_v21 = vld [vmem:[%s8225_s1 + $0x8] sm:$0xff]  ;;  %v1346_v22 = vld [vmem:[#allocation3 + $0xc] sm:$0xf] }
 0x257   :  { %6007 = vmatprep.subr.bf16.mxu0 %v6006_v27  ;;  %6139 = vmatprep.subr.bf16.mxu1 %v6138_v10 }
 0x25a   :  { %6009 = vmatpush3.bf16.msra.mxu0 %v6006_v27  ;;  %6141 = vmatpush3.bf16.msra.mxu1 %v6138_v10  ;;  %v1254_v27 = vld [vmem:[#allocation8 + $0x190] sm:$0xff]  ;;  %v3986_v10 = vld [vmem:[%s8225_s1 + $0x10] sm:$0xff] }
 0x25b   :  { %6011 = vmatprep.subr.bf16.mxu0 %v6010_v30  ;;  %6143 = vmatprep.subr.bf16.mxu1 %v6142_v19  ;;  %v6066_v29 = vpack.c.bf16 %v1255_v28, %v1254_v27  ;;  %v2123_v28 = vrot.slane %v1952_v13, 2 }
 0x25e   :  { %6013 = vmatpush3.bf16.msra.mxu0 %v6010_v30  ;;  %6145 = vmatpush3.bf16.msra.mxu1 %v6142_v19  ;;  %v1154_v30 = vld [vmem:[#allocation3 + $0xa] sm:$0xf]  ;;  %v1961_v19 = vrot.slane %v1953_v14, 1 }
 0x25f   :  { %6015 = vmatprep.subr.bf16.mxu0 %v6014_v33 }
 0x262   :  { %6017 = vmatpush3.bf16.msra.mxu0 %v6014_v33  ;;  %v1249_v33 = vld [vmem:[#allocation3 + $0x3] sm:$0xff] }
 0x263   :  { %6019 = vmatprep.subr.bf16.mxu0 %v6018_v36 }
 0x266   :  { %6021 = vmatpush3.bf16.msra.mxu0 %v6018_v36  ;;  %v1259_v36 = vld [vmem:[#allocation8 + $0x1b8] sm:$0xff] }
 0x267   :  { %6023 = vmatprep.subr.bf16.mxu0 %v6022_v39  ;;  %v6074_v37 = vpack.c.bf16 %v1259_v36, %v1258_v35  ;;  %v2210_v35 = vrot.slane %v1953_v14, 3  ;;  %v4000_v36 = vld [vmem:[%s8225_s1 + $0x40] sm:$0xff] }
 0x26a   :  { %6025 = vmatpush3.bf16.msra.mxu0 %v6022_v39  ;;  %v1261_v39 = vld [vmem:[#allocation8 + $0x1c8] sm:$0xff] }
 0x26b   :  { %6027 = vmatprep.subr.bf16.mxu0 %v6026_v42  ;;  %v6078_v40 = vpack.c.bf16 %v1261_v39, %v1260_v38 }
 0x26e   :  { %6029 = vmatpush3.bf16.msra.mxu0 %v6026_v42  ;;  %v1263_v42 = vld [vmem:[#allocation8 + $0x1d8] sm:$0xff] }
 0x26f   :  { %6031 = vmatprep.subr.bf16.mxu0 %v6030_v45  ;;  %v6082_v43 = vpack.c.bf16 %v1263_v42, %v1262_v41  ;;  %v2296_v41 = vrot.slane %v1953_v14, 4 }
 0x271   :  { %4984 = vmatmul.mubr.f32.vlgmr.msra.gmra.mrb[6].mxu0 %v967_v49 }
 0x272   :  { %6033 = vmatpush3.bf16.msra.mxu0 %v6030_v45  ;;  %5018 = vmatprep.mubr.f32.mxu0 %v1153_v52  ;;  %v1265_v45 = vld [vmem:[#allocation8 + $0x1e8] sm:$0xff]  ;;  %v6094_v52 = vpack.c.bf16 %v1349_v51, %v1348_v50  ;;  %v3936_v50 = vld [vmem:[%s8231_s7 + $0xf8] sm:$0xff] }
 0x273   :  { %6035 = vmatprep.subr.bf16.mxu0 %v6034_v48  ;;  %v6086_v46 = vpack.c.bf16 %v1265_v45, %v1264_v44  ;;  %v3932_v44 = vld [vmem:[%s8231_s7 + $0xd8] sm:$0xff] }
 0x276   :  { %6037 = vmatpush3.bf16.msra.mxu0 %v6034_v48  ;;  %v1267_v48 = vld [vmem:[#allocation8 + $0x1f8] sm:$0xff] }
 0x277   :  { %6039 = vmatprep.subr.bf16.mxu0 %v6038_v53  ;;  %v6090_v49 = vpack.c.bf16 %v1267_v48, %v1266_v47  ;;  %v3934_v47 = vld [vmem:[%s8231_s7 + $0xe8] sm:$0xff] }
 0x27a   :  { %6041 = vmatpush3.bf16.msra.mxu0 %v6038_v53  ;;  %v1350_v53 = vld [vmem:[#allocation8 + $0x210] sm:$0xff] }
 0x27b   :  { %6043 = vmatprep.subr.bf16.mxu0 %v6042_v61  ;;  %v6098_v55 = vpack.c.bf16 %v1351_v54, %v1350_v53  ;;  %v1457_v53 = vld [vmem:[%s8231_s7 + $0x8] sm:$0xff] }
 0x27e   :  { %6045 = vmatpush3.bf16.msra.mxu0 %v6042_v61  ;;  %v1355_v61 = vld [vmem:[#allocation8 + $0x238] sm:$0xff] }
 0x27f   :  { %6047 = vmatprep.subr.bf16.mxu0 %v6046_v5  ;;  %v6106_v62 = vpack.c.bf16 %v1355_v61, %v1354_v60  ;;  %v2397_v61 = vld [vmem:[%s8227_s3 + $0x20] sm:$0xff] }
 0x282   :  { %6049 = vmatpush3.bf16.msra.mxu0 %v6046_v5  ;;  %v6114_v5 = vpack.c.bf16 %v1359_v4, %v1358_v3  ;;  %v2401_v4 = vld [vmem:[%s8227_s3 + $0x40] sm:$0xff] }
 0x283   :  { %6051 = vmatprep.subr.bf16.mxu0 %v6050_v11 }
 0x286   :  { %6053 = vmatpush3.bf16.msra.mxu0 %v6050_v11  ;;  %v3987_v11 = vld [vmem:[%s8225_s1 + $0x18] sm:$0xff] }
 0x287   :  { %6055 = vmatprep.subr.bf16.mxu0 %v6054_v20  ;;  %v6286_v15 = vpack.c.bf16 %v3987_v11, %v3986_v10  ;;  %v2407_v11 = vld [vmem:[%s8227_s3 + $0x70] sm:$0xff] }
 0x28a   :  { %6057 = vmatpush3.bf16.msra.mxu0 %v6054_v20  ;;  %v1954_v20 = vld [vmem:[%s8225_s1] sm:$0xff] }
 0x28b   :  { %6059 = vmatprep.subr.bf16.mxu0 %v6058_v23  ;;  %v6290_v24 = vpack.c.bf16 %v1955_v21, %v1954_v20 }
 0x28e   :  { %6061 = vmatpush3.bf16.msra.mxu0 %v6058_v23  ;;  %v1962_v23 = vsel %vm74_vm0, %v1960_v16, %v1961_v19 }
 0x28f   :  { %6063 = vmatprep.subr.bf16.mxu0 %v6062_v26 }
 0x291   :  { %5019 = vmatmul.mubr.f32.vlgmr.msra.gmra.mrb[6].mxu0 %v1154_v30  ;;  %v3996_v30 = vld [vmem:[%s8225_s1 + $0x30] sm:$0xff] }
 0x292   :  { %6065 = vmatpush3.bf16.msra.mxu0 %v6062_v26  ;;  %5053 = vmatprep.mubr.f32.mxu0 %v1249_v33  ;;  %v3993_v26 = vld [vmem:[%s8225_s1 + $0x28] sm:$0xff]  ;;  %v6298_v33 = vpack.c.bf16 %v3997_v31, %v3996_v30 }
 0x293   :  { %6067 = vmatprep.subr.bf16.mxu0 %v6066_v29  ;;  %v6294_v27 = vpack.c.bf16 %v3993_v26, %v3992_v25  ;;  %v1459_v25 = vld [vmem:[%s8231_s7 + $0x18] sm:$0xff]  ;;  %v1461_v30 = vld [vmem:[%s8231_s7 + $0x28] sm:$0xff] }
 0x296   :  { %6069 = vmatpush3.bf16.msra.mxu0 %v6066_v29  ;;  %v2124_v29 = vrot.slane %v1953_v14, 2 }
 0x297   :  { %6071 = vmatprep.subr.bf16.mxu0 %v6070_v34 }
 0x298   :  { %v2125_v32 = vsel %vm240_vm2, %v2123_v28, %v2124_v29 }
 0x29a   :  { %6073 = vmatpush3.bf16.msra.mxu0 %v6070_v34  ;;  %v2209_v34 = vrot.slane %v1952_v13, 3 }
 0x29b   :  { %6075 = vmatprep.subr.bf16.mxu0 %v6074_v37 }
 0x29c   :  { %v2211_v38 = vsel %vm328_vm3, %v2209_v34, %v2210_v35  ;;  %v1463_v34 = vld [vmem:[%s8231_s7 + $0x38] sm:$0xff] }
 0x29e   :  { %6077 = vmatpush3.bf16.msra.mxu0 %v6074_v37  ;;  %v4001_v37 = vld [vmem:[%s8225_s1 + $0x48] sm:$0xff] }
 0x29f   :  { %6079 = vmatprep.subr.bf16.mxu0 %v6078_v40  ;;  %v6302_v39 = vpack.c.bf16 %v4001_v37, %v4000_v36  ;;  %v1464_v36 = vld [vmem:[%s8231_s7 + $0x40] sm:$0xff]  ;;  %v1465_v37 = vld [vmem:[%s8231_s7 + $0x48] sm:$0xff] }
 0x2a2   :  { %6081 = vmatpush3.bf16.msra.mxu0 %v6078_v40  ;;  %v2295_v40 = vrot.slane %v1952_v13, 4 }
 0x2a3   :  { %6083 = vmatprep.subr.bf16.mxu0 %v6082_v43 }
 0x2a4   :  { %v2297_v42 = vsel %vm416_vm4, %v2295_v40, %v2296_v41  ;;  %v1467_v40 = vld [vmem:[%s8231_s7 + $0x58] sm:$0xff] }
 0x2a6   :  { %6085 = vmatpush3.bf16.msra.mxu0 %v6082_v43  ;;  %v3931_v43 = vld [vmem:[%s8231_s7 + $0xd0] sm:$0xff] }
 0x2a7   :  { %6087 = vmatprep.subr.bf16.mxu0 %v6086_v46  ;;  %v6146_v45 = vpack.c.bf16 %v3932_v44, %v3931_v43  ;;  %v1469_v43 = vld [vmem:[%s8231_s7 + $0x68] sm:$0xff] }
 0x2a9   :  { %6147 = vmatprep.subr.bf16.mxu1 %v6146_v45 }
 0x2aa   :  { %6089 = vmatpush3.bf16.msra.mxu0 %v6086_v46  ;;  %6149 = vmatpush3.bf16.msra.mxu1 %v6146_v45  ;;  %v3933_v46 = vld [vmem:[%s8231_s7 + $0xe0] sm:$0xff]  ;;  %v1470_v45 = vld [vmem:[%s8231_s7 + $0x70] sm:$0xff] }
 0x2ab   :  { %6091 = vmatprep.subr.bf16.mxu0 %v6090_v49  ;;  %v6150_v48 = vpack.c.bf16 %v3934_v47, %v3933_v46  ;;  %v1471_v46 = vld [vmem:[%s8231_s7 + $0x78] sm:$0xff]  ;;  %v4004_v47 = vld [vmem:[%s8226_s2] ss:$0 sm:$0xff] }
 0x2ad   :  { %6151 = vmatprep.subr.bf16.mxu1 %v6150_v48 }
 0x2ae   :  { %6093 = vmatpush3.bf16.msra.mxu0 %v6090_v49  ;;  %v3935_v49 = vld [vmem:[%s8231_s7 + $0xf0] sm:$0xff]  ;;  %6153 = vmatpush3.bf16.msra.mxu1 %v6150_v48 }
 0x2af   :  { %6095 = vmatprep.subr.bf16.mxu0 %v6094_v52  ;;  %v6154_v51 = vpack.c.bf16 %v3936_v50, %v3935_v49  ;;  %v4037_v49 = vld [vmem:[%s8227_s3 + $0x180] sm:$0xff]  ;;  %v4038_v50 = vld [vmem:[%s8227_s3 + $0x188] sm:$0xff] }
 0x2b1   :  { %5054 = vmatmul.mubr.f32.vlgmr.msra.gmra.mrb[6].mxu0 %v1250_v56  ;;  %6155 = vmatprep.subr.bf16.mxu1 %v6154_v51  ;;  %v2394_v56 = vld [vmem:[%s8227_s3 + $0x8] sm:$0xff] }
 0x2b2   :  { %6097 = vmatpush3.bf16.msra.mxu0 %v6094_v52  ;;  %5088 = vmatprep.mubr.f32.mxu0 %v964_v18  ;;  %v6118_v18 = vpack.c.bf16 %v1361_v17, %v1360_v6  ;;  %v1456_v52 = vld [vmem:[%s8231_s7] sm:$0xff]  ;;  %v2403_v17 = vld [vmem:[%s8227_s3 + $0x50] sm:$0xff] }
 0x2b3   :  { %6099 = vmatprep.subr.bf16.mxu0 %v6098_v55  ;;  %6157 = vmatpush3.bf16.msra.mxu1 %v6154_v51  ;;  %v6158_v54 = vpack.c.bf16 %v1457_v53, %v1456_v52  ;;  %v6186_v51 = vpack.c.bf16 %v1471_v46, %v1470_v45  ;;  %v3953_v45 = vld [vmem:[%s8231_s7 + $0x180] sm:$0xff]  ;;  %v3954_v46 = vld [vmem:[%s8231_s7 + $0x188] sm:$0xff] }
 0x2b5   :  { %6159 = vmatprep.subr.bf16.mxu1 %v6158_v54 }
 0x2b6   :  { %6101 = vmatpush3.bf16.msra.mxu0 %v6098_v55  ;;  %v2393_v55 = vld [vmem:[%s8227_s3] sm:$0xff] }
 0x2b7   :  { %6103 = vmatprep.subr.bf16.mxu0 %v6102_v59  ;;  %v6331_v57 = vpack.c.bf16 %v2394_v56, %v2393_v55  ;;  %v3938_v55 = vld [vmem:[%s8231_s7 + $0x108] sm:$0xff] }
 0x2ba   :  { %6105 = vmatpush3.bf16.msra.mxu0 %v6102_v59  ;;  %v2396_v59 = vld [vmem:[%s8227_s3 + $0x18] sm:$0xff] }
 0x2bb   :  { %6107 = vmatprep.subr.bf16.mxu0 %v6106_v62  ;;  %v6334_v60 = vpack.c.bf16 %v2396_v59, %v2395_v58  ;;  %v6379_v58 = vpack.c.bf16 %v4038_v50, %v4037_v49  ;;  %v3955_v49 = vld [vmem:[%s8231_s7 + $0x190] sm:$0xff]  ;;  %v3956_v50 = vld [vmem:[%s8231_s7 + $0x198] sm:$0xff] }
 0x2be   :  { %6109 = vmatpush3.bf16.msra.mxu0 %v6106_v62  ;;  %v2398_v62 = vld [vmem:[%s8227_s3 + $0x28] sm:$0xff] }
 0x2bf   :  { %6111 = vmatprep.subr.bf16.mxu0 %v6110_v2  ;;  %v6337_v63 = vpack.c.bf16 %v2398_v62, %v2397_v61  ;;  %v4040_v61 = vld [vmem:[%s8227_s3 + $0x198] sm:$0xff] }
 0x2c2   :  { %6113 = vmatpush3.bf16.msra.mxu0 %v6110_v2  ;;  %v2400_v2 = vld [vmem:[%s8227_s3 + $0x38] sm:$0xff] }
 0x2c3   :  { %6115 = vmatprep.subr.bf16.mxu0 %v6114_v5  ;;  %v6340_v3 = vpack.c.bf16 %v2400_v2, %v2399_v1  ;;  %v3940_v1 = vld [vmem:[%s8231_s7 + $0x118] sm:$0xff] }
 0x2c6   :  { %6117 = vmatpush3.bf16.msra.mxu0 %v6114_v5  ;;  %v2402_v5 = vld [vmem:[%s8227_s3 + $0x48] sm:$0xff] }
 0x2c7   :  { %6119 = vmatprep.subr.bf16.mxu0 %v6118_v18  ;;  %v6343_v6 = vpack.c.bf16 %v2402_v5, %v2401_v4  ;;  %v4042_v4 = vld [vmem:[%s8227_s3 + $0x1a8] sm:$0xff] }
 0x2ca   :  { %6121 = vmatpush3.bf16.msra.mxu0 %v6118_v18  ;;  %v2404_v18 = vld [vmem:[%s8227_s3 + $0x58] sm:$0xff] }
 0x2cb   :  { %6123 = vmatprep.subr.bf16.mxu0 %v6122_v9  ;;  %v6346_v7 = vpack.c.bf16 %v2404_v18, %v2403_v17  ;;  %v3941_v17 = vld [vmem:[%s8231_s7 + $0x120] sm:$0xff]  ;;  %v3942_v18 = vld [vmem:[%s8231_s7 + $0x128] sm:$0xff] }
 0x2ce   :  { %6125 = vmatpush3.bf16.msra.mxu0 %v6122_v9  ;;  %v2406_v9 = vld [vmem:[%s8227_s3 + $0x68] sm:$0xff] }
 0x2cf   :  { %6287 = vmatprep.subr.bf16.mxu0 %v6286_v15  ;;  %v6349_v10 = vpack.c.bf16 %v2406_v9, %v2405_v8  ;;  %v4043_v9 = vld [vmem:[%s8227_s3 + $0x1b0] sm:$0xff] }
 0x2d1   :  { %5089 = vmatmul.mubr.f32.vlgmr.msra.gmra.mrb[6].mxu0 %v1346_v22 }
 0x2d2   :  { %6289 = vmatpush3.bf16.msra.mxu0 %v6286_v15  ;;  %5270 = vmatprep.mubr.msk.f32.mxu0 %vm78_vm1, %v1962_v23  ;;  %v3920_v15 = vld [vmem:[%s8230_s6] ss:$0 sm:$0xff] }
 0x2d3   :  { %6291 = vmatprep.subr.bf16.mxu0 %v6290_v24 }
 0x2d5   :  { %5271 = vmatmul.mubr.msk.f32.vlgmr.msra.gmra.mrb[8].mxu0 %vm78_vm1, %v1961_v19 }
 0x2d6   :  { %6293 = vmatpush3.bf16.msra.mxu0 %v6290_v24  ;;  %5277 = vmatprep.mubr.msk.f32.mxu0 %vm78_vm1, %v1952_v13  ;;  %v2408_v13 = vld [vmem:[%s8227_s3 + $0x78] sm:$0xff]  ;;  %v1458_v24 = vld [vmem:[%s8231_s7 + $0x10] sm:$0xff] }
 0x2d7   :  { %6295 = vmatprep.subr.bf16.mxu0 %v6294_v27  ;;  %v6162_v28 = vpack.c.bf16 %v1459_v25, %v1458_v24  ;;  %v3946_v24 = vld [vmem:[%s8231_s7 + $0x148] sm:$0xff] }
 0x2dd   :  { %5278 = vmatmul.mubr.msk.f32.vlgmr.msra.gmra.mrb[8].mxu0 %vm78_vm1, %v1953_v14  ;;  %v6352_v14 = vpack.c.bf16 %v2408_v13, %v2407_v11  ;;  %v6198_v11 = vpack.c.bf16 %v3942_v18, %v3941_v17  ;;  %v3943_v13 = vld [vmem:[%s8231_s7 + $0x130] sm:$0xff]  ;;  %v3968_v17 = vld [vmem:[%s8231_s7 + $0x1f8] sm:$0xff] }
 0x2de   :  { %6297 = vmatpush3.bf16.msra.mxu0 %v6294_v27  ;;  %5284 = vmatprep.mubr.msk.f32.mxu0 %vm78_vm1, %v2125_v32 }
 0x2df   :  { %6299 = vmatprep.subr.bf16.mxu0 %v6298_v33 }
 0x2e5   :  { %5285 = vmatmul.mubr.msk.f32.vlgmr.msra.gmra.mrb[8].mxu0 %vm78_vm1, %v2124_v29  ;;  %v1460_v29 = vld [vmem:[%s8231_s7 + $0x20] sm:$0xff] }
 0x2e6   :  { %6301 = vmatpush3.bf16.msra.mxu0 %v6298_v33  ;;  %5291 = vmatprep.mubr.msk.f32.mxu0 %vm78_vm1, %v2211_v38  ;;  %v6166_v32 = vpack.c.bf16 %v1461_v30, %v1460_v29  ;;  %v1462_v33 = vld [vmem:[%s8231_s7 + $0x30] sm:$0xff]  ;;  %v6174_v38 = vpack.c.bf16 %v1465_v37, %v1464_v36  ;;  %v3948_v30 = vld [vmem:[%s8231_s7 + $0x158] sm:$0xff]  ;;  %v3950_v36 = vld [vmem:[%s8231_s7 + $0x168] sm:$0xff] }
 0x2e7   :  { %6303 = vmatprep.subr.bf16.mxu0 %v6302_v39  ;;  %v3947_v29 = vld [vmem:[%s8231_s7 + $0x150] sm:$0xff] }
 0x2ed   :  { %5292 = vmatmul.mubr.msk.f32.vlgmr.msra.gmra.mrb[8].mxu0 %vm78_vm1, %v2210_v35  ;;  %v6170_v35 = vpack.c.bf16 %v1463_v34, %v1462_v33  ;;  %v4050_v33 = vld [vmem:[%s8227_s3 + $0x1e8] sm:$0xff]  ;;  %v6210_v34 = vpack.c.bf16 %v3948_v30, %v3947_v29  ;;  %v3981_v29 = vld [vmem:[%s8231_s7 + $0x260] sm:$0xff] }
 0x2ee   :  { %6305 = vmatpush3.bf16.msra.mxu0 %v6302_v39  ;;  %5298 = vmatprep.mubr.msk.f32.mxu0 %vm78_vm1, %v2297_v42  ;;  %v1466_v39 = vld [vmem:[%s8231_s7 + $0x50] sm:$0xff]  ;;  %v1468_v42 = vld [vmem:[%s8231_s7 + $0x60] sm:$0xff]  ;;  %v3982_v30 = vld [vmem:[%s8231_s7 + $0x268] sm:$0xff] }
 0x2ef   :  { %6330 = vmatprep.subr.bf16.mxu0 %v6894_v0  ;;  %v6182_v44 = vpack.c.bf16 %v1469_v43, %v1468_v42  ;;  %v3952_v42 = vld [vmem:[%s8231_s7 + $0x178] sm:$0xff] }
 0x2f5   :  { %5299 = vmatmul.mubr.msk.f32.vlgmr.msra.gmra.mrb[8].mxu0 %vm78_vm1, %v2296_v41  ;;  %v6178_v41 = vpack.c.bf16 %v1467_v40, %v1466_v39  ;;  %v4052_v39 = vld [vmem:[%s8227_s3 + $0x1f8] sm:$0xff] }
 0x2f6   :  { %5368 = vmatprep.mubr.msk.f32.mxu0 %vm6895_vm5, %v6896_v12  ;;  %6332 = vmatpush3.bf16.msra.mxu0 %v6331_v57 }
 0x2f7   :  { %6333 = vmatprep.subr.bf16.mxu0 %v6894_v0 }
 0x2fa   :  { %6335 = vmatpush3.bf16.msra.mxu0 %v6334_v60  ;;  %v4039_v60 = vld [vmem:[%s8227_s3 + $0x190] sm:$0xff] }
 0x2fb   :  { %6336 = vmatprep.subr.bf16.mxu0 %v6894_v0  ;;  %v6382_v2 = vpack.c.bf16 %v4040_v61, %v4039_v60  ;;  %v3961_v60 = vld [vmem:[%s8231_s7 + $0x1c0] sm:$0xff]  ;;  %v3962_v61 = vld [vmem:[%s8231_s7 + $0x1c8] sm:$0xff] }
 0x2fe   :  { %6338 = vmatpush3.bf16.msra.mxu0 %v6337_v63  ;;  %v3939_v63 = vld [vmem:[%s8231_s7 + $0x110] sm:$0xff] }
 0x2ff   :  { %6339 = vmatprep.subr.bf16.mxu0 %v6894_v0  ;;  %v6194_v5 = vpack.c.bf16 %v3940_v1, %v3939_v63  ;;  %v3963_v63 = vld [vmem:[%s8231_s7 + $0x1d0] sm:$0xff]  ;;  %v3964_v1 = vld [vmem:[%s8231_s7 + $0x1d8] sm:$0xff] }
 0x302   :  { %6341 = vmatpush3.bf16.msra.mxu0 %v6340_v3  ;;  %v4041_v3 = vld [vmem:[%s8227_s3 + $0x1a0] sm:$0xff] }
 0x303   :  { %6342 = vmatprep.subr.bf16.mxu0 %v6894_v0  ;;  %v6385_v8 = vpack.c.bf16 %v4042_v4, %v4041_v3  ;;  %v3965_v3 = vld [vmem:[%s8231_s7 + $0x1e0] sm:$0xff]  ;;  %v3966_v4 = vld [vmem:[%s8231_s7 + $0x1e8] sm:$0xff] }
 0x306   :  { %6344 = vmatpush3.bf16.msra.mxu0 %v6343_v6 }
 0x307   :  { %6345 = vmatprep.subr.bf16.mxu0 %v6894_v0 }
 0x30a   :  { %6347 = vmatpush3.bf16.msra.mxu0 %v6346_v7 }
 0x30b   :  { %6348 = vmatprep.subr.bf16.mxu0 %v6894_v0 }
 0x30e   :  { %6350 = vmatpush3.bf16.msra.mxu0 %v6349_v10  ;;  %v4044_v10 = vld [vmem:[%s8227_s3 + $0x1b8] sm:$0xff] }
 0x30f   :  { %6351 = vmatprep.subr.bf16.mxu0 %v6894_v0 }
 0x312   :  { %6353 = vmatpush3.bf16.msra.mxu0 %v6352_v14  ;;  %v3944_v14 = vld [vmem:[%s8231_s7 + $0x138] sm:$0xff] }
 0x313   :  { %6378 = vmatprep.subr.bf16.mxu0 %v6894_v0 }
 0x3a4   :  { %v5090_v16 = vpop.f32.mrb[6].mxu0 }
 0x3a5   :  { %v1449_v19 = vadd.f32 %v5090_v16, %v3920_v15  ;;  %v1430_v20 = vpop.f32.mrb[7].mxu0  ;;  %v4045_v16 = vld [vmem:[%s8227_s3 + $0x1c0] sm:$0xff] }
 0x3a6   :  { %v7503_v21 = vadd.f32 %v3920_v15, %v1430_v20  ;;  %v6388_v15 = vpack.c.bf16 %v4044_v10, %v4043_v9  ;;  %v6202_v20 = vpack.c.bf16 %v3944_v14, %v3943_v13  ;;  %v3971_v10 = vld [vmem:[%s8231_s7 + $0x210] sm:$0xff] }
 0x3a7   :  { %v1451_v22 = vmax.f32 %v1449_v19, 0.0  ;;  %v4046_v19 = vld [vmem:[%s8227_s3 + $0x1c8] sm:$0xff] }
 0x3a8   :  { %v1450_v23 = vmax.f32 %v7503_v21, 0.0  ;;  %v6391_v25 = vpack.c.bf16 %v4046_v19, %v4045_v16  ;;  %v3974_v16 = vld [vmem:[%s8231_s7 + $0x228] sm:$0xff] }
 0x3a9   :  { %1453 = vst [vmem:[#allocation4 + $0xc] sm:$0xf] %v1451_v22  ;;  %v3945_v22 = vld [vmem:[%s8231_s7 + $0x140] sm:$0xff]  ;;  %v3978_v21 = vld [vmem:[%s8231_s7 + $0x248] sm:$0xff] }
 0x3aa   :  { %1452 = vst [vmem:[#allocation4 + $0x4] sm:$0xff] %v1450_v23 }
 0x3b1   :  { %v1472_v26 = vld [vmem:[#allocation4 + $0x1] sm:$0xff]  ;;  %v1473_v27 = vld [vmem:[#allocation4 + $0x9] sm:$0xff] }
 0x3b2   :  { %5123 = vmatprep.mubr.f32.mxu1 %v1472_v26  ;;  %v1454_v31 = vld [vmem:[#allocation4] sm:$0xff]  ;;  %v1455_v6 = vld [vmem:[#allocation4 + $0x8] sm:$0xff]  ;;  %v4047_v26 = vld [vmem:[%s8227_s3 + $0x1d0] sm:$0xff] }
 0x3b3   :  { %5124 = vmatmul.mubr.f32.vlgmr.msra.gmra.mrb[6].mxu1 %v1473_v27  ;;  %v1641_v7 = vld [vmem:[#allocation4 + $0x2] sm:$0xff]  ;;  %v4048_v27 = vld [vmem:[%s8227_s3 + $0x1d8] sm:$0xff]  ;;  %v1738_v14 = vld [vmem:[#allocation4 + $0xb] sm:$0xff] }
 0x3b4   :  { %6161 = vmatpush3.bf16.msra.mxu1 %v6158_v54  ;;  %5158 = vmatprep.mubr.f32.mxu1 %v1454_v31  ;;  %v3937_v54 = vld [vmem:[%s8231_s7 + $0x100] sm:$0xff]  ;;  %v6394_v31 = vpack.c.bf16 %v4048_v27, %v4047_v26  ;;  %v3979_v26 = vld [vmem:[%s8231_s7 + $0x250] sm:$0xff]  ;;  %v3980_v27 = vld [vmem:[%s8231_s7 + $0x258] sm:$0xff] }
 0x3b5   :  { %6163 = vmatprep.subr.bf16.mxu1 %v6162_v28  ;;  %v6190_v62 = vpack.c.bf16 %v3938_v55, %v3937_v54  ;;  %v3958_v54 = vld [vmem:[%s8231_s7 + $0x1a8] sm:$0xff] }
 0x3b6   :  { %v1737_v55 = vld [vmem:[#allocation4 + $0x3] sm:$0xff] }
 0x3b8   :  { %6165 = vmatpush3.bf16.msra.mxu1 %v6162_v28  ;;  %v6206_v28 = vpack.c.bf16 %v3946_v24, %v3945_v22  ;;  %v3976_v22 = vld [vmem:[%s8231_s7 + $0x238] sm:$0xff] }
 0x3b9   :  { %6167 = vmatprep.subr.bf16.mxu1 %v6166_v32 }
 0x3bc   :  { %6169 = vmatpush3.bf16.msra.mxu1 %v6166_v32  ;;  %v4049_v32 = vld [vmem:[%s8227_s3 + $0x1e0] sm:$0xff] }
 0x3bd   :  { %6171 = vmatprep.subr.bf16.mxu1 %v6170_v35  ;;  %v6397_v37 = vpack.c.bf16 %v4050_v33, %v4049_v32  ;;  %v3983_v32 = vld [vmem:[%s8231_s7 + $0x270] sm:$0xff]  ;;  %v3984_v33 = vld [vmem:[%s8231_s7 + $0x278] sm:$0xff] }
 0x3c0   :  { %6173 = vmatpush3.bf16.msra.mxu1 %v6170_v35  ;;  %v3949_v35 = vld [vmem:[%s8231_s7 + $0x160] sm:$0xff] }
 0x3c1   :  { %6175 = vmatprep.subr.bf16.mxu1 %v6174_v38  ;;  %v6214_v40 = vpack.c.bf16 %v3950_v36, %v3949_v35  ;;  %v4005_v35 = vld [vmem:[%s8227_s3 + $0x80] sm:$0xff]  ;;  %v4006_v36 = vld [vmem:[%s8227_s3 + $0x88] sm:$0xff] }
 0x3c4   :  { %6177 = vmatpush3.bf16.msra.mxu1 %v6174_v38  ;;  %v4051_v38 = vld [vmem:[%s8227_s3 + $0x1f0] sm:$0xff] }
 0x3c5   :  { %6179 = vmatprep.subr.bf16.mxu1 %v6178_v41  ;;  %v6400_v43 = vpack.c.bf16 %v4052_v39, %v4051_v38  ;;  %v4007_v38 = vld [vmem:[%s8227_s3 + $0x90] sm:$0xff]  ;;  %v4008_v39 = vld [vmem:[%s8227_s3 + $0x98] sm:$0xff] }
 0x3c8   :  { %6181 = vmatpush3.bf16.msra.mxu1 %v6178_v41  ;;  %v5300_v48 = vpop.f32.mrb[8].mxu0  ;;  %v3951_v41 = vld [vmem:[%s8231_s7 + $0x170] sm:$0xff] }
 0x3c9   :  { %6183 = vmatprep.subr.bf16.mxu1 %v6182_v44  ;;  %v2387_v52 = vadd.f32 %v5300_v48, %v4004_v47  ;;  %v2368_v53 = vpop.f32.mrb[9].mxu0  ;;  %v6222_v48 = vpack.c.bf16 %v3954_v46, %v3953_v45  ;;  %v4011_v45 = vld [vmem:[%s8227_s3 + $0xb0] sm:$0xff]  ;;  %v4012_v46 = vld [vmem:[%s8227_s3 + $0xb8] sm:$0xff] }
 0x3ca   :  { %v2386_v56 = vadd.f32 %v4004_v47, %v2368_v53  ;;  %v3957_v53 = vld [vmem:[%s8231_s7 + $0x1a0] sm:$0xff] }
 0x3cb   :  { %v2389_v57 = vmax.f32 %v2387_v52, 0.0  ;;  %v1642_v52 = vld [vmem:[#allocation4 + $0xa] sm:$0xff] }
 0x3cc   :  { %6185 = vmatpush3.bf16.msra.mxu1 %v6182_v44  ;;  %v2388_v59 = vmax.f32 %v2386_v56, 0.0  ;;  %v6218_v44 = vpack.c.bf16 %v3952_v42, %v3951_v41  ;;  %v6230_v56 = vpack.c.bf16 %v3958_v54, %v3957_v53  ;;  %v6310_v41 = vpack.c.bf16 %v4008_v39, %v4007_v38  ;;  %v4009_v42 = vld [vmem:[%s8227_s3 + $0xa0] sm:$0xff]  ;;  %v4063_v38 = vld [vmem:[%s8227_s3 + $0x250] sm:$0xff]  ;;  %v4064_v39 = vld [vmem:[%s8227_s3 + $0x258] sm:$0xff] }
 0x3cd   :  { %6187 = vmatprep.subr.bf16.mxu1 %v6186_v51  ;;  %2391 = vst [vmem:[#allocation2 + $0x8] sm:$0xf] %v2389_v57  ;;  %v3959_v57 = vld [vmem:[%s8231_s7 + $0x1b0] sm:$0xff]  ;;  %v4017_v54 = vld [vmem:[%s8227_s3 + $0xe0] sm:$0xff] }
 0x3ce   :  { %2390 = vst [vmem:[#allocation2] sm:$0xff] %v2388_v59  ;;  %5369 = vmatmul.mubr.f32.vlgmr.msra.gmra.mrb[10].mxu0 %v2388_v59 }
 0x3cf   :  { %6380 = vmatpush3.bf16.msra.mxu0 %v6379_v58  ;;  %5438 = vmatprep.mubr.msk.f32.mxu0 %vm6895_vm5, %v6896_v12  ;;  %v3960_v58 = vld [vmem:[%s8231_s7 + $0x1b8] sm:$0xff] }
 0x3d0   :  { %6189 = vmatpush3.bf16.msra.mxu1 %v6186_v51  ;;  %6381 = vmatprep.subr.bf16.mxu0 %v6894_v0  ;;  %v6226_v51 = vpack.c.bf16 %v3956_v50, %v3955_v49  ;;  %v6234_v59 = vpack.c.bf16 %v3960_v58, %v3959_v57  ;;  %v4014_v49 = vld [vmem:[%s8227_s3 + $0xc8] sm:$0xff]  ;;  %v4019_v57 = vld [vmem:[%s8227_s3 + $0xf0] sm:$0xff]  ;;  %v4020_v58 = vld [vmem:[%s8227_s3 + $0xf8] sm:$0xff] }
 0x3d1   :  { %6191 = vmatprep.subr.bf16.mxu1 %v6190_v62 }
 0x3d3   :  { %5159 = vmatmul.mubr.f32.vlgmr.msra.gmra.mrb[6].mxu1 %v1455_v6  ;;  %6383 = vmatpush3.bf16.msra.mxu0 %v6382_v2  ;;  %v6242_v2 = vpack.c.bf16 %v3964_v1, %v3963_v63  ;;  %v3967_v6 = vld [vmem:[%s8231_s7 + $0x1f0] sm:$0xff]  ;;  %v4024_v1 = vld [vmem:[%s8227_s3 + $0x118] sm:$0xff] }
 0x3d4   :  { %6193 = vmatpush3.bf16.msra.mxu1 %v6190_v62  ;;  %5193 = vmatprep.mubr.f32.mxu1 %v1641_v7  ;;  %v6238_v62 = vpack.c.bf16 %v3962_v61, %v3961_v60  ;;  %v6250_v18 = vpack.c.bf16 %v3968_v17, %v3967_v6  ;;  %v3969_v7 = vld [vmem:[%s8231_s7 + $0x200] sm:$0xff]  ;;  %v4022_v61 = vld [vmem:[%s8227_s3 + $0x108] sm:$0xff]  ;;  %v4023_v63 = vld [vmem:[%s8227_s3 + $0x110] sm:$0xff] }
 0x3d5   :  { %6195 = vmatprep.subr.bf16.mxu1 %v6194_v5  ;;  %6384 = vmatprep.subr.bf16.mxu0 %v6894_v0  ;;  %v2654_v47 = vld [vmem:[#allocation2 + $0x3] sm:$0xff]  ;;  %v4027_v17 = vld [vmem:[%s8227_s3 + $0x130] sm:$0xff] }
 0x3d6   :  { %v4021_v60 = vld [vmem:[%s8227_s3 + $0x100] sm:$0xff] }
 0x3d7   :  { %6386 = vmatpush3.bf16.msra.mxu0 %v6385_v8  ;;  %v3970_v8 = vld [vmem:[%s8231_s7 + $0x208] sm:$0xff] }
 0x3d8   :  { %6197 = vmatpush3.bf16.msra.mxu1 %v6194_v5  ;;  %6387 = vmatprep.subr.bf16.mxu0 %v6894_v0  ;;  %v6246_v5 = vpack.c.bf16 %v3966_v4, %v3965_v3  ;;  %v6254_v9 = vpack.c.bf16 %v3970_v8, %v3969_v7  ;;  %v6358_v3 = vpack.c.bf16 %v4024_v1, %v4023_v63  ;;  %v4025_v4 = vld [vmem:[%s8227_s3 + $0x120] sm:$0xff]  ;;  %v2868_v63 = vld [vmem:[#allocation8 + $0xc0] sm:$0xff] }
 0x3d9   :  { %6199 = vmatprep.subr.bf16.mxu1 %v6198_v11  ;;  %v4029_v8 = vld [vmem:[%s8227_s3 + $0x140] sm:$0xff] }
 0x3da   :  { %v2869_v1 = vld [vmem:[#allocation8 + $0xc8] sm:$0xff] }
 0x3db   :  { %6389 = vmatpush3.bf16.msra.mxu0 %v6388_v15  ;;  %v3973_v15 = vld [vmem:[%s8231_s7 + $0x220] sm:$0xff] }
 0x3dc   :  { %6201 = vmatpush3.bf16.msra.mxu1 %v6198_v11  ;;  %6390 = vmatprep.subr.bf16.mxu0 %v6894_v0  ;;  %v3972_v11 = vld [vmem:[%s8231_s7 + $0x218] sm:$0xff]  ;;  %v6262_v19 = vpack.c.bf16 %v3974_v16, %v3973_v15  ;;  %v4033_v15 = vld [vmem:[%s8227_s3 + $0x160] sm:$0xff]  ;;  %v4034_v16 = vld [vmem:[%s8227_s3 + $0x168] sm:$0xff] }
 0x3dd   :  { %6203 = vmatprep.subr.bf16.mxu1 %v6202_v20  ;;  %v6258_v13 = vpack.c.bf16 %v3972_v11, %v3971_v10  ;;  %v4031_v11 = vld [vmem:[%s8227_s3 + $0x150] sm:$0xff] }
 0x3df   :  { %6392 = vmatpush3.bf16.msra.mxu0 %v6391_v25  ;;  %v3977_v25 = vld [vmem:[%s8231_s7 + $0x240] sm:$0xff] }
 0x3e0   :  { %6205 = vmatpush3.bf16.msra.mxu1 %v6202_v20  ;;  %6393 = vmatprep.subr.bf16.mxu0 %v6894_v0  ;;  %v3975_v20 = vld [vmem:[%s8231_s7 + $0x230] sm:$0xff] }
 0x3e1   :  { %6207 = vmatprep.subr.bf16.mxu1 %v6206_v28  ;;  %v6266_v24 = vpack.c.bf16 %v3976_v22, %v3975_v20  ;;  %v4035_v20 = vld [vmem:[%s8227_s3 + $0x170] sm:$0xff]  ;;  %v4036_v22 = vld [vmem:[%s8227_s3 + $0x178] sm:$0xff] }
 0x3e3   :  { %6395 = vmatpush3.bf16.msra.mxu0 %v6394_v31  ;;  %v6278_v31 = vpack.c.bf16 %v3982_v30, %v3981_v29  ;;  %v4057_v30 = vld [vmem:[%s8227_s3 + $0x220] sm:$0xff] }
 0x3e4   :  { %6209 = vmatpush3.bf16.msra.mxu1 %v6206_v28  ;;  %6396 = vmatprep.subr.bf16.mxu0 %v6894_v0  ;;  %v6274_v28 = vpack.c.bf16 %v3980_v27, %v3979_v26  ;;  %v4055_v26 = vld [vmem:[%s8227_s3 + $0x210] sm:$0xff]  ;;  %v4056_v27 = vld [vmem:[%s8227_s3 + $0x218] sm:$0xff] }
 0x3e5   :  { %6211 = vmatprep.subr.bf16.mxu1 %v6210_v34  ;;  %v6406_v29 = vpack.c.bf16 %v4056_v27, %v4055_v26 }
 0x3e7   :  { %6398 = vmatpush3.bf16.msra.mxu0 %v6397_v37  ;;  %v6307_v37 = vpack.c.bf16 %v4006_v36, %v4005_v35  ;;  %v4061_v35 = vld [vmem:[%s8227_s3 + $0x240] sm:$0xff]  ;;  %v4062_v36 = vld [vmem:[%s8227_s3 + $0x248] sm:$0xff] }
 0x3e8   :  { %6213 = vmatpush3.bf16.msra.mxu1 %v6210_v34  ;;  %6399 = vmatprep.subr.bf16.mxu0 %v6894_v0  ;;  %v6282_v34 = vpack.c.bf16 %v3984_v33, %v3983_v32  ;;  %v4059_v33 = vld [vmem:[%s8227_s3 + $0x230] sm:$0xff] }
 0x3e9   :  { %6215 = vmatprep.subr.bf16.mxu1 %v6214_v40 }
 0x3eb   :  { %6401 = vmatpush3.bf16.msra.mxu0 %v6400_v43  ;;  %v4010_v43 = vld [vmem:[%s8227_s3 + $0xa8] sm:$0xff] }
 0x3ec   :  { %6217 = vmatpush3.bf16.msra.mxu1 %v6214_v40  ;;  %v1834_v40 = vld [vmem:[#allocation4 + $0xc] sm:$0xff] }
 0x3ed   :  { %6219 = vmatprep.subr.bf16.mxu1 %v6218_v44 }
 0x3ee   :  { %5439 = vmatmul.mubr.f32.vlgmr.msra.gmra.mrb[12].mxu0 %v2654_v47  ;;  %v6316_v47 = vpack.c.bf16 %v4012_v46, %v4011_v45  ;;  %v4068_v45 = vld [vmem:[%s8227_s3 + $0x278] sm:$0xff] }
 0x3f0   :  { %6221 = vmatpush3.bf16.msra.mxu1 %v6218_v44  ;;  %v6313_v44 = vpack.c.bf16 %v4010_v43, %v4009_v42  ;;  %v4066_v42 = vld [vmem:[%s8227_s3 + $0x268] sm:$0xff] }
 0x3f1   :  { %6223 = vmatprep.subr.bf16.mxu1 %v6222_v48 }
 0x3f3   :  { %5194 = vmatmul.mubr.f32.vlgmr.msra.gmra.mrb[6].mxu1 %v1642_v52  ;;  %v4016_v52 = vld [vmem:[%s8227_s3 + $0xd8] sm:$0xff] }
 0x3f4   :  { %6225 = vmatpush3.bf16.msra.mxu1 %v6222_v48  ;;  %5228 = vmatprep.mubr.f32.mxu1 %v1737_v55  ;;  %v4013_v48 = vld [vmem:[%s8227_s3 + $0xc0] sm:$0xff]  ;;  %v4018_v55 = vld [vmem:[%s8227_s3 + $0xe8] sm:$0xff] }
 0x3f5   :  { %6227 = vmatprep.subr.bf16.mxu1 %v6226_v51  ;;  %v6319_v50 = vpack.c.bf16 %v4014_v49, %v4013_v48 }
 0x3f8   :  { %6229 = vmatpush3.bf16.msra.mxu1 %v6226_v51  ;;  %v4015_v51 = vld [vmem:[%s8227_s3 + $0xd0] sm:$0xff] }
 0x3f9   :  { %6231 = vmatprep.subr.bf16.mxu1 %v6230_v56  ;;  %v6322_v53 = vpack.c.bf16 %v4016_v52, %v4015_v51  ;;  %v2860_v52 = vld [vmem:[#allocation8 + $0x80] sm:$0xff] }
 0x3fc   :  { %6233 = vmatpush3.bf16.msra.mxu1 %v6230_v56  ;;  %v6325_v56 = vpack.c.bf16 %v4018_v55, %v4017_v54  ;;  %v2862_v54 = vld [vmem:[#allocation8 + $0x90] sm:$0xff] }
 0x3fd   :  { %6235 = vmatprep.subr.bf16.mxu1 %v6234_v59 }
 0x400   :  { %6237 = vmatpush3.bf16.msra.mxu1 %v6234_v59  ;;  %v6328_v59 = vpack.c.bf16 %v4020_v58, %v4019_v57  ;;  %v2864_v58 = vld [vmem:[#allocation8 + $0xa0] sm:$0xff] }
 0x401   :  { %6239 = vmatprep.subr.bf16.mxu1 %v6238_v62 }
 0x404   :  { %6241 = vmatpush3.bf16.msra.mxu1 %v6238_v62  ;;  %v6355_v62 = vpack.c.bf16 %v4022_v61, %v4021_v60  ;;  %v2866_v60 = vld [vmem:[#allocation8 + $0xb0] sm:$0xff]  ;;  %v2867_v61 = vld [vmem:[#allocation8 + $0xb8] sm:$0xff] }
 0x405   :  { %6243 = vmatprep.subr.bf16.mxu1 %v6242_v2 }
 0x408   :  { %6245 = vmatpush3.bf16.msra.mxu1 %v6242_v2  ;;  %v2409_v2 = vld [vmem:[#allocation2 + $0x1] sm:$0xff] }
 0x409   :  { %6247 = vmatprep.subr.bf16.mxu1 %v6246_v5 }
 0x40c   :  { %6249 = vmatpush3.bf16.msra.mxu1 %v6246_v5  ;;  %v4026_v5 = vld [vmem:[%s8227_s3 + $0x128] sm:$0xff] }
 0x40d   :  { %6251 = vmatprep.subr.bf16.mxu1 %v6250_v18  ;;  %v6361_v6 = vpack.c.bf16 %v4026_v5, %v4025_v4  ;;  %v2871_v4 = vld [vmem:[#allocation8 + $0xd8] sm:$0xff] }
 0x410   :  { %6253 = vmatpush3.bf16.msra.mxu1 %v6250_v18  ;;  %v4028_v18 = vld [vmem:[%s8227_s3 + $0x138] sm:$0xff] }
 0x411   :  { %6255 = vmatprep.subr.bf16.mxu1 %v6254_v9  ;;  %v6364_v7 = vpack.c.bf16 %v4028_v18, %v4027_v17  ;;  %v2873_v17 = vld [vmem:[#allocation8 + $0xe8] sm:$0xff] }
 0x413   :  { %5229 = vmatmul.mubr.f32.vlgmr.msra.gmra.mrb[6].mxu1 %v1738_v14 }
 0x414   :  { %6257 = vmatpush3.bf16.msra.mxu1 %v6254_v9  ;;  %5263 = vmatprep.mubr.f32.mxu1 %v1450_v23  ;;  %v6270_v23 = vpack.c.bf16 %v3978_v21, %v3977_v25  ;;  %v4030_v9 = vld [vmem:[%s8227_s3 + $0x148] sm:$0xff]  ;;  %v4053_v25 = vld [vmem:[%s8227_s3 + $0x200] sm:$0xff] }
 0x415   :  { %6259 = vmatprep.subr.bf16.mxu1 %v6258_v13  ;;  %v6367_v10 = vpack.c.bf16 %v4030_v9, %v4029_v8  ;;  %v4054_v21 = vld [vmem:[%s8227_s3 + $0x208] sm:$0xff]  ;;  %v2875_v8 = vld [vmem:[#allocation8 + $0xf8] sm:$0xff] }
 0x418   :  { %6261 = vmatpush3.bf16.msra.mxu1 %v6258_v13  ;;  %v4032_v13 = vld [vmem:[%s8227_s3 + $0x158] sm:$0xff] }
 0x419   :  { %6263 = vmatprep.subr.bf16.mxu1 %v6262_v19  ;;  %v6370_v14 = vpack.c.bf16 %v4032_v13, %v4031_v11  ;;  %v2843_v11 = vld [vmem:[#allocation8 + $0x8] sm:$0xff] }
 0x41c   :  { %6265 = vmatpush3.bf16.msra.mxu1 %v6262_v19  ;;  %v6373_v19 = vpack.c.bf16 %v4034_v16, %v4033_v15 }
 0x41d   :  { %6267 = vmatprep.subr.bf16.mxu1 %v6266_v24 }
 0x420   :  { %6269 = vmatpush3.bf16.msra.mxu1 %v6266_v24  ;;  %v6376_v24 = vpack.c.bf16 %v4036_v22, %v4035_v20 }
 0x421   :  { %6271 = vmatprep.subr.bf16.mxu1 %v6270_v23 }
 0x424   :  { %6273 = vmatpush3.bf16.msra.mxu1 %v6270_v23  ;;  %v6403_v23 = vpack.c.bf16 %v4054_v21, %v4053_v25 }
 0x425   :  { %6275 = vmatprep.subr.bf16.mxu1 %v6274_v28 }
 0x428   :  { %6277 = vmatpush3.bf16.msra.mxu1 %v6274_v28  ;;  %v2566_v28 = vld [vmem:[#allocation2 + $0x2] sm:$0xff] }
 0x429   :  { %6279 = vmatprep.subr.bf16.mxu1 %v6278_v31 }
 0x42c   :  { %6281 = vmatpush3.bf16.msra.mxu1 %v6278_v31  ;;  %v4058_v31 = vld [vmem:[%s8227_s3 + $0x228] sm:$0xff] }
 0x42d   :  { %6283 = vmatprep.subr.bf16.mxu1 %v6282_v34  ;;  %v6409_v32 = vpack.c.bf16 %v4058_v31, %v4057_v30 }
 0x430   :  { %6285 = vmatpush3.bf16.msra.mxu1 %v6282_v34 }
 0x431   :  { %6306 = vmatprep.subr.bf16.mxu1 %v6894_v0 }
 0x433   :  { %5264 = vmatmul.mubr.f32.vlgmr.msra.gmra.mrb[6].mxu1 %v1834_v40  ;;  %v6418_v40 = vpack.c.bf16 %v4064_v39, %v4063_v38 }
 0x434   :  { %6308 = vmatpush3.bf16.msra.mxu1 %v6307_v37  ;;  %5333 = vmatprep.mubr.msk.f32.mxu1 %vm6895_vm5, %v6896_v12  ;;  %v6415_v37 = vpack.c.bf16 %v4062_v36, %v4061_v35 }
 0x435   :  { %6309 = vmatprep.subr.bf16.mxu1 %v6894_v0 }
 0x438   :  { %6311 = vmatpush3.bf16.msra.mxu1 %v6310_v41  ;;  %v4065_v41 = vld [vmem:[%s8227_s3 + $0x260] sm:$0xff] }
 0x439   :  { %6312 = vmatprep.subr.bf16.mxu1 %v6894_v0  ;;  %v6421_v43 = vpack.c.bf16 %v4066_v42, %v4065_v41 }
 0x43c   :  { %6314 = vmatpush3.bf16.msra.mxu1 %v6313_v44  ;;  %v4067_v44 = vld [vmem:[%s8227_s3 + $0x270] sm:$0xff] }
 0x43d   :  { %6315 = vmatprep.subr.bf16.mxu1 %v6894_v0  ;;  %v6424_v46 = vpack.c.bf16 %v4068_v45, %v4067_v44  ;;  %v2844_v45 = vld [vmem:[#allocation8 + $0x10] sm:$0xff] }
 0x440   :  { %6317 = vmatpush3.bf16.msra.mxu1 %v6316_v47  ;;  %v2742_v47 = vld [vmem:[#allocation2 + $0x4] sm:$0xff] }
 0x441   :  { %6318 = vmatprep.subr.bf16.mxu1 %v6894_v0 }
 0x444   :  { %6320 = vmatpush3.bf16.msra.mxu1 %v6319_v50 }
 0x445   :  { %6321 = vmatprep.subr.bf16.mxu1 %v6894_v0 }
 0x448   :  { %6323 = vmatpush3.bf16.msra.mxu1 %v6322_v53  ;;  %v2861_v53 = vld [vmem:[#allocation8 + $0x88] sm:$0xff] }
 0x449   :  { %6324 = vmatprep.subr.bf16.mxu1 %v6894_v0  ;;  %v6426_v55 = vpack.c.bf16 %v2861_v53, %v2860_v52  ;;  %v4071_v53 = vld [vmem:[%s8231_s7 + $0x80] sm:$0xff] }
 0x44b   :  { %6427 = vmatprep.subr.bf16.mxu0 %v6426_v55 }
 0x44c   :  { %6326 = vmatpush3.bf16.msra.mxu1 %v6325_v56  ;;  %v2863_v56 = vld [vmem:[#allocation8 + $0x98] sm:$0xff]  ;;  %6429 = vmatpush3.bf16.msra.mxu0 %v6426_v55 }
 0x44d   :  { %6327 = vmatprep.subr.bf16.mxu1 %v6894_v0  ;;  %v6430_v57 = vpack.c.bf16 %v2863_v56, %v2862_v54  ;;  %v4072_v54 = vld [vmem:[%s8231_s7 + $0x88] sm:$0xff]  ;;  %v4073_v55 = vld [vmem:[%s8231_s7 + $0x90] sm:$0xff]  ;;  %v4074_v56 = vld [vmem:[%s8231_s7 + $0x98] sm:$0xff] }
 0x44f   :  { %6431 = vmatprep.subr.bf16.mxu0 %v6430_v57 }
 0x450   :  { %6329 = vmatpush3.bf16.msra.mxu1 %v6328_v59  ;;  %v2865_v59 = vld [vmem:[#allocation8 + $0xa8] sm:$0xff]  ;;  %6433 = vmatpush3.bf16.msra.mxu0 %v6430_v57 }
 0x451   :  { %6354 = vmatprep.subr.bf16.mxu1 %v6894_v0 }
 0x453   :  { %5334 = vmatmul.mubr.f32.vlgmr.msra.gmra.mrb[8].mxu1 %v2409_v2  ;;  %v6442_v2 = vpack.c.bf16 %v2869_v1, %v2868_v63  ;;  %v2850_v1 = vld [vmem:[#allocation8 + $0x40] sm:$0xff] }
 0x454   :  { %6356 = vmatpush3.bf16.msra.mxu1 %v6355_v62  ;;  %5403 = vmatprep.mubr.msk.f32.mxu1 %vm6895_vm5, %v6896_v12  ;;  %v6438_v62 = vpack.c.bf16 %v2867_v61, %v2866_v60  ;;  %v2849_v60 = vld [vmem:[#allocation8 + $0x38] sm:$0xff]  ;;  %v4075_v61 = vld [vmem:[%s8231_s7 + $0xa0] sm:$0xff] }
 0x455   :  { %6357 = vmatprep.subr.bf16.mxu1 %v6894_v0 }
 0x458   :  { %6359 = vmatpush3.bf16.msra.mxu1 %v6358_v3  ;;  %v2870_v3 = vld [vmem:[#allocation8 + $0xd0] sm:$0xff] }
 0x459   :  { %6360 = vmatprep.subr.bf16.mxu1 %v6894_v0  ;;  %v6446_v5 = vpack.c.bf16 %v2871_v4, %v2870_v3  ;;  %v2851_v3 = vld [vmem:[#allocation8 + $0x48] sm:$0xff]  ;;  %v4077_v4 = vld [vmem:[%s8231_s7 + $0xb0] sm:$0xff] }
 0x45c   :  { %6362 = vmatpush3.bf16.msra.mxu1 %v6361_v6  ;;  %v2872_v6 = vld [vmem:[#allocation8 + $0xe0] sm:$0xff] }
 0x45d   :  { %6363 = vmatprep.subr.bf16.mxu1 %v6894_v0  ;;  %v6450_v18 = vpack.c.bf16 %v2873_v17, %v2872_v6  ;;  %v6474_v6 = vpack.c.bf16 %v2851_v3, %v2850_v1  ;;  %v2852_v17 = vld [vmem:[#allocation8 + $0x50] sm:$0xff]  ;;  %v3134_v3 = vld [vmem:[#allocation8 + $0x1d8] sm:$0xff] }
 0x460   :  { %6365 = vmatpush3.bf16.msra.mxu1 %v6364_v7  ;;  %v2874_v7 = vld [vmem:[#allocation8 + $0xf0] sm:$0xff] }
 0x461   :  { %6366 = vmatprep.subr.bf16.mxu1 %v6894_v0  ;;  %v6454_v9 = vpack.c.bf16 %v2875_v8, %v2874_v7  ;;  %v2853_v7 = vld [vmem:[#allocation8 + $0x58] sm:$0xff]  ;;  %v4079_v8 = vld [vmem:[%s8231_s7 + $0xc0] sm:$0xff] }
 0x464   :  { %6368 = vmatpush3.bf16.msra.mxu1 %v6367_v10  ;;  %v2842_v10 = vld [vmem:[#allocation8] sm:$0xff] }
 0x465   :  { %6369 = vmatprep.subr.bf16.mxu1 %v6894_v0  ;;  %v6458_v13 = vpack.c.bf16 %v2843_v11, %v2842_v10  ;;  %v6478_v10 = vpack.c.bf16 %v2853_v7, %v2852_v17  ;;  %v3138_v7 = vld [vmem:[#allocation8 + $0x1f8] sm:$0xff] }
 0x468   :  { %6371 = vmatpush3.bf16.msra.mxu1 %v6370_v14  ;;  %v7937_v14 = vld [vmem:[%s8232_s8] ss:$0 sm:$0xff] }
 0x469   :  { %6372 = vmatprep.subr.bf16.mxu1 %v6894_v0 }
 0x46c   :  { %6374 = vmatpush3.bf16.msra.mxu1 %v6373_v19 }
 0x46d   :  { %6375 = vmatprep.subr.bf16.mxu1 %v6894_v0 }
 0x470   :  { %6377 = vmatpush3.bf16.msra.mxu1 %v6376_v24 }
 0x471   :  { %6402 = vmatprep.subr.bf16.mxu1 %v6894_v0 }
 0x473   :  { %5404 = vmatmul.mubr.f32.vlgmr.msra.gmra.mrb[10].mxu1 %v2566_v28 }
 0x474   :  { %6404 = vmatpush3.bf16.msra.mxu1 %v6403_v23  ;;  %5473 = vmatprep.mubr.msk.f32.mxu1 %vm6895_vm5, %v6896_v12  ;;  %v4060_v12 = vld [vmem:[%s8227_s3 + $0x238] sm:$0xff] }
 0x475   :  { %6405 = vmatprep.subr.bf16.mxu1 %v6894_v0  ;;  %v6412_v34 = vpack.c.bf16 %v4060_v12, %v4059_v33 }
 0x478   :  { %6407 = vmatpush3.bf16.msra.mxu1 %v6406_v29 }
 0x479   :  { %6408 = vmatprep.subr.bf16.mxu1 %v6894_v0 }
 0x47c   :  { %6410 = vmatpush3.bf16.msra.mxu1 %v6409_v32 }
 0x47d   :  { %6411 = vmatprep.subr.bf16.mxu1 %v6894_v0 }
 0x480   :  { %6413 = vmatpush3.bf16.msra.mxu1 %v6412_v34 }
 0x481   :  { %6414 = vmatprep.subr.bf16.mxu1 %v6894_v0 }
 0x484   :  { %6416 = vmatpush3.bf16.msra.mxu1 %v6415_v37 }
 0x485   :  { %6417 = vmatprep.subr.bf16.mxu1 %v6894_v0 }
 0x488   :  { %6419 = vmatpush3.bf16.msra.mxu1 %v6418_v40  ;;  %v4069_v40 = vld [vmem:[%s8228_s4] ss:$0 sm:$0xff] }
 0x489   :  { %6420 = vmatprep.subr.bf16.mxu1 %v6894_v0 }
 0x48c   :  { %6422 = vmatpush3.bf16.msra.mxu1 %v6421_v43 }
 0x48d   :  { %6423 = vmatprep.subr.bf16.mxu1 %v6894_v0  ;;  %v6434_v0 = vpack.c.bf16 %v2865_v59, %v2864_v58  ;;  %v2848_v58 = vld [vmem:[#allocation8 + $0x30] sm:$0xff]  ;;  %v6586_v59 = vpack.c.bf16 %v4072_v54, %v4071_v53  ;;  %v3126_v53 = vld [vmem:[#allocation8 + $0x198] sm:$0xff] }
 0x48e   :  { %v6470_v63 = vpack.c.bf16 %v2849_v60, %v2848_v58  ;;  %v3130_v60 = vld [vmem:[#allocation8 + $0x1b8] sm:$0xff] }
 0x48f   :  { %6435 = vmatprep.subr.bf16.mxu0 %v6434_v0 }
 0x490   :  { %6425 = vmatpush3.bf16.msra.mxu1 %v6424_v46  ;;  %6437 = vmatpush3.bf16.msra.mxu0 %v6434_v0  ;;  %v2845_v46 = vld [vmem:[#allocation8 + $0x18] sm:$0xff]  ;;  %v6590_v0 = vpack.c.bf16 %v4074_v56, %v4073_v55  ;;  %v3127_v56 = vld [vmem:[#allocation8 + $0x1a0] sm:$0xff] }
 0x491   :  { %6439 = vmatprep.subr.bf16.mxu0 %v6438_v62  ;;  %6587 = vmatprep.subr.bf16.mxu1 %v6586_v59 }
 0x493   :  { %5474 = vmatmul.mubr.f32.vlgmr.msra.gmra.mrb[12].mxu1 %v2742_v47 }
 0x494   :  { %6441 = vmatpush3.bf16.msra.mxu0 %v6438_v62  ;;  %v4076_v62 = vld [vmem:[%s8231_s7 + $0xa8] sm:$0xff]  ;;  %6589 = vmatpush3.bf16.msra.mxu1 %v6586_v59 }
 0x495   :  { %6443 = vmatprep.subr.bf16.mxu0 %v6442_v2  ;;  %6591 = vmatprep.subr.bf16.mxu1 %v6590_v0 }
 0x498   :  { %6445 = vmatpush3.bf16.msra.mxu0 %v6442_v2  ;;  %v6594_v2 = vpack.c.bf16 %v4076_v62, %v4075_v61  ;;  %6593 = vmatpush3.bf16.msra.mxu1 %v6590_v0  ;;  %v3129_v0 = vld [vmem:[#allocation8 + $0x1b0] sm:$0xff]  ;;  %v3131_v62 = vld [vmem:[#allocation8 + $0x1c0] sm:$0xff] }
 0x499   :  { %6447 = vmatprep.subr.bf16.mxu0 %v6446_v5  ;;  %v6534_v61 = vpack.c.bf16 %v3130_v60, %v3129_v0 }
 0x49a   :  { %6595 = vmatprep.subr.bf16.mxu1 %v6594_v2 }
 0x49c   :  { %6449 = vmatpush3.bf16.msra.mxu0 %v6446_v5  ;;  %v4078_v5 = vld [vmem:[%s8231_s7 + $0xb8] sm:$0xff]  ;;  %6597 = vmatpush3.bf16.msra.mxu1 %v6594_v2  ;;  %v3133_v2 = vld [vmem:[#allocation8 + $0x1d0] sm:$0xff] }
 0x49d   :  { %6451 = vmatprep.subr.bf16.mxu0 %v6450_v18 }
 0x4a0   :  { %6453 = vmatpush3.bf16.msra.mxu0 %v6450_v18  ;;  %v6598_v18 = vpack.c.bf16 %v4078_v5, %v4077_v4  ;;  %v6542_v4 = vpack.c.bf16 %v3134_v3, %v3133_v2  ;;  %v3135_v5 = vld [vmem:[#allocation8 + $0x1e0] sm:$0xff]  ;;  %v3332_v2 = vld [vmem:[%s8231_s7 + $0x30] sm:$0xff] }
 0x4a1   :  { %v7930_v48 = vpop.f32.mrb[10].mxu0  ;;  %6455 = vmatprep.subr.bf16.mxu0 %v6454_v9  ;;  %v3333_v3 = vld [vmem:[%s8231_s7 + $0x38] sm:$0xff] }
 0x4a2   :  { %v5370_v49 = vpop.f32.mrb[11].mxu0  ;;  %6599 = vmatprep.subr.bf16.mxu1 %v6598_v18 }
 0x4a3   :  { %v6462_v49 = vpack.c.bf16 %v2845_v46, %v2844_v45  ;;  %6601 = vmatpush3.bf16.msra.mxu1 %v6598_v18  ;;  %v3042_v46 = vld [vmem:[#allocation8 + $0x170] sm:$0xff] }
 0x4a4   :  { %6457 = vmatpush3.bf16.msra.mxu0 %v6454_v9  ;;  %v4080_v9 = vld [vmem:[%s8231_s7 + $0xc8] sm:$0xff] }
 0x4a5   :  { %6459 = vmatprep.subr.bf16.mxu0 %v6458_v13  ;;  %v6602_v11 = vpack.c.bf16 %v4080_v9, %v4079_v8  ;;  %v3137_v18 = vld [vmem:[#allocation8 + $0x1f0] sm:$0xff]  ;;  %v3218_v9 = vld [vmem:[#allocation8 + $0x200] sm:$0xff] }
 0x4a6   :  { %v6550_v8 = vpack.c.bf16 %v3138_v7, %v3137_v18  ;;  %v3336_v18 = vld [vmem:[%s8231_s7 + $0x50] sm:$0xff]  ;;  %v3337_v7 = vld [vmem:[%s8231_s7 + $0x58] sm:$0xff] }
 0x4a7   :  { %6603 = vmatprep.subr.bf16.mxu1 %v6602_v11 }
 0x4a8   :  { %6605 = vmatpush3.bf16.msra.mxu1 %v6602_v11 }
 0x4c1   :  { %v7932_v50 = vpop.f32.mrb[12].mxu0 }
 0x4c2   :  { %v5440_v51 = vpop.f32.mrb[13].mxu0 }
 0x4c3   :  { %v2847_v51 = vld [vmem:[#allocation8 + $0x28] sm:$0xff] }
 0x506   :  { %v5265_v15 = vpop.f32.mrb[6].mxu1 }
 0x507   :  { %v1937_v16 = vadd.f32 %v5265_v15, %v7937_v14  ;;  %v1918_v19 = vpop.f32.mrb[7].mxu1  ;;  %v2855_v15 = vld [vmem:[#allocation8 + $0x68] sm:$0xff] }
 0x508   :  { %v1936_v20 = vadd.f32 %v7937_v14, %v1918_v19  ;;  %v2856_v19 = vld [vmem:[#allocation8 + $0x70] sm:$0xff] }
 0x509   :  { %v1939_v22 = vmax.f32 %v1937_v16, 0.0 }
 0x50a   :  { %v1938_v24 = vmax.f32 %v1936_v20, 0.0  ;;  %v2857_v20 = vld [vmem:[#allocation8 + $0x78] sm:$0xff] }
 0x50b   :  { %v1941_v25 = vsub.f32 0.0, %v1939_v22  ;;  %v6486_v22 = vpack.c.bf16 %v2857_v20, %v2856_v19  ;;  %v3222_v20 = vld [vmem:[#allocation8 + $0x220] sm:$0xff] }
 0x50c   :  { %v1940_v21 = vsub.f32 0.0, %v1938_v24  ;;  %v3028_v24 = vld [vmem:[#allocation8 + $0x100] sm:$0xff] }
 0x50d   :  { %v1944_v23 = vmul.f32 1.442695, %v1941_v25  ;;  %v3029_v25 = vld [vmem:[#allocation8 + $0x108] sm:$0xff] }
 0x50e   :  { %v1942_v26 = vmul.f32 1.442695, %v1940_v21  ;;  %v6490_v21 = vpack.c.bf16 %v3029_v25, %v3028_v24  ;;  %v3224_v25 = vld [vmem:[#allocation8 + $0x230] sm:$0xff] }
 0x50f   :  { %6802 = vpow2.f32 %v1944_v23  ;;  %v3030_v23 = vld [vmem:[#allocation8 + $0x110] sm:$0xff] }
 0x510   :  { %6804 = vpow2.f32 %v1942_v26  ;;  %v3031_v26 = vld [vmem:[#allocation8 + $0x118] sm:$0xff] }
 0x519   :  { %v6803_v27 = vpop.eup %6802 }
 0x51a   :  { %v6805_v28 = vpop.eup %6804  ;;  %v1947_v29 = vadd.f32 1.0, %v6803_v27  ;;  %v6494_v27 = vpack.c.bf16 %v3031_v26, %v3030_v23  ;;  %v3226_v26 = vld [vmem:[#allocation8 + $0x240] sm:$0xff] }
 0x51b   :  { %v1946_v30 = vadd.f32 1.0, %v6805_v28 }
 0x51c   :  { %6806 = vrcp.f32 %v1947_v29  ;;  %v3032_v29 = vld [vmem:[#allocation8 + $0x120] sm:$0xff] }
 0x51d   :  { %6808 = vrcp.f32 %v1946_v30  ;;  %v3033_v30 = vld [vmem:[#allocation8 + $0x128] sm:$0xff] }
 0x526   :  { %v6807_v31 = vpop.eup %6806  ;;  %v2492_v32 = vpop.f32.mrb[8].mxu1 }
 0x527   :  { %v6809_v33 = vpop.eup %6808  ;;  %1951 = vst.msk [vmem:[#allocation10 + $0x8] sm:$0xff] %vm78_vm1, %v6807_v31  ;;  %v2563_v12 = vadd.f32 %v7930_v48, %v2492_v32  ;;  %v5335_v34 = vpop.f32.mrb[9].mxu1  ;;  %v6498_v32 = vpack.c.bf16 %v3033_v30, %v3032_v29  ;;  %v3228_v29 = vld [vmem:[#allocation8 + $0x250] sm:$0xff]  ;;  %v3229_v30 = vld [vmem:[#allocation8 + $0x258] sm:$0xff] }
 0x528   :  { %1950 = vst.msk [vmem:[#allocation10] sm:$0xff] %vm78_vm1, %v6809_v33  ;;  %v3034_v33 = vld [vmem:[#allocation8 + $0x130] sm:$0xff] }
 0x546   :  { %v2649_v35 = vpop.f32.mrb[10].mxu1 }
 0x547   :  { %v2653_v36 = vadd.f32 %v2649_v35, %v2563_v12  ;;  %v5405_v37 = vpop.f32.mrb[11].mxu1  ;;  %v3035_v12 = vld [vmem:[#allocation8 + $0x138] sm:$0xff]  ;;  %v3036_v35 = vld [vmem:[#allocation8 + $0x140] sm:$0xff] }
 0x548   :  { %v6502_v34 = vpack.c.bf16 %v3035_v12, %v3034_v33  ;;  %v3232_v33 = vld [vmem:[#allocation8 + $0x270] sm:$0xff]  ;;  %v3233_v12 = vld [vmem:[#allocation8 + $0x278] sm:$0xff] }
 0x549   :  { %v2741_v38 = vadd.f32 %v7932_v50, %v2653_v36  ;;  %v2846_v50 = vld [vmem:[#allocation8 + $0x20] sm:$0xff]  ;;  %v3037_v36 = vld [vmem:[#allocation8 + $0x148] sm:$0xff] }
 0x54a   :  { %v6466_v57 = vpack.c.bf16 %v2847_v51, %v2846_v50  ;;  %v6506_v37 = vpack.c.bf16 %v3037_v36, %v3036_v35  ;;  %v3124_v50 = vld [vmem:[#allocation8 + $0x188] sm:$0xff]  ;;  %v3217_v35 = vld [vmem:[#allocation3 + $0xc] sm:$0xf]  ;;  %v4081_v36 = vld [vmem:[%s8231_s7 + $0xd0] sm:$0xff] }
 0x566   :  { %v2825_v39 = vpop.f32.mrb[12].mxu1 }
 0x567   :  { %v2829_v41 = vadd.f32 %v2825_v39, %v2741_v38  ;;  %v5475_v42 = vpop.f32.mrb[13].mxu1  ;;  %v3038_v38 = vld [vmem:[#allocation8 + $0x150] sm:$0xff]  ;;  %v3039_v39 = vld [vmem:[#allocation8 + $0x158] sm:$0xff] }
 0x568   :  { %v3041_v42 = vld [vmem:[#allocation8 + $0x168] sm:$0xff] }
 0x569   :  { %v7948_v43 = vadd.f32 %v4069_v40, %v2829_v41  ;;  %v6510_v40 = vpack.c.bf16 %v3039_v39, %v3038_v38  ;;  %v3040_v41 = vld [vmem:[#allocation8 + $0x160] sm:$0xff]  ;;  %v4083_v39 = vld [vmem:[%s8231_s7 + $0xe0] sm:$0xff] }
 0x56a   :  { %v6514_v45 = vpack.c.bf16 %v3041_v42, %v3040_v41  ;;  %v4085_v42 = vld [vmem:[%s8231_s7 + $0xf0] sm:$0xff] }
 0x56b   :  { %v2838_v44 = vmax.f32 %v7948_v43, 0.0  ;;  %v3231_v43 = vld [vmem:[#allocation8 + $0x268] sm:$0xff] }
 0x56d   :  { %2839 = vst [vmem:[#allocation3 + $0x4] sm:$0xff] %v2838_v44 }
 0x574   :  { %v2858_v47 = vld [vmem:[#allocation3 + $0x1] sm:$0xff]  ;;  %v2859_v48 = vld [vmem:[#allocation3 + $0x9] sm:$0xf] }
 0x575   :  { %5508 = vmatprep.mubr.f32.mxu0 %v2858_v47  ;;  %v2840_v52 = vld [vmem:[#allocation3] sm:$0xff]  ;;  %v2841_v28 = vld [vmem:[#allocation3 + $0x8] sm:$0xf] }
 0x576   :  { %5509 = vmatmul.mubr.f32.vlgmr.msra.gmra.mrb[14].mxu0 %v2859_v48  ;;  %v3026_v31 = vld [vmem:[#allocation3 + $0x2] sm:$0xff]  ;;  %v3027_v55 = vld [vmem:[#allocation3 + $0xa] sm:$0xf] }
 0x577   :  { %6461 = vmatpush3.bf16.msra.mxu0 %v6458_v13  ;;  %5543 = vmatprep.mubr.f32.mxu0 %v2840_v52  ;;  %v2854_v13 = vld [vmem:[#allocation8 + $0x60] sm:$0xff]  ;;  %v3043_v47 = vld [vmem:[#allocation8 + $0x178] sm:$0xff]  ;;  %v3125_v52 = vld [vmem:[#allocation8 + $0x190] sm:$0xff] }
 0x578   :  { %6463 = vmatprep.subr.bf16.mxu0 %v6462_v49  ;;  %v6482_v16 = vpack.c.bf16 %v2855_v15, %v2854_v13  ;;  %v6518_v48 = vpack.c.bf16 %v3043_v47, %v3042_v46  ;;  %v6526_v54 = vpack.c.bf16 %v3126_v53, %v3125_v52  ;;  %v3121_v58 = vld [vmem:[#allocation3 + $0x3] sm:$0xff]  ;;  %v3220_v13 = vld [vmem:[#allocation8 + $0x210] sm:$0xff]  ;;  %v3122_v19 = vld [vmem:[#allocation3 + $0xb] sm:$0xf] }
 0x579   :  { %v3221_v15 = vld [vmem:[#allocation8 + $0x218] sm:$0xff]  ;;  %v3326_v47 = vld [vmem:[%s8231_s7] sm:$0xff] }
 0x57b   :  { %6465 = vmatpush3.bf16.msra.mxu0 %v6462_v49  ;;  %v3123_v49 = vld [vmem:[#allocation8 + $0x180] sm:$0xff] }
 0x57c   :  { %6467 = vmatprep.subr.bf16.mxu0 %v6466_v57  ;;  %v6522_v51 = vpack.c.bf16 %v3124_v50, %v3123_v49  ;;  %v4070_v50 = vld [vmem:[%s8230_s6] ss:$0 sm:$0xff] }
 0x57f   :  { %6469 = vmatpush3.bf16.msra.mxu0 %v6466_v57  ;;  %v3128_v57 = vld [vmem:[#allocation8 + $0x1a8] sm:$0xff] }
 0x580   :  { %6471 = vmatprep.subr.bf16.mxu0 %v6470_v63  ;;  %v6530_v59 = vpack.c.bf16 %v3128_v57, %v3127_v56  ;;  %v3328_v57 = vld [vmem:[%s8231_s7 + $0x10] sm:$0xff] }
 0x583   :  { %6473 = vmatpush3.bf16.msra.mxu0 %v6470_v63  ;;  %v3132_v63 = vld [vmem:[#allocation8 + $0x1c8] sm:$0xff] }
 0x584   :  { %6475 = vmatprep.subr.bf16.mxu0 %v6474_v6  ;;  %v6538_v1 = vpack.c.bf16 %v3132_v63, %v3131_v62  ;;  %v3331_v62 = vld [vmem:[%s8231_s7 + $0x28] sm:$0xff] }
 0x587   :  { %6477 = vmatpush3.bf16.msra.mxu0 %v6474_v6  ;;  %v3136_v6 = vld [vmem:[#allocation8 + $0x1e8] sm:$0xff] }
 0x588   :  { %6479 = vmatprep.subr.bf16.mxu0 %v6478_v10  ;;  %v6546_v17 = vpack.c.bf16 %v3136_v6, %v3135_v5  ;;  %v3334_v5 = vld [vmem:[%s8231_s7 + $0x40] sm:$0xff]  ;;  %v3335_v6 = vld [vmem:[%s8231_s7 + $0x48] sm:$0xff] }
 0x58b   :  { %6481 = vmatpush3.bf16.msra.mxu0 %v6478_v10  ;;  %v3219_v10 = vld [vmem:[#allocation8 + $0x208] sm:$0xff] }
 0x58c   :  { %6483 = vmatprep.subr.bf16.mxu0 %v6482_v16  ;;  %v6554_v11 = vpack.c.bf16 %v3219_v10, %v3218_v9  ;;  %v3338_v9 = vld [vmem:[%s8231_s7 + $0x60] sm:$0xff]  ;;  %v3339_v10 = vld [vmem:[%s8231_s7 + $0x68] sm:$0xff] }
 0x58f   :  { %6485 = vmatpush3.bf16.msra.mxu0 %v6482_v16  ;;  %v6558_v16 = vpack.c.bf16 %v3221_v15, %v3220_v13  ;;  %v3340_v13 = vld [vmem:[%s8231_s7 + $0x70] sm:$0xff]  ;;  %v3341_v15 = vld [vmem:[%s8231_s7 + $0x78] sm:$0xff] }
 0x590   :  { %6487 = vmatprep.subr.bf16.mxu0 %v6486_v22 }
 0x593   :  { %6489 = vmatpush3.bf16.msra.mxu0 %v6486_v22  ;;  %v3223_v22 = vld [vmem:[#allocation8 + $0x228] sm:$0xff] }
 0x594   :  { %6491 = vmatprep.subr.bf16.mxu0 %v6490_v21  ;;  %v6562_v24 = vpack.c.bf16 %v3223_v22, %v3222_v20  ;;  %v4088_v20 = vld [vmem:[%s8231_s7 + $0x108] sm:$0xff] }
 0x596   :  { %5544 = vmatmul.mubr.f32.vlgmr.msra.gmra.mrb[14].mxu0 %v2841_v28 }
 0x597   :  { %6493 = vmatpush3.bf16.msra.mxu0 %v6490_v21  ;;  %5578 = vmatprep.mubr.f32.mxu0 %v3026_v31  ;;  %v3225_v21 = vld [vmem:[#allocation8 + $0x238] sm:$0xff]  ;;  %v6574_v31 = vpack.c.bf16 %v3229_v30, %v3228_v29 }
 0x598   :  { %6495 = vmatprep.subr.bf16.mxu0 %v6494_v27  ;;  %v6566_v23 = vpack.c.bf16 %v3225_v21, %v3224_v25  ;;  %v4090_v25 = vld [vmem:[%s8231_s7 + $0x118] sm:$0xff]  ;;  %v4093_v30 = vld [vmem:[%s8231_s7 + $0x130] sm:$0xff] }
 0x59b   :  { %6497 = vmatpush3.bf16.msra.mxu0 %v6494_v27  ;;  %v3227_v27 = vld [vmem:[#allocation8 + $0x248] sm:$0xff] }
 0x59c   :  { %6499 = vmatprep.subr.bf16.mxu0 %v6498_v32  ;;  %v6570_v28 = vpack.c.bf16 %v3227_v27, %v3226_v26  ;;  %v4091_v26 = vld [vmem:[%s8231_s7 + $0x120] sm:$0xff]  ;;  %v4092_v27 = vld [vmem:[%s8231_s7 + $0x128] sm:$0xff] }
 0x59d   :  { %v6658_v29 = vpack.c.bf16 %v4092_v27, %v4091_v26  ;;  %v4131_v27 = vld [vmem:[%s8231_s7 + $0x260] sm:$0xff] }
 0x59f   :  { %6501 = vmatpush3.bf16.msra.mxu0 %v6498_v32  ;;  %v3230_v32 = vld [vmem:[#allocation8 + $0x260] sm:$0xff] }
 0x5a0   :  { %6503 = vmatprep.subr.bf16.mxu0 %v6502_v34 }
 0x5a3   :  { %6505 = vmatpush3.bf16.msra.mxu0 %v6502_v34  ;;  %v6582_v34 = vpack.c.bf16 %v3233_v12, %v3232_v33  ;;  %v4097_v12 = vld [vmem:[%s8231_s7 + $0x150] sm:$0xff] }
 0x5a4   :  { %6507 = vmatprep.subr.bf16.mxu0 %v6506_v37 }
 0x5a7   :  { %6509 = vmatpush3.bf16.msra.mxu0 %v6506_v37  ;;  %v4082_v37 = vld [vmem:[%s8231_s7 + $0xd8] sm:$0xff] }
 0x5a8   :  { %6511 = vmatprep.subr.bf16.mxu0 %v6510_v40  ;;  %v6606_v38 = vpack.c.bf16 %v4082_v37, %v4081_v36  ;;  %v4099_v36 = vld [vmem:[%s8231_s7 + $0x160] sm:$0xff]  ;;  %v4100_v37 = vld [vmem:[%s8231_s7 + $0x168] sm:$0xff] }
 0x5aa   :  { %6607 = vmatprep.subr.bf16.mxu1 %v6606_v38 }
 0x5ab   :  { %6513 = vmatpush3.bf16.msra.mxu0 %v6510_v40  ;;  %6609 = vmatpush3.bf16.msra.mxu1 %v6606_v38  ;;  %v4084_v40 = vld [vmem:[%s8231_s7 + $0xe8] sm:$0xff]  ;;  %v6674_v38 = vpack.c.bf16 %v4100_v37, %v4099_v36 }
 0x5ac   :  { %6515 = vmatprep.subr.bf16.mxu0 %v6514_v45  ;;  %v6610_v41 = vpack.c.bf16 %v4084_v40, %v4083_v39  ;;  %v4101_v39 = vld [vmem:[%s8231_s7 + $0x170] sm:$0xff]  ;;  %v4102_v40 = vld [vmem:[%s8231_s7 + $0x178] sm:$0xff] }
 0x5ae   :  { %6611 = vmatprep.subr.bf16.mxu1 %v6610_v41 }
 0x5af   :  { %6517 = vmatpush3.bf16.msra.mxu0 %v6514_v45  ;;  %v4086_v45 = vld [vmem:[%s8231_s7 + $0xf8] sm:$0xff]  ;;  %6613 = vmatpush3.bf16.msra.mxu1 %v6610_v41  ;;  %v6678_v41 = vpack.c.bf16 %v4102_v40, %v4101_v39 }
 0x5b0   :  { %6519 = vmatprep.subr.bf16.mxu0 %v6518_v48  ;;  %v6614_v46 = vpack.c.bf16 %v4086_v45, %v4085_v42  ;;  %v4103_v42 = vld [vmem:[%s8231_s7 + $0x180] sm:$0xff]  ;;  %v4104_v45 = vld [vmem:[%s8231_s7 + $0x188] sm:$0xff] }
 0x5b2   :  { %6615 = vmatprep.subr.bf16.mxu1 %v6614_v46 }
 0x5b3   :  { %6521 = vmatpush3.bf16.msra.mxu0 %v6518_v48  ;;  %6617 = vmatpush3.bf16.msra.mxu1 %v6614_v46  ;;  %v3327_v48 = vld [vmem:[%s8231_s7 + $0x8] sm:$0xff]  ;;  %v6682_v46 = vpack.c.bf16 %v4104_v45, %v4103_v42 }
 0x5b4   :  { %6523 = vmatprep.subr.bf16.mxu0 %v6522_v51  ;;  %v6618_v49 = vpack.c.bf16 %v3327_v48, %v3326_v47  ;;  %v4105_v47 = vld [vmem:[%s8231_s7 + $0x190] sm:$0xff]  ;;  %v4106_v48 = vld [vmem:[%s8231_s7 + $0x198] sm:$0xff] }
 0x5b6   :  { %5579 = vmatmul.mubr.f32.vlgmr.msra.gmra.mrb[14].mxu0 %v3027_v55  ;;  %6619 = vmatprep.subr.bf16.mxu1 %v6618_v49 }
 0x5b7   :  { %6525 = vmatpush3.bf16.msra.mxu0 %v6522_v51  ;;  %5613 = vmatprep.mubr.f32.mxu0 %v3121_v58  ;;  %v3329_v58 = vld [vmem:[%s8231_s7 + $0x18] sm:$0xff] }
 0x5b8   :  { %6527 = vmatprep.subr.bf16.mxu0 %v6526_v54  ;;  %v6622_v60 = vpack.c.bf16 %v3329_v58, %v3328_v57  ;;  %v4109_v57 = vld [vmem:[%s8231_s7 + $0x1b0] sm:$0xff]  ;;  %v4110_v58 = vld [vmem:[%s8231_s7 + $0x1b8] sm:$0xff] }
 0x5bb   :  { %6529 = vmatpush3.bf16.msra.mxu0 %v6526_v54 }
 0x5bc   :  { %6531 = vmatprep.subr.bf16.mxu0 %v6530_v59 }
 0x5bf   :  { %6533 = vmatpush3.bf16.msra.mxu0 %v6530_v59 }
 0x5c0   :  { %6535 = vmatprep.subr.bf16.mxu0 %v6534_v61 }
 0x5c3   :  { %6537 = vmatpush3.bf16.msra.mxu0 %v6534_v61  ;;  %v3330_v61 = vld [vmem:[%s8231_s7 + $0x20] sm:$0xff] }
 0x5c4   :  { %6539 = vmatprep.subr.bf16.mxu0 %v6538_v1 }
 0x5c7   :  { %6541 = vmatpush3.bf16.msra.mxu0 %v6538_v1  ;;  %v6626_v1 = vpack.c.bf16 %v3331_v62, %v3330_v61  ;;  %v4113_v62 = vld [vmem:[%s8231_s7 + $0x1d0] sm:$0xff] }
 0x5c8   :  { %6543 = vmatprep.subr.bf16.mxu0 %v6542_v4 }
 0x5cb   :  { %6545 = vmatpush3.bf16.msra.mxu0 %v6542_v4  ;;  %v6630_v4 = vpack.c.bf16 %v3333_v3, %v3332_v2  ;;  %v4115_v2 = vld [vmem:[%s8231_s7 + $0x1e0] sm:$0xff]  ;;  %v4116_v3 = vld [vmem:[%s8231_s7 + $0x1e8] sm:$0xff] }
 0x5cc   :  { %6547 = vmatprep.subr.bf16.mxu0 %v6546_v17 }
 0x5cf   :  { %6549 = vmatpush3.bf16.msra.mxu0 %v6546_v17  ;;  %v6634_v17 = vpack.c.bf16 %v3335_v6, %v3334_v5  ;;  %v4117_v5 = vld [vmem:[%s8231_s7 + $0x1f0] sm:$0xff]  ;;  %v4118_v6 = vld [vmem:[%s8231_s7 + $0x1f8] sm:$0xff] }
 0x5d0   :  { %6551 = vmatprep.subr.bf16.mxu0 %v6550_v8 }
 0x5d3   :  { %6553 = vmatpush3.bf16.msra.mxu0 %v6550_v8  ;;  %v6638_v8 = vpack.c.bf16 %v3337_v7, %v3336_v18  ;;  %v4119_v18 = vld [vmem:[%s8231_s7 + $0x200] sm:$0xff]  ;;  %v4120_v7 = vld [vmem:[%s8231_s7 + $0x208] sm:$0xff] }
 0x5d4   :  { %6555 = vmatprep.subr.bf16.mxu0 %v6554_v11 }
 0x5d6   :  { %5614 = vmatmul.mubr.f32.vlgmr.msra.gmra.mrb[14].mxu0 %v3122_v19  ;;  %v4087_v19 = vld [vmem:[%s8231_s7 + $0x100] sm:$0xff] }
 0x5d7   :  { %6557 = vmatpush3.bf16.msra.mxu0 %v6554_v11  ;;  %5648 = vmatprep.mubr.f32.mxu0 %v2838_v44  ;;  %v6578_v44 = vpack.c.bf16 %v3231_v43, %v3230_v32  ;;  %v6642_v11 = vpack.c.bf16 %v3339_v10, %v3338_v9  ;;  %v6650_v22 = vpack.c.bf16 %v4088_v20, %v4087_v19  ;;  %v4095_v43 = vld [vmem:[%s8231_s7 + $0x140] sm:$0xff]  ;;  %v4121_v9 = vld [vmem:[%s8231_s7 + $0x210] sm:$0xff]  ;;  %v4122_v10 = vld [vmem:[%s8231_s7 + $0x218] sm:$0xff] }
 0x5d8   :  { %6559 = vmatprep.subr.bf16.mxu0 %v6558_v16  ;;  %v4125_v20 = vld [vmem:[%s8231_s7 + $0x230] sm:$0xff] }
 0x5db   :  { %6561 = vmatpush3.bf16.msra.mxu0 %v6558_v16  ;;  %v6646_v16 = vpack.c.bf16 %v3341_v15, %v3340_v13  ;;  %v4123_v15 = vld [vmem:[%s8231_s7 + $0x220] sm:$0xff] }
 0x5dc   :  { %6563 = vmatprep.subr.bf16.mxu0 %v6562_v24 }
 0x5df   :  { %6565 = vmatpush3.bf16.msra.mxu0 %v6562_v24  ;;  %v4089_v24 = vld [vmem:[%s8231_s7 + $0x110] sm:$0xff] }
 0x5e0   :  { %6567 = vmatprep.subr.bf16.mxu0 %v6566_v23  ;;  %v6654_v21 = vpack.c.bf16 %v4090_v25, %v4089_v24  ;;  %v4127_v25 = vld [vmem:[%s8231_s7 + $0x240] sm:$0xff] }
 0x5e3   :  { %6569 = vmatpush3.bf16.msra.mxu0 %v6566_v23 }
 0x5e4   :  { %6571 = vmatprep.subr.bf16.mxu0 %v6570_v28 }
 0x5e7   :  { %6573 = vmatpush3.bf16.msra.mxu0 %v6570_v28 }
 0x5e8   :  { %6575 = vmatprep.subr.bf16.mxu0 %v6574_v31 }
 0x5eb   :  { %6577 = vmatpush3.bf16.msra.mxu0 %v6574_v31  ;;  %v4094_v31 = vld [vmem:[%s8231_s7 + $0x138] sm:$0xff] }
 0x5ec   :  { %6579 = vmatprep.subr.bf16.mxu0 %v6578_v44  ;;  %v6662_v32 = vpack.c.bf16 %v4094_v31, %v4093_v30  ;;  %v4133_v30 = vld [vmem:[%s8231_s7 + $0x270] sm:$0xff]  ;;  %v4134_v31 = vld [vmem:[%s8231_s7 + $0x278] sm:$0xff] }
 0x5ef   :  { %6581 = vmatpush3.bf16.msra.mxu0 %v6578_v44  ;;  %v4096_v44 = vld [vmem:[%s8231_s7 + $0x148] sm:$0xff] }
 0x5f0   :  { %6583 = vmatprep.subr.bf16.mxu0 %v6582_v34  ;;  %v6666_v33 = vpack.c.bf16 %v4096_v44, %v4095_v43 }
 0x5f3   :  { %6585 = vmatpush3.bf16.msra.mxu0 %v6582_v34  ;;  %v4098_v34 = vld [vmem:[%s8231_s7 + $0x158] sm:$0xff] }
 0x5f6   :  { %5649 = vmatmul.mubr.f32.vlgmr.msra.gmra.mrb[14].mxu0 %v3217_v35  ;;  %v6670_v35 = vpack.c.bf16 %v4098_v34, %v4097_v12 }
 0x6c9   :  { %v5650_v51 = vpop.f32.mrb[14].mxu0 }
 0x6ca   :  { %v3319_v52 = vadd.f32 %v5650_v51, %v4070_v50  ;;  %v3300_v53 = vpop.f32.mrb[15].mxu0  ;;  %v4107_v51 = vld [vmem:[%s8231_s7 + $0x1a0] sm:$0xff] }
 0x6cb   :  { %v8012_v54 = vadd.f32 %v4070_v50, %v3300_v53 }
 0x6cc   :  { %v3321_v55 = vmax.f32 %v3319_v52, 0.0  ;;  %v4108_v52 = vld [vmem:[%s8231_s7 + $0x1a8] sm:$0xff] }
 0x6cd   :  { %v3320_v56 = vmax.f32 %v8012_v54, 0.0  ;;  %v4128_v54 = vld [vmem:[%s8231_s7 + $0x248] sm:$0xff] }
 0x6ce   :  { %3323 = vst [vmem:[#allocation4 + $0xc] sm:$0xf] %v3321_v55  ;;  %v6690_v55 = vpack.c.bf16 %v4108_v52, %v4107_v51 }
 0x6cf   :  { %3322 = vst [vmem:[#allocation4 + $0x4] sm:$0xff] %v3320_v56 }
 0x6d5   :  { %v3701_v43 = vld [vmem:[#allocation4 + $0xc] sm:$0xff] }
 0x6d6   :  { %v3342_v59 = vld [vmem:[#allocation4 + $0x1] sm:$0xff]  ;;  %v3343_v0 = vld [vmem:[#allocation4 + $0x9] sm:$0xff] }
 0x6d7   :  { %5683 = vmatprep.mubr.f32.mxu1 %v3342_v59  ;;  %v3324_v63 = vld [vmem:[#allocation4] sm:$0xff]  ;;  %v3325_v23 = vld [vmem:[#allocation4 + $0x8] sm:$0xff]  ;;  %v6694_v59 = vpack.c.bf16 %v4110_v58, %v4109_v57 }
 0x6d8   :  { %5684 = vmatmul.mubr.f32.vlgmr.msra.gmra.mrb[14].mxu1 %v3343_v0  ;;  %v3510_v28 = vld [vmem:[#allocation4 + $0x2] sm:$0xff]  ;;  %v3511_v50 = vld [vmem:[#allocation4 + $0xa] sm:$0xff] }
 0x6d9   :  { %6621 = vmatpush3.bf16.msra.mxu1 %v6618_v49  ;;  %5718 = vmatprep.mubr.f32.mxu1 %v3324_v63  ;;  %v6686_v49 = vpack.c.bf16 %v4106_v48, %v4105_v47  ;;  %v3605_v53 = vld [vmem:[#allocation4 + $0x3] sm:$0xff]  ;;  %v4114_v63 = vld [vmem:[%s8231_s7 + $0x1d8] sm:$0xff]  ;;  %v3606_v13 = vld [vmem:[#allocation4 + $0xb] sm:$0xff] }
 0x6da   :  { %6623 = vmatprep.subr.bf16.mxu1 %v6622_v60  ;;  %v4111_v0 = vld [vmem:[%s8231_s7 + $0x1c0] sm:$0xff] }
 0x6dd   :  { %6625 = vmatpush3.bf16.msra.mxu1 %v6622_v60  ;;  %v4112_v60 = vld [vmem:[%s8231_s7 + $0x1c8] sm:$0xff] }
 0x6de   :  { %6627 = vmatprep.subr.bf16.mxu1 %v6626_v1  ;;  %v6698_v61 = vpack.c.bf16 %v4112_v60, %v4111_v0 }
 0x6e1   :  { %6629 = vmatpush3.bf16.msra.mxu1 %v6626_v1  ;;  %v6702_v1 = vpack.c.bf16 %v4114_v63, %v4113_v62 }
 0x6e2   :  { %6631 = vmatprep.subr.bf16.mxu1 %v6630_v4 }
 0x6e5   :  { %6633 = vmatpush3.bf16.msra.mxu1 %v6630_v4  ;;  %v6706_v4 = vpack.c.bf16 %v4116_v3, %v4115_v2 }
 0x6e6   :  { %6635 = vmatprep.subr.bf16.mxu1 %v6634_v17 }
 0x6e9   :  { %6637 = vmatpush3.bf16.msra.mxu1 %v6634_v17  ;;  %v6710_v17 = vpack.c.bf16 %v4118_v6, %v4117_v5 }
 0x6ea   :  { %6639 = vmatprep.subr.bf16.mxu1 %v6638_v8 }
 0x6ed   :  { %6641 = vmatpush3.bf16.msra.mxu1 %v6638_v8  ;;  %v6714_v8 = vpack.c.bf16 %v4120_v7, %v4119_v18 }
 0x6ee   :  { %6643 = vmatprep.subr.bf16.mxu1 %v6642_v11 }
 0x6f1   :  { %6645 = vmatpush3.bf16.msra.mxu1 %v6642_v11  ;;  %v6718_v11 = vpack.c.bf16 %v4122_v10, %v4121_v9 }
 0x6f2   :  { %6647 = vmatprep.subr.bf16.mxu1 %v6646_v16 }
 0x6f5   :  { %6649 = vmatpush3.bf16.msra.mxu1 %v6646_v16  ;;  %v4124_v16 = vld [vmem:[%s8231_s7 + $0x228] sm:$0xff] }
 0x6f6   :  { %6651 = vmatprep.subr.bf16.mxu1 %v6650_v22  ;;  %v6722_v19 = vpack.c.bf16 %v4124_v16, %v4123_v15 }
 0x6f8   :  { %5719 = vmatmul.mubr.f32.vlgmr.msra.gmra.mrb[14].mxu1 %v3325_v23  ;;  %v4130_v23 = vld [vmem:[%s8231_s7 + $0x258] sm:$0xff] }
 0x6f9   :  { %6653 = vmatpush3.bf16.msra.mxu1 %v6650_v22  ;;  %5753 = vmatprep.mubr.f32.mxu1 %v3510_v28  ;;  %v4126_v22 = vld [vmem:[%s8231_s7 + $0x238] sm:$0xff]  ;;  %v4132_v28 = vld [vmem:[%s8231_s7 + $0x268] sm:$0xff] }
 0x6fa   :  { %6655 = vmatprep.subr.bf16.mxu1 %v6654_v21  ;;  %v6726_v24 = vpack.c.bf16 %v4126_v22, %v4125_v20 }
 0x6fd   :  { %6657 = vmatpush3.bf16.msra.mxu1 %v6654_v21  ;;  %v4129_v21 = vld [vmem:[%s8231_s7 + $0x250] sm:$0xff]  ;;  %s6897_s7 = smov [#allocation10]  }
 0x6fe   :  { %6659 = vmatprep.subr.bf16.mxu1 %v6658_v29  ;;  %v6734_v26 = vpack.c.bf16 %v4130_v23, %v4129_v21  ;;  %s3823_s15 = sshll.u32 %s6897_s7, 4  ;;  %s3824_s15 = int_to_ptr.vmem [resolvable:$true] %s3823_s15 }
 0x6ff   :  { %s6862_s16 = scalar_lea.vmem %s3824_s15, 512  ;;  %p6867_p3 = scmp.lt.s32.totalorder %s3824_s15, %s3824_s15 }
 0x700   :  { %p6863_p2 = scmp.ne.s32.totalorder %s3824_s15, %s6862_s16  ;;  %p6868_p4 = scmp.lt.s32.totalorder %s6862_s16, %s6862_s16 }
 0x701   :  { %6661 = vmatpush3.bf16.msra.mxu1 %v6658_v29  ;;  %v6738_v29 = vpack.c.bf16 %v4132_v28, %v4131_v27 }
 0x702   :  { %6663 = vmatprep.subr.bf16.mxu1 %v6662_v32  ;;  %p6869_p5 = por %p6868_p4, %p6867_p3 }
 0x704   :  { %p6870_p6 = pnand %p6869_p5, %p6863_p2 }
 0x705   :  { %6665 = vmatpush3.bf16.msra.mxu1 %v6662_v32  ;;  %v6742_v32 = vpack.c.bf16 %v4134_v31, %v4133_v30 }
 0x706   :  { %6667 = vmatprep.subr.bf16.mxu1 %v6666_v33 }
 0x709   :  { %6669 = vmatpush3.bf16.msra.mxu1 %v6666_v33 }
 0x70a   :  { %6671 = vmatprep.subr.bf16.mxu1 %v6670_v35 }
 0x70d   :  { %6673 = vmatpush3.bf16.msra.mxu1 %v6670_v35 }
 0x70e   :  { %6675 = vmatprep.subr.bf16.mxu1 %v6674_v38 }
 0x711   :  { %6677 = vmatpush3.bf16.msra.mxu1 %v6674_v38 }
 0x712   :  { %6679 = vmatprep.subr.bf16.mxu1 %v6678_v41 }
 0x715   :  { %6681 = vmatpush3.bf16.msra.mxu1 %v6678_v41 }
 0x716   :  { %6683 = vmatprep.subr.bf16.mxu1 %v6682_v46 }
 0x718   :  { %5754 = vmatmul.mubr.f32.vlgmr.msra.gmra.mrb[14].mxu1 %v3511_v50 }
 0x719   :  { %6685 = vmatpush3.bf16.msra.mxu1 %v6682_v46  ;;  %5788 = vmatprep.mubr.f32.mxu1 %v3605_v53 }
 0x71a   :  { %6687 = vmatprep.subr.bf16.mxu1 %v6686_v49 }
 0x71d   :  { %6689 = vmatpush3.bf16.msra.mxu1 %v6686_v49 }
 0x71e   :  { %6691 = vmatprep.subr.bf16.mxu1 %v6690_v55 }
 0x721   :  { %6693 = vmatpush3.bf16.msra.mxu1 %v6690_v55 }
 0x722   :  { %6695 = vmatprep.subr.bf16.mxu1 %v6694_v59 }
 0x725   :  { %6697 = vmatpush3.bf16.msra.mxu1 %v6694_v59 }
 0x726   :  { %6699 = vmatprep.subr.bf16.mxu1 %v6698_v61 }
 0x729   :  { %6701 = vmatpush3.bf16.msra.mxu1 %v6698_v61 }
 0x72a   :  { %6703 = vmatprep.subr.bf16.mxu1 %v6702_v1 }
 0x72d   :  { %6705 = vmatpush3.bf16.msra.mxu1 %v6702_v1 }
 0x72e   :  { %6707 = vmatprep.subr.bf16.mxu1 %v6706_v4 }
 0x731   :  { %6709 = vmatpush3.bf16.msra.mxu1 %v6706_v4 }
 0x732   :  { %6711 = vmatprep.subr.bf16.mxu1 %v6710_v17 }
 0x735   :  { %6713 = vmatpush3.bf16.msra.mxu1 %v6710_v17 }
 0x736   :  { %6715 = vmatprep.subr.bf16.mxu1 %v6714_v8 }
 0x738   :  { %5789 = vmatmul.mubr.f32.vlgmr.msra.gmra.mrb[14].mxu1 %v3606_v13 }
 0x739   :  { %6717 = vmatpush3.bf16.msra.mxu1 %v6714_v8  ;;  %5823 = vmatprep.mubr.f32.mxu1 %v3320_v56  ;;  %v6730_v56 = vpack.c.bf16 %v4128_v54, %v4127_v25 }
 0x73a   :  { %6719 = vmatprep.subr.bf16.mxu1 %v6718_v11 }
 0x73d   :  { %6721 = vmatpush3.bf16.msra.mxu1 %v6718_v11 }
 0x73e   :  { %6723 = vmatprep.subr.bf16.mxu1 %v6722_v19 }
 0x741   :  { %6725 = vmatpush3.bf16.msra.mxu1 %v6722_v19 }
 0x742   :  { %6727 = vmatprep.subr.bf16.mxu1 %v6726_v24 }
 0x745   :  { %6729 = vmatpush3.bf16.msra.mxu1 %v6726_v24 }
 0x746   :  { %6731 = vmatprep.subr.bf16.mxu1 %v6730_v56 }
 0x749   :  { %6733 = vmatpush3.bf16.msra.mxu1 %v6730_v56 }
 0x74a   :  { %6735 = vmatprep.subr.bf16.mxu1 %v6734_v26 }
 0x74d   :  { %6737 = vmatpush3.bf16.msra.mxu1 %v6734_v26 }
 0x74e   :  { %6739 = vmatprep.subr.bf16.mxu1 %v6738_v29 }
 0x751   :  { %6741 = vmatpush3.bf16.msra.mxu1 %v6738_v29 }
 0x752   :  { %6743 = vmatprep.subr.bf16.mxu1 %v6742_v32 }
 0x755   :  { %6745 = vmatpush3.bf16.msra.mxu1 %v6742_v32 }
 0x758   :  { %5824 = vmatmul.mubr.f32.vlgmr.msra.gmra.mrb[14].mxu1 %v3701_v43 }
 0x82b   :  { %v5825_v44 = vpop.f32.mrb[14].mxu1 }
 0x82c   :  { %v3803_v33 = vadd.f32 %v5825_v44, %v7937_v14  ;;  %v3784_v12 = vpop.f32.mrb[15].mxu1 }
 0x82d   :  { %v3802_v34 = vadd.f32 %v7937_v14, %v3784_v12 }
 0x82e   :  { %v3805_v35 = vmax.f32 %v3803_v33, 0.0 }
 0x82f   :  { %v3804_v36 = vmax.f32 %v3802_v34, 0.0 }
 0x830   :  { %v3807_v37 = vsub.f32 0.0, %v3805_v35 }
 0x831   :  { %v3806_v38 = vsub.f32 0.0, %v3804_v36 }
 0x832   :  { %v3810_v39 = vmul.f32 1.442695, %v3807_v37 }
 0x833   :  { %v3808_v40 = vmul.f32 1.442695, %v3806_v38 }
 0x834   :  { %6810 = vpow2.f32 %v3810_v39 }
 0x835   :  { %6812 = vpow2.f32 %v3808_v40 }
 0x83e   :  { %v6811_v41 = vpop.eup %6810 }
 0x83f   :  { %v6813_v42 = vpop.eup %6812  ;;  %v3813_v45 = vadd.f32 1.0, %v6811_v41 }
 0x840   :  { %v3812_v46 = vadd.f32 1.0, %v6813_v42 }
 0x841   :  { %6814 = vrcp.f32 %v3813_v45 }
 0x842   :  { %6816 = vrcp.f32 %v3812_v46 }
 0x84b   :  { %v6815_v47 = vpop.eup %6814 }
 0x84c   :  { %v6817_v48 = vpop.eup %6816  ;;  %3817 = vst.msk [vmem:[#allocation10 + $0x18] sm:$0xff] %vm78_vm1, %v6815_v47 }
 0x84d   :  { %3816 = vst.msk [vmem:[#allocation10 + $0x10] sm:$0xff] %vm78_vm1, %v6817_v48 }
 0x84e   :  { %6873 = shalt.err (!%p6870_p6)
}
 0x84f   :  { %s6874_s18 = scalar_lea.hbm %s8233_s9, 512 }
 0x850   :  { %p6875_p7 = scmp.ne.s32.totalorder %s8233_s9, %s6874_s18  ;;  %p6878_p8 = scmp.lt.u32.totalorder %s6874_s18, %s8233_s9 }
 0x852   :  { %p6880_p9 = pnand %p6878_p8, %p6875_p7 }
 0x854   :  { %6883 = shalt.err (!%p6880_p9)
}
 0x855   :  { %3829 = dma.vmem_to_hbm [thread:$0]  %s3824_s15, 512, %s8233_s9, [#allocation7], %s6891_s19, %s6891_s19, %s6892_s20  }
 0x856   :  { %6888 = dma.done.wait [#allocation7], 512  }
 0x857   :  { %6889 = vsyncadd [#allocation7], 4294966784 }
 0x858   :  { %3833 = vsyncpa [#allocation6], 1 }
 0x859   :  { %3834 = vsyncpa [#allocation9], 1 }
 0x85a   :  { %3835 = vsyncpa [#allocation7], 1 }

</bundles_post_ra>
